<compile_context>
chip_gen: v7x
topology: tpu7x:2x2x1
jax: 0.10.0
libtpu: 0.0.40
codegen_flags: <defaults>
</compile_context>

<pallas_src>
import functools

import jax
import jax.numpy as jnp
from jax import lax
from jax.experimental import pallas as pl
from jax.experimental.pallas import tpu as pltpu

_SUBLANE = 8    # f32 sublane tile
_LANE = 128     # lane tile


def _round_up(v, m):
    return (v + m - 1) // m * m


# ---------------------------------------------------------------------------
# In-kernel building blocks (lane-dense (C, N*H*W) f32 activations; batch is
# fused into the lane axis, per-image positions contiguous).
# ---------------------------------------------------------------------------
def _conv3x3(x, w_mat, b, tap_mask, w, relu=True):
    """3x3 'same' convolution as ONE MXU contraction.

    x:        (Cin, P) f32, lane p = b*h*w + row*w + col.
    w_mat:    (Cout, 9*Cin) bf16, taps packed as tap = (dh+1)*3 + (dw+1).
    b:        (Cout, 1) f32.
    tap_mask: (9, P) f32, precomputed host-side.  Zeroes every tap that falls
              outside its image (implements the zero 'same' padding and stops
              pltpu.roll's circular wrap from leaking across image / batch
              boundaries).
    """
    p = x.shape[-1]
    taps = []
    t = 0
    for dh in (-1, 0, 1):
        for dw in (-1, 0, 1):
            off = dh * w + dw
            if off == 0:
                taps.append(x.astype(jnp.bfloat16))
            else:
                # shifted[q] = x[(q + off) % P]  (XLU lane rotate)
                shifted = pltpu.roll(x, shift=(-off) % p, axis=1)
                # Mask in f32 (v5e-safe), cast to bf16 immediately.
                taps.append((shifted * tap_mask[t:t + 1, :]).astype(jnp.bfloat16))
            t += 1
    im2col = jnp.concatenate(taps, axis=0)                       # (9*Cin, P) bf16
    acc = jnp.dot(w_mat, im2col, preferred_element_type=jnp.float32) + b
    return jnp.maximum(acc, 0.0) if relu else acc


def _maxpool2(x, pool_sel, w):
    """2x2 stride-2 max pool: 3 XLU rotates + one constant 0/1 matmul.

    Anchor lanes (even row, even col) never wrap (h, w even), and non-anchor
    lanes hold finite activations multiplied by exactly-zero bf16 columns, so
    the result is exact for every selected lane.
    """
    p = x.shape[-1]
    m = x
    for d in (1, w, w + 1):
        m = jnp.maximum(m, pltpu.roll(x, shift=(-d) % p, axis=1))
    return jnp.dot(m.astype(jnp.bfloat16), pool_sel,
                   preferred_element_type=jnp.float32)           # (C, P/4)


def _upsample2(x, up_scatter):
    """2x nearest-neighbour upsample via one constant 0/1 matmul."""
    return jnp.dot(x.astype(jnp.bfloat16), up_scatter,
                   preferred_element_type=jnp.float32)           # (C, P)


def _unet_forward(x, params, consts, w):
    """One small 2-level UNet on a lane-dense (C_pad, N*h*w) f32 activation."""
    enc_w, enc_b, bot_w, bot_b, dec_w, dec_b, out_w, out_b = params
    mask_full, mask_half, pool_sel, up_scatter = consts
    e1 = _conv3x3(x, enc_w, enc_b, mask_full, w)                 # (cb,  P)
    d0 = _maxpool2(e1, pool_sel, w)                              # (cb,  P/4)
    bn = _conv3x3(d0, bot_w, bot_b, mask_half, w // 2)           # (2cb, P/4)
    up = _upsample2(bn, up_scatter)                              # (2cb, P)
    cat = jnp.concatenate([up, e1], axis=0)                      # (3cb, P)
    d1 = _conv3x3(cat, dec_w, dec_b, mask_full, w)               # (cb,  P)
    # 1x1 conv, linear.
    return jnp.dot(out_w, d1.astype(jnp.bfloat16),
                   preferred_element_type=jnp.float32) + out_b   # (C_pad, P)


def _fused_kernel(x_ref, mf_ref, mh_ref, sel_ref, sc_ref, *rest, w):
    *w_refs, o_ref = rest
    consts = (mf_ref[...], mh_ref[...], sel_ref[...], sc_ref[...])
    n_half = len(w_refs) // 2
    late_sup = [r[...] for r in w_refs[:n_half]]
    denoise = [r[...] for r in w_refs[n_half:]]

    x = x_ref[...]                                               # (C_pad, P) f32
    out_1 = _unet_forward(x, late_sup, consts, w)                # late_sup_unet(input)
    combined = _unet_forward(out_1, denoise, consts, w)          # denoise_unet(output_1)
    o_ref[...] = combined


# ---------------------------------------------------------------------------
# Host-side precomputed constants (depend only on h, w, n)
# ---------------------------------------------------------------------------
def _make_tap_masks(h, w, n):
    """(9, n*h*w) f32 per-tap validity masks, tap = (dh+1)*3 + (dw+1)."""
    p = jnp.arange(h * w)
    r, c = p // w, p % w
    rows = []
    for dh in (-1, 0, 1):
        for dw in (-1, 0, 1):
            rows.append((r + dh >= 0) & (r + dh < h) & (c + dw >= 0) & (c + dw < w))
    m = jnp.stack(rows, axis=0).astype(jnp.float32)              # (9, h*w)
    return jnp.tile(m, (1, n))                                   # (9, n*h*w)


def _make_pool_select(h, w, n):
    """(n*h*w, n*(h/2)*(w/2)) bf16 0/1 matrix selecting 2x2 pool anchors."""
    h2, w2 = h // 2, w // 2
    p = jnp.arange(n * h * w)
    b, rem = p // (h * w), p % (h * w)
    r, c = rem // w, rem % w
    anchor = (r % 2 == 0) & (c % 2 == 0)
    dst = b * (h2 * w2) + (r // 2) * w2 + (c // 2)
    q = jnp.arange(n * h2 * w2)
    sel = anchor[:, None] & (q[None, :] == dst[:, None])
    return sel.astype(jnp.bfloat16)


def _make_up_scatter(h, w, n):
    """(n*(h/2)*(w/2), n*h*w) bf16 0/1 nearest-neighbour upsample scatter."""
    h2, w2 = h // 2, w // 2
    p = jnp.arange(n * h * w)
    b, rem = p // (h * w), p % (h * w)
    r, c = rem // w, rem % w
    src = b * (h2 * w2) + (r // 2) * w2 + (c // 2)
    q = jnp.arange(n * h2 * w2)
    return (q[:, None] == src[None, :]).astype(jnp.bfloat16)


# ---------------------------------------------------------------------------
# Weight packing
# ---------------------------------------------------------------------------
def _pack_conv3x3(w, b, cin_pad=None):
    """(k,k,Cin,Cout)/(Cout,) -> (Cout, k*k*Cin_pad) bf16, (Cout, 1) f32."""
    kh, kw, ci, co = w.shape
    if cin_pad is not None and cin_pad > ci:
        w = jnp.pad(w, ((0, 0), (0, 0), (0, cin_pad - ci), (0, 0)))
        ci = cin_pad
    w_mat = jnp.transpose(w, (3, 0, 1, 2)).reshape(co, kh * kw * ci)
    return w_mat.astype(jnp.bfloat16), b.reshape(co, 1).astype(jnp.float32)


def _pack_conv1x1(w, b, cout_pad=None):
    """(1,1,Cin,Cout)/(Cout,) -> (Cout_pad, Cin) bf16, (Cout_pad, 1) f32."""
    _, _, ci, co = w.shape
    w_mat = jnp.transpose(w, (3, 0, 1, 2)).reshape(co, ci)
    b_col = b.reshape(co, 1)
    if cout_pad is not None and cout_pad > co:
        w_mat = jnp.pad(w_mat, ((0, cout_pad - co), (0, 0)))
        b_col = jnp.pad(b_col, ((0, cout_pad - co), (0, 0)))
    return w_mat.astype(jnp.bfloat16), b_col.astype(jnp.float32)


def _pack_unet_params(p, c_pad):
    enc = _pack_conv3x3(p["enc_w"], p["enc_b"], cin_pad=c_pad)
    bot = _pack_conv3x3(p["bot_w"], p["bot_b"])
    dec = _pack_conv3x3(p["dec_w"], p["dec_b"])
    out = _pack_conv1x1(p["out_w"], p["out_b"], cout_pad=c_pad)
    return (*enc, *bot, *dec, *out)        # 8 arrays per UNet


# ---------------------------------------------------------------------------
# Wrapper
# ---------------------------------------------------------------------------
@jax.jit
def fine_tuning_unet_forward(x_nchw, late_sup_params, denoise_params):
    """FineTuningUNet.forward: denoise_unet(late_sup_unet(input)). NCHW in/out."""
    n, c, h, w = x_nchw.shape
    assert h % 2 == 0 and w % 2 == 0, "2x2 maxpool needs even spatial dims"
    hw = h * w
    p_full = n * hw
    c_pad = _round_up(c, _SUBLANE)
    # At the target small shapes both lane extents are 128-aligned
    # (P_full = 512, P_half = 128) so every store is an unmasked lane-dense vst.
    assert p_full % _LANE == 0 and (n * (h // 2) * (w // 2)) % _LANE == 0, (
        "batch-fused lane dims must be 128-aligned for this small-image path")

    # Batch fused into the lane axis: (C_pad, N*H*W), per-image positions
    # contiguous; channels zero-padded to a sublane multiple.
    x2d = jnp.transpose(x_nchw.astype(jnp.float32), (1, 0, 2, 3)).reshape(c, p_full)
    x2d = jnp.pad(x2d, ((0, c_pad - c), (0, 0)))

    # Constant-foldable selection / mask matrices (built outside the kernel).
    consts = (_make_tap_masks(h, w, n),
              _make_tap_masks(h // 2, w // 2, n),
              _make_pool_select(h, w, n),
              _make_up_scatter(h, w, n))

    flat = (_pack_unet_params(late_sup_params, c_pad)
            + _pack_unet_params(denoise_params, c_pad))

    # Single grid step; every operand is a whole-array VMEM block (< 1 MiB
    # total), so there is no pipelining overhead and no scratch buffer.
    out = pl.pallas_call(
        functools.partial(_fused_kernel, w=w),
        out_shape=jax.ShapeDtypeStruct((c_pad, p_full), jnp.float32),
    )(x2d, *consts, *flat)

    out = out[:c].reshape(c, n, h, w)
    return jnp.transpose(out, (1, 0, 2, 3))


# ---------------------------------------------------------------------------
# Parameter init (sub-UNet architecture is invented; conv layout (k,k,Cin,Cout))
# ---------------------------------------------------------------------------
def init_unet_params(key, c_in, c_out, cb):
    assert cb % _SUBLANE == 0, "base channel count should be a multiple of 8"
    ks = jax.random.split(key, 4)

    def conv_init(k, ksize, ci, co):
        scale = 1.0 / jnp.sqrt(jnp.float32(ksize * ksize * ci))
        return (jax.random.normal(k, (ksize, ksize, ci, co), jnp.float32) * scale,
                jnp.zeros((co,), jnp.float32))

    enc_w, enc_b = conv_init(ks[0], 3, c_in, cb)
    bot_w, bot_b = conv_init(ks[1], 3, cb, 2 * cb)
    dec_w, dec_b = conv_init(ks[2], 3, 3 * cb, cb)
    out_w, out_b = conv_init(ks[3], 1, cb, c_out)
    return dict(enc_w=enc_w, enc_b=enc_b, bot_w=bot_w, bot_b=bot_b,
                dec_w=dec_w, dec_b=dec_b, out_w=out_w, out_b=out_b)


# ---------------------------------------------------------------------------
# Pure-JAX reference (same invented architecture) — sanity check only
# ---------------------------------------------------------------------------
def _ref_conv(x, w, b, relu=True):
    y = lax.conv_general_dilated(x, w, window_strides=(1, 1), padding="SAME",
                                 dimension_numbers=("NCHW", "HWIO", "NCHW"))
    y = y + b.reshape(1, -1, 1, 1)
    return jnp.maximum(y, 0.0) if relu else y


def _ref_unet(x, p):
    e1 = _ref_conv(x, p["enc_w"], p["enc_b"])
    n, c, h, w = e1.shape
    d0 = e1.reshape(n, c, h // 2, 2, w // 2, 2).max(axis=(3, 5))
    bn = _ref_conv(d0, p["bot_w"], p["bot_b"])
    up = jnp.repeat(jnp.repeat(bn, 2, axis=2), 2, axis=3)
    cat = jnp.concatenate([up, e1], axis=1)
    d1 = _ref_conv(cat, p["dec_w"], p["dec_b"])
    return _ref_conv(d1, p["out_w"], p["out_b"], relu=False)


@jax.jit
def _ref_forward(x, ls, dn):
    return _ref_unet(_ref_unet(x, ls), dn)


if __name__ == "__main__":
    key = jax.random.PRNGKey(0)
    k_x, k_ls, k_dn = jax.random.split(key, 3)

    N, C, H, W = 2, 4, 16, 16      # Cout == Cin so the two UNets compose
    cb = 8

    x = jax.random.normal(k_x, (N, C, H, W), jnp.float32)
    late_sup_params = init_unet_params(k_ls, C, C, cb)
    denoise_params = init_unet_params(k_dn, C, C, cb)

    y = fine_tuning_unet_forward(x, late_sup_params, denoise_params)
    y = jax.block_until_ready(y)
    assert y.shape == (N, C, H, W) and y.dtype == jnp.float32
    assert bool(jnp.all(jnp.isfinite(y)))

    # Loose cross-check against the f32 pure-JAX reference (the kernel uses the
    # bf16 MXU path, so only a coarse tolerance is expected to hold).
    y_ref = jax.block_until_ready(_ref_forward(x, late_sup_params, denoise_params))
    max_err = float(jnp.max(jnp.abs(y - y_ref)))
    scale = float(jnp.max(jnp.abs(y_ref)))
    assert max_err <= 0.1 * scale + 0.1, (max_err, scale)

    print("KERNEL_OK")
</pallas_src>

<mosaic_0001>
module attributes {stable_mosaic.version = 11 : i64} {
  func.func @_fused_kernel(%arg0: memref<8x512xf32, #tpu.memory_space<vmem>>, %arg1: memref<9x512xf32, #tpu.memory_space<vmem>>, %arg2: memref<9x128xf32, #tpu.memory_space<vmem>>, %arg3: memref<512x128xbf16, #tpu.memory_space<vmem>>, %arg4: memref<128x512xbf16, #tpu.memory_space<vmem>>, %arg5: memref<8x72xbf16, #tpu.memory_space<vmem>>, %arg6: memref<8x1xf32, #tpu.memory_space<vmem>>, %arg7: memref<16x72xbf16, #tpu.memory_space<vmem>>, %arg8: memref<16x1xf32, #tpu.memory_space<vmem>>, %arg9: memref<8x216xbf16, #tpu.memory_space<vmem>>, %arg10: memref<8x1xf32, #tpu.memory_space<vmem>>, %arg11: memref<8x8xbf16, #tpu.memory_space<vmem>>, %arg12: memref<8x1xf32, #tpu.memory_space<vmem>>, %arg13: memref<8x72xbf16, #tpu.memory_space<vmem>>, %arg14: memref<8x1xf32, #tpu.memory_space<vmem>>, %arg15: memref<16x72xbf16, #tpu.memory_space<vmem>>, %arg16: memref<16x1xf32, #tpu.memory_space<vmem>>, %arg17: memref<8x216xbf16, #tpu.memory_space<vmem>>, %arg18: memref<8x1xf32, #tpu.memory_space<vmem>>, %arg19: memref<8x8xbf16, #tpu.memory_space<vmem>>, %arg20: memref<8x1xf32, #tpu.memory_space<vmem>>, %arg21: memref<8x512xf32, #tpu.memory_space<vmem>>) attributes {dimension_semantics = [], scalar_prefetch = 0 : i64, scratch_operands = 0 : i64, tpu.core_type = #tpu.core_type<tc>} {
    %c0 = arith.constant 0 : index
    %c0_0 = arith.constant 0 : index
    %0 = vector.load %arg1[%c0, %c0_0] : memref<9x512xf32, #tpu.memory_space<vmem>>, vector<9x512xf32>
    %c0_1 = arith.constant 0 : index
    %c0_2 = arith.constant 0 : index
    %1 = vector.load %arg2[%c0_1, %c0_2] : memref<9x128xf32, #tpu.memory_space<vmem>>, vector<9x128xf32>
    %c0_3 = arith.constant 0 : index
    %c0_4 = arith.constant 0 : index
    %2 = vector.load %arg3[%c0_3, %c0_4] : memref<512x128xbf16, #tpu.memory_space<vmem>>, vector<512x128xbf16>
    %c0_5 = arith.constant 0 : index
    %c0_6 = arith.constant 0 : index
    %3 = vector.load %arg4[%c0_5, %c0_6] : memref<128x512xbf16, #tpu.memory_space<vmem>>, vector<128x512xbf16>
    %c0_7 = arith.constant 0 : index
    %c0_8 = arith.constant 0 : index
    %4 = vector.load %arg5[%c0_7, %c0_8] : memref<8x72xbf16, #tpu.memory_space<vmem>>, vector<8x72xbf16>
    %c0_9 = arith.constant 0 : index
    %c0_10 = arith.constant 0 : index
    %5 = vector.load %arg6[%c0_9, %c0_10] : memref<8x1xf32, #tpu.memory_space<vmem>>, vector<8x1xf32>
    %c0_11 = arith.constant 0 : index
    %c0_12 = arith.constant 0 : index
    %6 = vector.load %arg7[%c0_11, %c0_12] : memref<16x72xbf16, #tpu.memory_space<vmem>>, vector<16x72xbf16>
    %c0_13 = arith.constant 0 : index
    %c0_14 = arith.constant 0 : index
    %7 = vector.load %arg8[%c0_13, %c0_14] : memref<16x1xf32, #tpu.memory_space<vmem>>, vector<16x1xf32>
    %c0_15 = arith.constant 0 : index
    %c0_16 = arith.constant 0 : index
    %8 = vector.load %arg9[%c0_15, %c0_16] : memref<8x216xbf16, #tpu.memory_space<vmem>>, vector<8x216xbf16>
    %c0_17 = arith.constant 0 : index
    %c0_18 = arith.constant 0 : index
    %9 = vector.load %arg10[%c0_17, %c0_18] : memref<8x1xf32, #tpu.memory_space<vmem>>, vector<8x1xf32>
    %c0_19 = arith.constant 0 : index
    %c0_20 = arith.constant 0 : index
    %10 = vector.load %arg11[%c0_19, %c0_20] : memref<8x8xbf16, #tpu.memory_space<vmem>>, vector<8x8xbf16>
    %c0_21 = arith.constant 0 : index
    %c0_22 = arith.constant 0 : index
    %11 = vector.load %arg12[%c0_21, %c0_22] : memref<8x1xf32, #tpu.memory_space<vmem>>, vector<8x1xf32>
    %c0_23 = arith.constant 0 : index
    %c0_24 = arith.constant 0 : index
    %12 = vector.load %arg13[%c0_23, %c0_24] : memref<8x72xbf16, #tpu.memory_space<vmem>>, vector<8x72xbf16>
    %c0_25 = arith.constant 0 : index
    %c0_26 = arith.constant 0 : index
    %13 = vector.load %arg14[%c0_25, %c0_26] : memref<8x1xf32, #tpu.memory_space<vmem>>, vector<8x1xf32>
    %c0_27 = arith.constant 0 : index
    %c0_28 = arith.constant 0 : index
    %14 = vector.load %arg15[%c0_27, %c0_28] : memref<16x72xbf16, #tpu.memory_space<vmem>>, vector<16x72xbf16>
    %c0_29 = arith.constant 0 : index
    %c0_30 = arith.constant 0 : index
    %15 = vector.load %arg16[%c0_29, %c0_30] : memref<16x1xf32, #tpu.memory_space<vmem>>, vector<16x1xf32>
    %c0_31 = arith.constant 0 : index
    %c0_32 = arith.constant 0 : index
    %16 = vector.load %arg17[%c0_31, %c0_32] : memref<8x216xbf16, #tpu.memory_space<vmem>>, vector<8x216xbf16>
    %c0_33 = arith.constant 0 : index
    %c0_34 = arith.constant 0 : index
    %17 = vector.load %arg18[%c0_33, %c0_34] : memref<8x1xf32, #tpu.memory_space<vmem>>, vector<8x1xf32>
    %c0_35 = arith.constant 0 : index
    %c0_36 = arith.constant 0 : index
    %18 = vector.load %arg19[%c0_35, %c0_36] : memref<8x8xbf16, #tpu.memory_space<vmem>>, vector<8x8xbf16>
    %c0_37 = arith.constant 0 : index
    %c0_38 = arith.constant 0 : index
    %19 = vector.load %arg20[%c0_37, %c0_38] : memref<8x1xf32, #tpu.memory_space<vmem>>, vector<8x1xf32>
    %c0_39 = arith.constant 0 : index
    %c0_40 = arith.constant 0 : index
    %20 = vector.load %arg0[%c0_39, %c0_40] : memref<8x512xf32, #tpu.memory_space<vmem>>, vector<8x512xf32>
    %c17_i32 = arith.constant 17 : i32
    %21 = tpu.dynamic_rotate %20 by %c17_i32 dim 1 : vector<8x512xf32>, i32 -> vector<8x512xf32>
    %22 = vector.extract_strided_slice %0 {offsets = [0, 0], sizes = [1, 512], strides = [1, 1]} : vector<9x512xf32> to vector<1x512xf32>
    %23 = vector.broadcast %22 : vector<1x512xf32> to vector<8x512xf32>
    %24 = arith.mulf %21, %23 : vector<8x512xf32>
    %25 = arith.truncf %24 : vector<8x512xf32> to vector<8x512xbf16>
    %c16_i32 = arith.constant 16 : i32
    %26 = tpu.dynamic_rotate %20 by %c16_i32 dim 1 : vector<8x512xf32>, i32 -> vector<8x512xf32>
    %27 = vector.extract_strided_slice %0 {offsets = [1, 0], sizes = [1, 512], strides = [1, 1]} : vector<9x512xf32> to vector<1x512xf32>
    %28 = vector.broadcast %27 : vector<1x512xf32> to vector<8x512xf32>
    %29 = arith.mulf %26, %28 : vector<8x512xf32>
    %30 = arith.truncf %29 : vector<8x512xf32> to vector<8x512xbf16>
    %c15_i32 = arith.constant 15 : i32
    %31 = tpu.dynamic_rotate %20 by %c15_i32 dim 1 : vector<8x512xf32>, i32 -> vector<8x512xf32>
    %32 = vector.extract_strided_slice %0 {offsets = [2, 0], sizes = [1, 512], strides = [1, 1]} : vector<9x512xf32> to vector<1x512xf32>
    %33 = vector.broadcast %32 : vector<1x512xf32> to vector<8x512xf32>
    %34 = arith.mulf %31, %33 : vector<8x512xf32>
    %35 = arith.truncf %34 : vector<8x512xf32> to vector<8x512xbf16>
    %c1_i32 = arith.constant 1 : i32
    %36 = tpu.dynamic_rotate %20 by %c1_i32 dim 1 : vector<8x512xf32>, i32 -> vector<8x512xf32>
    %37 = vector.extract_strided_slice %0 {offsets = [3, 0], sizes = [1, 512], strides = [1, 1]} : vector<9x512xf32> to vector<1x512xf32>
    %38 = vector.broadcast %37 : vector<1x512xf32> to vector<8x512xf32>
    %39 = arith.mulf %36, %38 : vector<8x512xf32>
    %40 = arith.truncf %39 : vector<8x512xf32> to vector<8x512xbf16>
    %41 = arith.truncf %20 : vector<8x512xf32> to vector<8x512xbf16>
    %c511_i32 = arith.constant 511 : i32
    %42 = tpu.dynamic_rotate %20 by %c511_i32 dim 1 : vector<8x512xf32>, i32 -> vector<8x512xf32>
    %43 = vector.extract_strided_slice %0 {offsets = [5, 0], sizes = [1, 512], strides = [1, 1]} : vector<9x512xf32> to vector<1x512xf32>
    %44 = vector.broadcast %43 : vector<1x512xf32> to vector<8x512xf32>
    %45 = arith.mulf %42, %44 : vector<8x512xf32>
    %46 = arith.truncf %45 : vector<8x512xf32> to vector<8x512xbf16>
    %c497_i32 = arith.constant 497 : i32
    %47 = tpu.dynamic_rotate %20 by %c497_i32 dim 1 : vector<8x512xf32>, i32 -> vector<8x512xf32>
    %48 = vector.extract_strided_slice %0 {offsets = [6, 0], sizes = [1, 512], strides = [1, 1]} : vector<9x512xf32> to vector<1x512xf32>
    %49 = vector.broadcast %48 : vector<1x512xf32> to vector<8x512xf32>
    %50 = arith.mulf %47, %49 : vector<8x512xf32>
    %51 = arith.truncf %50 : vector<8x512xf32> to vector<8x512xbf16>
    %c496_i32 = arith.constant 496 : i32
    %52 = tpu.dynamic_rotate %20 by %c496_i32 dim 1 : vector<8x512xf32>, i32 -> vector<8x512xf32>
    %53 = vector.extract_strided_slice %0 {offsets = [7, 0], sizes = [1, 512], strides = [1, 1]} : vector<9x512xf32> to vector<1x512xf32>
    %54 = vector.broadcast %53 : vector<1x512xf32> to vector<8x512xf32>
    %55 = arith.mulf %52, %54 : vector<8x512xf32>
    %56 = arith.truncf %55 : vector<8x512xf32> to vector<8x512xbf16>
    %c495_i32 = arith.constant 495 : i32
    %57 = tpu.dynamic_rotate %20 by %c495_i32 dim 1 : vector<8x512xf32>, i32 -> vector<8x512xf32>
    %58 = vector.extract_strided_slice %0 {offsets = [8, 0], sizes = [1, 512], strides = [1, 1]} : vector<9x512xf32> to vector<1x512xf32>
    %59 = vector.broadcast %58 : vector<1x512xf32> to vector<8x512xf32>
    %60 = arith.mulf %57, %59 : vector<8x512xf32>
    %61 = arith.truncf %60 : vector<8x512xf32> to vector<8x512xbf16>
    %62 = tpu.concatenate %25, %30, %35, %40, %41, %46, %51, %56, %61 in 0 : vector<8x512xbf16>, vector<8x512xbf16>, vector<8x512xbf16>, vector<8x512xbf16>, vector<8x512xbf16>, vector<8x512xbf16>, vector<8x512xbf16>, vector<8x512xbf16>, vector<8x512xbf16> -> vector<72x512xbf16>
    %cst = arith.constant dense<0.000000e+00> : vector<8x512xf32>
    %63 = tpu.matmul %4, %62, %cst {dimension_numbers = #tpu.dot_dimension_numbers<[1], [0], [0], [1], [0, 0, 1, 1], [], []>} : vector<8x72xbf16>, vector<72x512xbf16>, vector<8x512xf32> -> vector<8x512xf32>
    %64 = vector.broadcast %5 : vector<8x1xf32> to vector<8x512xf32>
    %65 = arith.addf %63, %64 : vector<8x512xf32>
    %cst_41 = arith.constant 0.000000e+00 : f32
    %66 = vector.broadcast %cst_41 : f32 to vector<8x512xf32>
    %67 = arith.maximumf %65, %66 : vector<8x512xf32>
    %c511_i32_42 = arith.constant 511 : i32
    %68 = tpu.dynamic_rotate %67 by %c511_i32_42 dim 1 : vector<8x512xf32>, i32 -> vector<8x512xf32>
    %69 = arith.maximumf %67, %68 : vector<8x512xf32>
    %c496_i32_43 = arith.constant 496 : i32
    %70 = tpu.dynamic_rotate %67 by %c496_i32_43 dim 1 : vector<8x512xf32>, i32 -> vector<8x512xf32>
    %71 = arith.maximumf %69, %70 : vector<8x512xf32>
    %c495_i32_44 = arith.constant 495 : i32
    %72 = tpu.dynamic_rotate %67 by %c495_i32_44 dim 1 : vector<8x512xf32>, i32 -> vector<8x512xf32>
    %73 = arith.maximumf %71, %72 : vector<8x512xf32>
    %74 = arith.truncf %73 : vector<8x512xf32> to vector<8x512xbf16>
    %cst_45 = arith.constant dense<0.000000e+00> : vector<8x128xf32>
    %75 = tpu.matmul %74, %2, %cst_45 {dimension_numbers = #tpu.dot_dimension_numbers<[1], [0], [0], [1], [0, 0, 1, 1], [], []>} : vector<8x512xbf16>, vector<512x128xbf16>, vector<8x128xf32> -> vector<8x128xf32>
    %c9_i32 = arith.constant 9 : i32
    %76 = tpu.dynamic_rotate %75 by %c9_i32 dim 1 : vector<8x128xf32>, i32 -> vector<8x128xf32>
    %77 = vector.extract_strided_slice %1 {offsets = [0, 0], sizes = [1, 128], strides = [1, 1]} : vector<9x128xf32> to vector<1x128xf32>
    %78 = vector.broadcast %77 : vector<1x128xf32> to vector<8x128xf32>
    %79 = arith.mulf %76, %78 : vector<8x128xf32>
    %80 = arith.truncf %79 : vector<8x128xf32> to vector<8x128xbf16>
    %c8_i32 = arith.constant 8 : i32
    %81 = tpu.dynamic_rotate %75 by %c8_i32 dim 1 : vector<8x128xf32>, i32 -> vector<8x128xf32>
    %82 = vector.extract_strided_slice %1 {offsets = [1, 0], sizes = [1, 128], strides = [1, 1]} : vector<9x128xf32> to vector<1x128xf32>
    %83 = vector.broadcast %82 : vector<1x128xf32> to vector<8x128xf32>
    %84 = arith.mulf %81, %83 : vector<8x128xf32>
    %85 = arith.truncf %84 : vector<8x128xf32> to vector<8x128xbf16>
    %c7_i32 = arith.constant 7 : i32
    %86 = tpu.dynamic_rotate %75 by %c7_i32 dim 1 : vector<8x128xf32>, i32 -> vector<8x128xf32>
    %87 = vector.extract_strided_slice %1 {offsets = [2, 0], sizes = [1, 128], strides = [1, 1]} : vector<9x128xf32> to vector<1x128xf32>
    %88 = vector.broadcast %87 : vector<1x128xf32> to vector<8x128xf32>
    %89 = arith.mulf %86, %88 : vector<8x128xf32>
    %90 = arith.truncf %89 : vector<8x128xf32> to vector<8x128xbf16>
    %c1_i32_46 = arith.constant 1 : i32
    %91 = tpu.dynamic_rotate %75 by %c1_i32_46 dim 1 : vector<8x128xf32>, i32 -> vector<8x128xf32>
    %92 = vector.extract_strided_slice %1 {offsets = [3, 0], sizes = [1, 128], strides = [1, 1]} : vector<9x128xf32> to vector<1x128xf32>
    %93 = vector.broadcast %92 : vector<1x128xf32> to vector<8x128xf32>
    %94 = arith.mulf %91, %93 : vector<8x128xf32>
    %95 = arith.truncf %94 : vector<8x128xf32> to vector<8x128xbf16>
    %96 = arith.truncf %75 : vector<8x128xf32> to vector<8x128xbf16>
    %c127_i32 = arith.constant 127 : i32
    %97 = tpu.dynamic_rotate %75 by %c127_i32 dim 1 : vector<8x128xf32>, i32 -> vector<8x128xf32>
    %98 = vector.extract_strided_slice %1 {offsets = [5, 0], sizes = [1, 128], strides = [1, 1]} : vector<9x128xf32> to vector<1x128xf32>
    %99 = vector.broadcast %98 : vector<1x128xf32> to vector<8x128xf32>
    %100 = arith.mulf %97, %99 : vector<8x128xf32>
    %101 = arith.truncf %100 : vector<8x128xf32> to vector<8x128xbf16>
    %c121_i32 = arith.constant 121 : i32
    %102 = tpu.dynamic_rotate %75 by %c121_i32 dim 1 : vector<8x128xf32>, i32 -> vector<8x128xf32>
    %103 = vector.extract_strided_slice %1 {offsets = [6, 0], sizes = [1, 128], strides = [1, 1]} : vector<9x128xf32> to vector<1x128xf32>
    %104 = vector.broadcast %103 : vector<1x128xf32> to vector<8x128xf32>
    %105 = arith.mulf %102, %104 : vector<8x128xf32>
    %106 = arith.truncf %105 : vector<8x128xf32> to vector<8x128xbf16>
    %c120_i32 = arith.constant 120 : i32
    %107 = tpu.dynamic_rotate %75 by %c120_i32 dim 1 : vector<8x128xf32>, i32 -> vector<8x128xf32>
    %108 = vector.extract_strided_slice %1 {offsets = [7, 0], sizes = [1, 128], strides = [1, 1]} : vector<9x128xf32> to vector<1x128xf32>
    %109 = vector.broadcast %108 : vector<1x128xf32> to vector<8x128xf32>
    %110 = arith.mulf %107, %109 : vector<8x128xf32>
    %111 = arith.truncf %110 : vector<8x128xf32> to vector<8x128xbf16>
    %c119_i32 = arith.constant 119 : i32
    %112 = tpu.dynamic_rotate %75 by %c119_i32 dim 1 : vector<8x128xf32>, i32 -> vector<8x128xf32>
    %113 = vector.extract_strided_slice %1 {offsets = [8, 0], sizes = [1, 128], strides = [1, 1]} : vector<9x128xf32> to vector<1x128xf32>
    %114 = vector.broadcast %113 : vector<1x128xf32> to vector<8x128xf32>
    %115 = arith.mulf %112, %114 : vector<8x128xf32>
    %116 = arith.truncf %115 : vector<8x128xf32> to vector<8x128xbf16>
    %117 = tpu.concatenate %80, %85, %90, %95, %96, %101, %106, %111, %116 in 0 : vector<8x128xbf16>, vector<8x128xbf16>, vector<8x128xbf16>, vector<8x128xbf16>, vector<8x128xbf16>, vector<8x128xbf16>, vector<8x128xbf16>, vector<8x128xbf16>, vector<8x128xbf16> -> vector<72x128xbf16>
    %cst_47 = arith.constant dense<0.000000e+00> : vector<16x128xf32>
    %118 = tpu.matmul %6, %117, %cst_47 {dimension_numbers = #tpu.dot_dimension_numbers<[1], [0], [0], [1], [0, 0, 1, 1], [], []>} : vector<16x72xbf16>, vector<72x128xbf16>, vector<16x128xf32> -> vector<16x128xf32>
    %119 = vector.broadcast %7 : vector<16x1xf32> to vector<16x128xf32>
    %120 = arith.addf %118, %119 : vector<16x128xf32>
    %cst_48 = arith.constant 0.000000e+00 : f32
    %121 = vector.broadcast %cst_48 : f32 to vector<16x128xf32>
    %122 = arith.maximumf %120, %121 : vector<16x128xf32>
    %123 = arith.truncf %122 : vector<16x128xf32> to vector<16x128xbf16>
    %cst_49 = arith.constant dense<0.000000e+00> : vector<16x512xf32>
    %124 = tpu.matmul %123, %3, %cst_49 {dimension_numbers = #tpu.dot_dimension_numbers<[1], [0], [0], [1], [0, 0, 1, 1], [], []>} : vector<16x128xbf16>, vector<128x512xbf16>, vector<16x512xf32> -> vector<16x512xf32>
    %125 = tpu.concatenate %124, %67 in 0 : vector<16x512xf32>, vector<8x512xf32> -> vector<24x512xf32>
    %c17_i32_50 = arith.constant 17 : i32
    %126 = tpu.dynamic_rotate %125 by %c17_i32_50 dim 1 : vector<24x512xf32>, i32 -> vector<24x512xf32>
    %127 = vector.extract_strided_slice %0 {offsets = [0, 0], sizes = [1, 512], strides = [1, 1]} : vector<9x512xf32> to vector<1x512xf32>
    %128 = vector.broadcast %127 : vector<1x512xf32> to vector<24x512xf32>
    %129 = arith.mulf %126, %128 : vector<24x512xf32>
    %130 = arith.truncf %129 : vector<24x512xf32> to vector<24x512xbf16>
    %c16_i32_51 = arith.constant 16 : i32
    %131 = tpu.dynamic_rotate %125 by %c16_i32_51 dim 1 : vector<24x512xf32>, i32 -> vector<24x512xf32>
    %132 = vector.extract_strided_slice %0 {offsets = [1, 0], sizes = [1, 512], strides = [1, 1]} : vector<9x512xf32> to vector<1x512xf32>
    %133 = vector.broadcast %132 : vector<1x512xf32> to vector<24x512xf32>
    %134 = arith.mulf %131, %133 : vector<24x512xf32>
    %135 = arith.truncf %134 : vector<24x512xf32> to vector<24x512xbf16>
    %c15_i32_52 = arith.constant 15 : i32
    %136 = tpu.dynamic_rotate %125 by %c15_i32_52 dim 1 : vector<24x512xf32>, i32 -> vector<24x512xf32>
    %137 = vector.extract_strided_slice %0 {offsets = [2, 0], sizes = [1, 512], strides = [1, 1]} : vector<9x512xf32> to vector<1x512xf32>
    %138 = vector.broadcast %137 : vector<1x512xf32> to vector<24x512xf32>
    %139 = arith.mulf %136, %138 : vector<24x512xf32>
    %140 = arith.truncf %139 : vector<24x512xf32> to vector<24x512xbf16>
    %c1_i32_53 = arith.constant 1 : i32
    %141 = tpu.dynamic_rotate %125 by %c1_i32_53 dim 1 : vector<24x512xf32>, i32 -> vector<24x512xf32>
    %142 = vector.extract_strided_slice %0 {offsets = [3, 0], sizes = [1, 512], strides = [1, 1]} : vector<9x512xf32> to vector<1x512xf32>
    %143 = vector.broadcast %142 : vector<1x512xf32> to vector<24x512xf32>
    %144 = arith.mulf %141, %143 : vector<24x512xf32>
    %145 = arith.truncf %144 : vector<24x512xf32> to vector<24x512xbf16>
    %146 = arith.truncf %125 : vector<24x512xf32> to vector<24x512xbf16>
    %c511_i32_54 = arith.constant 511 : i32
    %147 = tpu.dynamic_rotate %125 by %c511_i32_54 dim 1 : vector<24x512xf32>, i32 -> vector<24x512xf32>
    %148 = vector.extract_strided_slice %0 {offsets = [5, 0], sizes = [1, 512], strides = [1, 1]} : vector<9x512xf32> to vector<1x512xf32>
    %149 = vector.broadcast %148 : vector<1x512xf32> to vector<24x512xf32>
    %150 = arith.mulf %147, %149 : vector<24x512xf32>
    %151 = arith.truncf %150 : vector<24x512xf32> to vector<24x512xbf16>
    %c497_i32_55 = arith.constant 497 : i32
    %152 = tpu.dynamic_rotate %125 by %c497_i32_55 dim 1 : vector<24x512xf32>, i32 -> vector<24x512xf32>
    %153 = vector.extract_strided_slice %0 {offsets = [6, 0], sizes = [1, 512], strides = [1, 1]} : vector<9x512xf32> to vector<1x512xf32>
    %154 = vector.broadcast %153 : vector<1x512xf32> to vector<24x512xf32>
    %155 = arith.mulf %152, %154 : vector<24x512xf32>
    %156 = arith.truncf %155 : vector<24x512xf32> to vector<24x512xbf16>
    %c496_i32_56 = arith.constant 496 : i32
    %157 = tpu.dynamic_rotate %125 by %c496_i32_56 dim 1 : vector<24x512xf32>, i32 -> vector<24x512xf32>
    %158 = vector.extract_strided_slice %0 {offsets = [7, 0], sizes = [1, 512], strides = [1, 1]} : vector<9x512xf32> to vector<1x512xf32>
    %159 = vector.broadcast %158 : vector<1x512xf32> to vector<24x512xf32>
    %160 = arith.mulf %157, %159 : vector<24x512xf32>
    %161 = arith.truncf %160 : vector<24x512xf32> to vector<24x512xbf16>
    %c495_i32_57 = arith.constant 495 : i32
    %162 = tpu.dynamic_rotate %125 by %c495_i32_57 dim 1 : vector<24x512xf32>, i32 -> vector<24x512xf32>
    %163 = vector.extract_strided_slice %0 {offsets = [8, 0], sizes = [1, 512], strides = [1, 1]} : vector<9x512xf32> to vector<1x512xf32>
    %164 = vector.broadcast %163 : vector<1x512xf32> to vector<24x512xf32>
    %165 = arith.mulf %162, %164 : vector<24x512xf32>
    %166 = arith.truncf %165 : vector<24x512xf32> to vector<24x512xbf16>
    %167 = tpu.concatenate %130, %135, %140, %145, %146, %151, %156, %161, %166 in 0 : vector<24x512xbf16>, vector<24x512xbf16>, vector<24x512xbf16>, vector<24x512xbf16>, vector<24x512xbf16>, vector<24x512xbf16>, vector<24x512xbf16>, vector<24x512xbf16>, vector<24x512xbf16> -> vector<216x512xbf16>
    %cst_58 = arith.constant dense<0.000000e+00> : vector<8x512xf32>
    %168 = tpu.matmul %8, %167, %cst_58 {dimension_numbers = #tpu.dot_dimension_numbers<[1], [0], [0], [1], [0, 0, 1, 1], [], []>} : vector<8x216xbf16>, vector<216x512xbf16>, vector<8x512xf32> -> vector<8x512xf32>
    %169 = vector.broadcast %9 : vector<8x1xf32> to vector<8x512xf32>
    %170 = arith.addf %168, %169 : vector<8x512xf32>
    %cst_59 = arith.constant 0.000000e+00 : f32
    %171 = vector.broadcast %cst_59 : f32 to vector<8x512xf32>
    %172 = arith.maximumf %170, %171 : vector<8x512xf32>
    %173 = arith.truncf %172 : vector<8x512xf32> to vector<8x512xbf16>
    %cst_60 = arith.constant dense<0.000000e+00> : vector<8x512xf32>
    %174 = tpu.matmul %10, %173, %cst_60 {dimension_numbers = #tpu.dot_dimension_numbers<[1], [0], [0], [1], [0, 0, 1, 1], [], []>} : vector<8x8xbf16>, vector<8x512xbf16>, vector<8x512xf32> -> vector<8x512xf32>
    %175 = vector.broadcast %11 : vector<8x1xf32> to vector<8x512xf32>
    %176 = arith.addf %174, %175 : vector<8x512xf32>
    %c17_i32_61 = arith.constant 17 : i32
    %177 = tpu.dynamic_rotate %176 by %c17_i32_61 dim 1 : vector<8x512xf32>, i32 -> vector<8x512xf32>
    %178 = vector.extract_strided_slice %0 {offsets = [0, 0], sizes = [1, 512], strides = [1, 1]} : vector<9x512xf32> to vector<1x512xf32>
    %179 = vector.broadcast %178 : vector<1x512xf32> to vector<8x512xf32>
    %180 = arith.mulf %177, %179 : vector<8x512xf32>
    %181 = arith.truncf %180 : vector<8x512xf32> to vector<8x512xbf16>
    %c16_i32_62 = arith.constant 16 : i32
    %182 = tpu.dynamic_rotate %176 by %c16_i32_62 dim 1 : vector<8x512xf32>, i32 -> vector<8x512xf32>
    %183 = vector.extract_strided_slice %0 {offsets = [1, 0], sizes = [1, 512], strides = [1, 1]} : vector<9x512xf32> to vector<1x512xf32>
    %184 = vector.broadcast %183 : vector<1x512xf32> to vector<8x512xf32>
    %185 = arith.mulf %182, %184 : vector<8x512xf32>
    %186 = arith.truncf %185 : vector<8x512xf32> to vector<8x512xbf16>
    %c15_i32_63 = arith.constant 15 : i32
    %187 = tpu.dynamic_rotate %176 by %c15_i32_63 dim 1 : vector<8x512xf32>, i32 -> vector<8x512xf32>
    %188 = vector.extract_strided_slice %0 {offsets = [2, 0], sizes = [1, 512], strides = [1, 1]} : vector<9x512xf32> to vector<1x512xf32>
    %189 = vector.broadcast %188 : vector<1x512xf32> to vector<8x512xf32>
    %190 = arith.mulf %187, %189 : vector<8x512xf32>
    %191 = arith.truncf %190 : vector<8x512xf32> to vector<8x512xbf16>
    %c1_i32_64 = arith.constant 1 : i32
    %192 = tpu.dynamic_rotate %176 by %c1_i32_64 dim 1 : vector<8x512xf32>, i32 -> vector<8x512xf32>
    %193 = vector.extract_strided_slice %0 {offsets = [3, 0], sizes = [1, 512], strides = [1, 1]} : vector<9x512xf32> to vector<1x512xf32>
    %194 = vector.broadcast %193 : vector<1x512xf32> to vector<8x512xf32>
    %195 = arith.mulf %192, %194 : vector<8x512xf32>
    %196 = arith.truncf %195 : vector<8x512xf32> to vector<8x512xbf16>
    %197 = arith.truncf %176 : vector<8x512xf32> to vector<8x512xbf16>
    %c511_i32_65 = arith.constant 511 : i32
    %198 = tpu.dynamic_rotate %176 by %c511_i32_65 dim 1 : vector<8x512xf32>, i32 -> vector<8x512xf32>
    %199 = vector.extract_strided_slice %0 {offsets = [5, 0], sizes = [1, 512], strides = [1, 1]} : vector<9x512xf32> to vector<1x512xf32>
    %200 = vector.broadcast %199 : vector<1x512xf32> to vector<8x512xf32>
    %201 = arith.mulf %198, %200 : vector<8x512xf32>
    %202 = arith.truncf %201 : vector<8x512xf32> to vector<8x512xbf16>
    %c497_i32_66 = arith.constant 497 : i32
    %203 = tpu.dynamic_rotate %176 by %c497_i32_66 dim 1 : vector<8x512xf32>, i32 -> vector<8x512xf32>
    %204 = vector.extract_strided_slice %0 {offsets = [6, 0], sizes = [1, 512], strides = [1, 1]} : vector<9x512xf32> to vector<1x512xf32>
    %205 = vector.broadcast %204 : vector<1x512xf32> to vector<8x512xf32>
    %206 = arith.mulf %203, %205 : vector<8x512xf32>
    %207 = arith.truncf %206 : vector<8x512xf32> to vector<8x512xbf16>
    %c496_i32_67 = arith.constant 496 : i32
    %208 = tpu.dynamic_rotate %176 by %c496_i32_67 dim 1 : vector<8x512xf32>, i32 -> vector<8x512xf32>
    %209 = vector.extract_strided_slice %0 {offsets = [7, 0], sizes = [1, 512], strides = [1, 1]} : vector<9x512xf32> to vector<1x512xf32>
    %210 = vector.broadcast %209 : vector<1x512xf32> to vector<8x512xf32>
    %211 = arith.mulf %208, %210 : vector<8x512xf32>
    %212 = arith.truncf %211 : vector<8x512xf32> to vector<8x512xbf16>
    %c495_i32_68 = arith.constant 495 : i32
    %213 = tpu.dynamic_rotate %176 by %c495_i32_68 dim 1 : vector<8x512xf32>, i32 -> vector<8x512xf32>
    %214 = vector.extract_strided_slice %0 {offsets = [8, 0], sizes = [1, 512], strides = [1, 1]} : vector<9x512xf32> to vector<1x512xf32>
    %215 = vector.broadcast %214 : vector<1x512xf32> to vector<8x512xf32>
    %216 = arith.mulf %213, %215 : vector<8x512xf32>
    %217 = arith.truncf %216 : vector<8x512xf32> to vector<8x512xbf16>
    %218 = tpu.concatenate %181, %186, %191, %196, %197, %202, %207, %212, %217 in 0 : vector<8x512xbf16>, vector<8x512xbf16>, vector<8x512xbf16>, vector<8x512xbf16>, vector<8x512xbf16>, vector<8x512xbf16>, vector<8x512xbf16>, vector<8x512xbf16>, vector<8x512xbf16> -> vector<72x512xbf16>
    %cst_69 = arith.constant dense<0.000000e+00> : vector<8x512xf32>
    %219 = tpu.matmul %12, %218, %cst_69 {dimension_numbers = #tpu.dot_dimension_numbers<[1], [0], [0], [1], [0, 0, 1, 1], [], []>} : vector<8x72xbf16>, vector<72x512xbf16>, vector<8x512xf32> -> vector<8x512xf32>
    %220 = vector.broadcast %13 : vector<8x1xf32> to vector<8x512xf32>
    %221 = arith.addf %219, %220 : vector<8x512xf32>
    %cst_70 = arith.constant 0.000000e+00 : f32
    %222 = vector.broadcast %cst_70 : f32 to vector<8x512xf32>
    %223 = arith.maximumf %221, %222 : vector<8x512xf32>
    %c511_i32_71 = arith.constant 511 : i32
    %224 = tpu.dynamic_rotate %223 by %c511_i32_71 dim 1 : vector<8x512xf32>, i32 -> vector<8x512xf32>
    %225 = arith.maximumf %223, %224 : vector<8x512xf32>
    %c496_i32_72 = arith.constant 496 : i32
    %226 = tpu.dynamic_rotate %223 by %c496_i32_72 dim 1 : vector<8x512xf32>, i32 -> vector<8x512xf32>
    %227 = arith.maximumf %225, %226 : vector<8x512xf32>
    %c495_i32_73 = arith.constant 495 : i32
    %228 = tpu.dynamic_rotate %223 by %c495_i32_73 dim 1 : vector<8x512xf32>, i32 -> vector<8x512xf32>
    %229 = arith.maximumf %227, %228 : vector<8x512xf32>
    %230 = arith.truncf %229 : vector<8x512xf32> to vector<8x512xbf16>
    %cst_74 = arith.constant dense<0.000000e+00> : vector<8x128xf32>
    %231 = tpu.matmul %230, %2, %cst_74 {dimension_numbers = #tpu.dot_dimension_numbers<[1], [0], [0], [1], [0, 0, 1, 1], [], []>} : vector<8x512xbf16>, vector<512x128xbf16>, vector<8x128xf32> -> vector<8x128xf32>
    %c9_i32_75 = arith.constant 9 : i32
    %232 = tpu.dynamic_rotate %231 by %c9_i32_75 dim 1 : vector<8x128xf32>, i32 -> vector<8x128xf32>
    %233 = vector.extract_strided_slice %1 {offsets = [0, 0], sizes = [1, 128], strides = [1, 1]} : vector<9x128xf32> to vector<1x128xf32>
    %234 = vector.broadcast %233 : vector<1x128xf32> to vector<8x128xf32>
    %235 = arith.mulf %232, %234 : vector<8x128xf32>
    %236 = arith.truncf %235 : vector<8x128xf32> to vector<8x128xbf16>
    %c8_i32_76 = arith.constant 8 : i32
    %237 = tpu.dynamic_rotate %231 by %c8_i32_76 dim 1 : vector<8x128xf32>, i32 -> vector<8x128xf32>
    %238 = vector.extract_strided_slice %1 {offsets = [1, 0], sizes = [1, 128], strides = [1, 1]} : vector<9x128xf32> to vector<1x128xf32>
    %239 = vector.broadcast %238 : vector<1x128xf32> to vector<8x128xf32>
    %240 = arith.mulf %237, %239 : vector<8x128xf32>
    %241 = arith.truncf %240 : vector<8x128xf32> to vector<8x128xbf16>
    %c7_i32_77 = arith.constant 7 : i32
    %242 = tpu.dynamic_rotate %231 by %c7_i32_77 dim 1 : vector<8x128xf32>, i32 -> vector<8x128xf32>
    %243 = vector.extract_strided_slice %1 {offsets = [2, 0], sizes = [1, 128], strides = [1, 1]} : vector<9x128xf32> to vector<1x128xf32>
    %244 = vector.broadcast %243 : vector<1x128xf32> to vector<8x128xf32>
    %245 = arith.mulf %242, %244 : vector<8x128xf32>
    %246 = arith.truncf %245 : vector<8x128xf32> to vector<8x128xbf16>
    %c1_i32_78 = arith.constant 1 : i32
    %247 = tpu.dynamic_rotate %231 by %c1_i32_78 dim 1 : vector<8x128xf32>, i32 -> vector<8x128xf32>
    %248 = vector.extract_strided_slice %1 {offsets = [3, 0], sizes = [1, 128], strides = [1, 1]} : vector<9x128xf32> to vector<1x128xf32>
    %249 = vector.broadcast %248 : vector<1x128xf32> to vector<8x128xf32>
    %250 = arith.mulf %247, %249 : vector<8x128xf32>
    %251 = arith.truncf %250 : vector<8x128xf32> to vector<8x128xbf16>
    %252 = arith.truncf %231 : vector<8x128xf32> to vector<8x128xbf16>
    %c127_i32_79 = arith.constant 127 : i32
    %253 = tpu.dynamic_rotate %231 by %c127_i32_79 dim 1 : vector<8x128xf32>, i32 -> vector<8x128xf32>
    %254 = vector.extract_strided_slice %1 {offsets = [5, 0], sizes = [1, 128], strides = [1, 1]} : vector<9x128xf32> to vector<1x128xf32>
    %255 = vector.broadcast %254 : vector<1x128xf32> to vector<8x128xf32>
    %256 = arith.mulf %253, %255 : vector<8x128xf32>
    %257 = arith.truncf %256 : vector<8x128xf32> to vector<8x128xbf16>
    %c121_i32_80 = arith.constant 121 : i32
    %258 = tpu.dynamic_rotate %231 by %c121_i32_80 dim 1 : vector<8x128xf32>, i32 -> vector<8x128xf32>
    %259 = vector.extract_strided_slice %1 {offsets = [6, 0], sizes = [1, 128], strides = [1, 1]} : vector<9x128xf32> to vector<1x128xf32>
    %260 = vector.broadcast %259 : vector<1x128xf32> to vector<8x128xf32>
    %261 = arith.mulf %258, %260 : vector<8x128xf32>
    %262 = arith.truncf %261 : vector<8x128xf32> to vector<8x128xbf16>
    %c120_i32_81 = arith.constant 120 : i32
    %263 = tpu.dynamic_rotate %231 by %c120_i32_81 dim 1 : vector<8x128xf32>, i32 -> vector<8x128xf32>
    %264 = vector.extract_strided_slice %1 {offsets = [7, 0], sizes = [1, 128], strides = [1, 1]} : vector<9x128xf32> to vector<1x128xf32>
    %265 = vector.broadcast %264 : vector<1x128xf32> to vector<8x128xf32>
    %266 = arith.mulf %263, %265 : vector<8x128xf32>
    %267 = arith.truncf %266 : vector<8x128xf32> to vector<8x128xbf16>
    %c119_i32_82 = arith.constant 119 : i32
    %268 = tpu.dynamic_rotate %231 by %c119_i32_82 dim 1 : vector<8x128xf32>, i32 -> vector<8x128xf32>
    %269 = vector.extract_strided_slice %1 {offsets = [8, 0], sizes = [1, 128], strides = [1, 1]} : vector<9x128xf32> to vector<1x128xf32>
    %270 = vector.broadcast %269 : vector<1x128xf32> to vector<8x128xf32>
    %271 = arith.mulf %268, %270 : vector<8x128xf32>
    %272 = arith.truncf %271 : vector<8x128xf32> to vector<8x128xbf16>
    %273 = tpu.concatenate %236, %241, %246, %251, %252, %257, %262, %267, %272 in 0 : vector<8x128xbf16>, vector<8x128xbf16>, vector<8x128xbf16>, vector<8x128xbf16>, vector<8x128xbf16>, vector<8x128xbf16>, vector<8x128xbf16>, vector<8x128xbf16>, vector<8x128xbf16> -> vector<72x128xbf16>
    %cst_83 = arith.constant dense<0.000000e+00> : vector<16x128xf32>
    %274 = tpu.matmul %14, %273, %cst_83 {dimension_numbers = #tpu.dot_dimension_numbers<[1], [0], [0], [1], [0, 0, 1, 1], [], []>} : vector<16x72xbf16>, vector<72x128xbf16>, vector<16x128xf32> -> vector<16x128xf32>
    %275 = vector.broadcast %15 : vector<16x1xf32> to vector<16x128xf32>
    %276 = arith.addf %274, %275 : vector<16x128xf32>
    %cst_84 = arith.constant 0.000000e+00 : f32
    %277 = vector.broadcast %cst_84 : f32 to vector<16x128xf32>
    %278 = arith.maximumf %276, %277 : vector<16x128xf32>
    %279 = arith.truncf %278 : vector<16x128xf32> to vector<16x128xbf16>
    %cst_85 = arith.constant dense<0.000000e+00> : vector<16x512xf32>
    %280 = tpu.matmul %279, %3, %cst_85 {dimension_numbers = #tpu.dot_dimension_numbers<[1], [0], [0], [1], [0, 0, 1, 1], [], []>} : vector<16x128xbf16>, vector<128x512xbf16>, vector<16x512xf32> -> vector<16x512xf32>
    %281 = tpu.concatenate %280, %223 in 0 : vector<16x512xf32>, vector<8x512xf32> -> vector<24x512xf32>
    %c17_i32_86 = arith.constant 17 : i32
    %282 = tpu.dynamic_rotate %281 by %c17_i32_86 dim 1 : vector<24x512xf32>, i32 -> vector<24x512xf32>
    %283 = vector.extract_strided_slice %0 {offsets = [0, 0], sizes = [1, 512], strides = [1, 1]} : vector<9x512xf32> to vector<1x512xf32>
    %284 = vector.broadcast %283 : vector<1x512xf32> to vector<24x512xf32>
    %285 = arith.mulf %282, %284 : vector<24x512xf32>
    %286 = arith.truncf %285 : vector<24x512xf32> to vector<24x512xbf16>
    %c16_i32_87 = arith.constant 16 : i32
    %287 = tpu.dynamic_rotate %281 by %c16_i32_87 dim 1 : vector<24x512xf32>, i32 -> vector<24x512xf32>
    %288 = vector.extract_strided_slice %0 {offsets = [1, 0], sizes = [1, 512], strides = [1, 1]} : vector<9x512xf32> to vector<1x512xf32>
    %289 = vector.broadcast %288 : vector<1x512xf32> to vector<24x512xf32>
    %290 = arith.mulf %287, %289 : vector<24x512xf32>
    %291 = arith.truncf %290 : vector<24x512xf32> to vector<24x512xbf16>
    %c15_i32_88 = arith.constant 15 : i32
    %292 = tpu.dynamic_rotate %281 by %c15_i32_88 dim 1 : vector<24x512xf32>, i32 -> vector<24x512xf32>
    %293 = vector.extract_strided_slice %0 {offsets = [2, 0], sizes = [1, 512], strides = [1, 1]} : vector<9x512xf32> to vector<1x512xf32>
    %294 = vector.broadcast %293 : vector<1x512xf32> to vector<24x512xf32>
    %295 = arith.mulf %292, %294 : vector<24x512xf32>
    %296 = arith.truncf %295 : vector<24x512xf32> to vector<24x512xbf16>
    %c1_i32_89 = arith.constant 1 : i32
    %297 = tpu.dynamic_rotate %281 by %c1_i32_89 dim 1 : vector<24x512xf32>, i32 -> vector<24x512xf32>
    %298 = vector.extract_strided_slice %0 {offsets = [3, 0], sizes = [1, 512], strides = [1, 1]} : vector<9x512xf32> to vector<1x512xf32>
    %299 = vector.broadcast %298 : vector<1x512xf32> to vector<24x512xf32>
    %300 = arith.mulf %297, %299 : vector<24x512xf32>
    %301 = arith.truncf %300 : vector<24x512xf32> to vector<24x512xbf16>
    %302 = arith.truncf %281 : vector<24x512xf32> to vector<24x512xbf16>
    %c511_i32_90 = arith.constant 511 : i32
    %303 = tpu.dynamic_rotate %281 by %c511_i32_90 dim 1 : vector<24x512xf32>, i32 -> vector<24x512xf32>
    %304 = vector.extract_strided_slice %0 {offsets = [5, 0], sizes = [1, 512], strides = [1, 1]} : vector<9x512xf32> to vector<1x512xf32>
    %305 = vector.broadcast %304 : vector<1x512xf32> to vector<24x512xf32>
    %306 = arith.mulf %303, %305 : vector<24x512xf32>
    %307 = arith.truncf %306 : vector<24x512xf32> to vector<24x512xbf16>
    %c497_i32_91 = arith.constant 497 : i32
    %308 = tpu.dynamic_rotate %281 by %c497_i32_91 dim 1 : vector<24x512xf32>, i32 -> vector<24x512xf32>
    %309 = vector.extract_strided_slice %0 {offsets = [6, 0], sizes = [1, 512], strides = [1, 1]} : vector<9x512xf32> to vector<1x512xf32>
    %310 = vector.broadcast %309 : vector<1x512xf32> to vector<24x512xf32>
    %311 = arith.mulf %308, %310 : vector<24x512xf32>
    %312 = arith.truncf %311 : vector<24x512xf32> to vector<24x512xbf16>
    %c496_i32_92 = arith.constant 496 : i32
    %313 = tpu.dynamic_rotate %281 by %c496_i32_92 dim 1 : vector<24x512xf32>, i32 -> vector<24x512xf32>
    %314 = vector.extract_strided_slice %0 {offsets = [7, 0], sizes = [1, 512], strides = [1, 1]} : vector<9x512xf32> to vector<1x512xf32>
    %315 = vector.broadcast %314 : vector<1x512xf32> to vector<24x512xf32>
    %316 = arith.mulf %313, %315 : vector<24x512xf32>
    %317 = arith.truncf %316 : vector<24x512xf32> to vector<24x512xbf16>
    %c495_i32_93 = arith.constant 495 : i32
    %318 = tpu.dynamic_rotate %281 by %c495_i32_93 dim 1 : vector<24x512xf32>, i32 -> vector<24x512xf32>
    %319 = vector.extract_strided_slice %0 {offsets = [8, 0], sizes = [1, 512], strides = [1, 1]} : vector<9x512xf32> to vector<1x512xf32>
    %320 = vector.broadcast %319 : vector<1x512xf32> to vector<24x512xf32>
    %321 = arith.mulf %318, %320 : vector<24x512xf32>
    %322 = arith.truncf %321 : vector<24x512xf32> to vector<24x512xbf16>
    %323 = tpu.concatenate %286, %291, %296, %301, %302, %307, %312, %317, %322 in 0 : vector<24x512xbf16>, vector<24x512xbf16>, vector<24x512xbf16>, vector<24x512xbf16>, vector<24x512xbf16>, vector<24x512xbf16>, vector<24x512xbf16>, vector<24x512xbf16>, vector<24x512xbf16> -> vector<216x512xbf16>
    %cst_94 = arith.constant dense<0.000000e+00> : vector<8x512xf32>
    %324 = tpu.matmul %16, %323, %cst_94 {dimension_numbers = #tpu.dot_dimension_numbers<[1], [0], [0], [1], [0, 0, 1, 1], [], []>} : vector<8x216xbf16>, vector<216x512xbf16>, vector<8x512xf32> -> vector<8x512xf32>
    %325 = vector.broadcast %17 : vector<8x1xf32> to vector<8x512xf32>
    %326 = arith.addf %324, %325 : vector<8x512xf32>
    %cst_95 = arith.constant 0.000000e+00 : f32
    %327 = vector.broadcast %cst_95 : f32 to vector<8x512xf32>
    %328 = arith.maximumf %326, %327 : vector<8x512xf32>
    %329 = arith.truncf %328 : vector<8x512xf32> to vector<8x512xbf16>
    %cst_96 = arith.constant dense<0.000000e+00> : vector<8x512xf32>
    %330 = tpu.matmul %18, %329, %cst_96 {dimension_numbers = #tpu.dot_dimension_numbers<[1], [0], [0], [1], [0, 0, 1, 1], [], []>} : vector<8x8xbf16>, vector<8x512xbf16>, vector<8x512xf32> -> vector<8x512xf32>
    %331 = vector.broadcast %19 : vector<8x1xf32> to vector<8x512xf32>
    %332 = arith.addf %330, %331 : vector<8x512xf32>
    %c0_97 = arith.constant 0 : index
    %c0_98 = arith.constant 0 : index
    %333 = vector.load %arg21[%c0_97, %c0_98] : memref<8x512xf32, #tpu.memory_space<vmem>>, vector<8x512xf32>
    tpu.vector_store %arg21[%c0_97, %c0_98], %332 {strides = array<i32>} : memref<8x512xf32, #tpu.memory_space<vmem>>, vector<8x512xf32>,
    return
  }
}

</mosaic_0001>

<bundles_post_ra>
// kernel: tile.19
= control target key start
LH: loop header
LB: loop body
LE: loop exit
PB: predicated region body
PF: predicated region fallthrough
CT: control target
= control target key end

     0   :  { %vm47_vm0 = vcmask 1047556   ;;  %vm49_vm1 = vcmask 523264   ;;  %vm64_vm2 = vcmask 1048064   ;;  %s141_s0 = inlined_call_operand.vmem [shape: f32[9,2,64], index: 0, kind: input, shape index: {}]   ;;  %s142_s1 = inlined_call_operand.vmem [shape: f32[9,128], index: 1, kind: output, shape index: {}]  }
   0x1   :  { %v81_v0 = vld [vmem:[%s141_s0 + $0xe] sm:$0x3]  ;;  %v82_v1 = vld [vmem:[%s141_s0 + $0xc] sm:$0x3]  ;;  %v83_v2 = vld [vmem:[%s141_s0 + $0xa] sm:$0x3] }
   0x2   :  { %13 = vst [vmem:[#allocation0 + $0x38] sm:$0x3] %v81_v0  ;;  %18 = vst [vmem:[#allocation0 + $0x30] sm:$0x3] %v82_v1  ;;  %v84_v3 = vld [vmem:[%s141_s0 + $0x8] sm:$0x3] }
   0x3   :  { %23 = vst [vmem:[#allocation0 + $0x28] sm:$0x3] %v83_v2  ;;  %v85_v4 = vld [vmem:[%s141_s0 + $0x6] sm:$0x3]  ;;  %v86_v5 = vld [vmem:[%s141_s0 + $0x4] sm:$0x3] }
   0x4   :  { %28 = vst [vmem:[#allocation0 + $0x20] sm:$0x3] %v84_v3  ;;  %33 = vst [vmem:[#allocation0 + $0x18] sm:$0x3] %v85_v4  ;;  %v87_v6 = vld [vmem:[%s141_s0 + $0x2] sm:$0x3] }
   0x5   :  { %38 = vst [vmem:[#allocation0 + $0x10] sm:$0x3] %v86_v5  ;;  %v43_v7 = vld [vmem:[%s141_s0] sm:$0x3]  ;;  %42 = vst [vmem:[#allocation0 + $0x8] sm:$0x3] %v87_v6 }
   0x6   :  { %44 = vst [vmem:[#allocation0] sm:$0x3] %v43_v7  ;;  %v80_v8 = vld [vmem:[%s141_s0 + $0x10] sm:$0x3]  ;;  %s91_s0 = smov 64  }
   0x7   :  { %8 = vst [vmem:[#allocation0 + $0x40] sm:$0x3] %v80_v8 }
   0xb   :  { %v59_v9 = vld [vmem:[#allocation0 + $0x1] ss:$8 sm:$0xf0]   ;;  %v46_v10 = vld [vmem:[#allocation0] ss:$8 sm:$0xf0]  }
   0xd   :  { %v45_v11 = vld [vmem:[#allocation0] ss:$8 sm:$0xf]   ;;  %v57_v12 = vld [vmem:[#allocation0 + $0x1] ss:$8 sm:$0xf]  }
   0xe   :  { %v61_v13 = vsel %vm47_vm0, %v59_v9, %v57_v12  ;;  %v48_v14 = vsel %vm47_vm0, %v46_v10, %v45_v11  ;;  %v52_v15 = vld [vmem:[#allocation0 + $0x40] sm:$0x1]   ;;  %v67_v16 = vld [vmem:[#allocation0 + $0x41] sm:$0x1]  }
   0xf   :  { %62 = vrot.lane.b32.xlu0 %v61_v13, %s91_s0  ;;  %50 = vst.msk [vmem:[%s142_s1] sm:$0xff] %vm49_vm1, %v48_v14   ;;  %88 = vst.msk [vmem:[%s142_s1 + $0x8] sm:$0x1] %vm49_vm1, %v52_v15  }
  0x13   :  { %68 = vrot.lane.b32.xlu0 %v67_v16, %s91_s0 }
  0x81   :  { %v63_v17 = vpop.permute.xlu0 %62  }
  0x82   :  { %65 = vst.msk [vmem:[%s142_s1] sm:$0xff] %vm64_vm2, %v63_v17  }
  0x85   :  { %v69_v18 = vpop.permute.xlu0 %68  }
  0x86   :  { %89 = vst.msk [vmem:[%s142_s1 + $0x8] sm:$0x1] %vm64_vm2, %v69_v18  }

// kernel: fine_tuning_unet_forward.1
= control target key start
LH: loop header
LB: loop body
LE: loop exit
PB: predicated region body
PF: predicated region fallthrough
CT: control target
= control target key end

     0   :  { %s7407_s28 = smov 16   ;;  %s7411_s22 = smov 1   ;;  %v7413_v4 = vmov 0   ;;  %v207_v6 = vlaneseq  ;;  %vm533_vm2 = vcmask 1043456   ;;  %vm603_vm9 = vcmask 588800   ;;  %s7377_s0 = inlined_call_operand.vmem [shape: f32[8,512], index: 0, kind: input, shape index: {}]   ;;  %s7378_s6 = inlined_call_operand.vmem [shape: f32[8,1], index: 6, kind: input, shape index: {}]   ;;  %s7379_s1 = inlined_call_operand.vmem [shape: f32[9,512], index: 1, kind: input, shape index: {}]   ;;  %s7380_s5 = inlined_call_operand.vmem [shape: bf16[8,72], index: 5, kind: input, shape index: {}]   ;;  %s7381_s3 = inlined_call_operand.vmem [shape: bf16[512,128], index: 3, kind: input, shape index: {}]   ;;  %s7382_s8 = inlined_call_operand.vmem [shape: f32[16,1], index: 8, kind: input, shape index: {}]   ;;  %s7383_s7 = inlined_call_operand.vmem [shape: bf16[16,72], index: 7, kind: input, shape index: {}]   ;;  %s7384_s4 = inlined_call_operand.vmem [shape: bf16[128,512], index: 4, kind: input, shape index: {}]   ;;  %s7385_s2 = inlined_call_operand.vmem [shape: f32[9,128], index: 2, kind: input, shape index: {}]   ;;  %s7386_s9 = inlined_call_operand.vmem [shape: bf16[8,216], index: 9, kind: input, shape index: {}]   ;;  %s7387_s10 = inlined_call_operand.vmem [shape: f32[8,1], index: 10, kind: input, shape index: {}]   ;;  %s7388_s12 = inlined_call_operand.vmem [shape: f32[8,1], index: 12, kind: input, shape index: {}]   ;;  %s7389_s11 = inlined_call_operand.vmem [shape: bf16[8,8], index: 11, kind: input, shape index: {}]   ;;  %s7390_s14 = inlined_call_operand.vmem [shape: f32[8,1], index: 14, kind: input, shape index: {}]   ;;  %s7391_s13 = inlined_call_operand.vmem [shape: bf16[8,72], index: 13, kind: input, shape index: {}]   ;;  %s7392_s16 = inlined_call_operand.vmem [shape: f32[16,1], index: 16, kind: input, shape index: {}]   ;;  %s7393_s15 = inlined_call_operand.vmem [shape: bf16[16,72], index: 15, kind: input, shape index: {}]   ;;  %s7394_s17 = inlined_call_operand.vmem [shape: bf16[8,216], index: 17, kind: input, shape index: {}]   ;;  %s7395_s18 = inlined_call_operand.vmem [shape: f32[8,1], index: 18, kind: input, shape index: {}]   ;;  %s7396_s20 = inlined_call_operand.vmem [shape: f32[8,1], index: 20, kind: input, shape index: {}]   ;;  %s7397_s19 = inlined_call_operand.vmem [shape: bf16[8,8], index: 19, kind: input, shape index: {}]   ;;  %s7398_s21 = inlined_call_operand.vmem [shape: f32[8,512], index: 21, kind: output, shape index: {}]  }
   0x1   :  { %7570 = sst [smem:[#allocation68_spill]] %s7377_s0  ;;  %s7405_s23 = smov 15   ;;  %651 = vmatprep.mubr.bf16.mxu0 %v7413_v4  ;;  %692 = vmatprep.mubr.bf16.mxu1 %v7413_v4  ;;  %vm4163_vm10 = vmmov 0   ;;  %vm2021_vm11 = vcmask 719872   ;;  %vm2132_vm12 = vcmask 64512  }
   0x2   :  { %7571 = sst [smem:[#allocation69_spill]] %s7378_s6  ;;  %s7577_s26 = sld [smem:[#allocation68_spill]]  ;;  %3988 = vset.pattern.permute.xlu0 %v7413_v4  ;;  %3989 = vset.pattern.permute.xlu1 %v7413_v4  ;;  %v4367_v7 = vshrl.u32 %v207_v6, 7  ;;  %v4369_v8 = vand.u32 127, %v207_v6 }
   0x3   :  { %7572 = sst [smem:[#allocation70_spill]] %s7379_s1  ;;  %s7433_s6 = smov 127  }
   0x4   :  { %7573 = sst [smem:[#allocation71_spill]] %s7380_s5  ;;  %s7431_s24 = smov 112   ;;  %v4372_v9 = vsub.s32 1, %v4367_v7  ;;  %vm246_vm0 = vcmp.lt.s32.totalorder %v4369_v8, 16  ;;  %v4400_v17 = vsub.s32 0, %v4367_v7  ;;  %vm209_vm1 = vcmp.lt.s32.totalorder %v4369_v8, 17 }
   0x5   :  { %7574 = sst [smem:[#allocation72_spill]] %s7381_s3  ;;  %s7403_s1 = smov 113   ;;  %v4447_v41 = vsub.s32 3, %v4367_v7  ;;  %vm320_vm3 = vcmp.lt.s32.totalorder %v4369_v8, 1  ;;  %vm283_vm4 = vcmp.lt.s32.totalorder %v4369_v8, 15  ;;  %vm361_vm5 = vcmp.lt.s32.totalorder %v4369_v8, 127 }
   0x6   :  { %7575 = sst [smem:[#allocation73_spill]] %s7382_s8  ;;  %s7409_s8 = smov 17   ;;  %vm435_vm6 = vcmp.lt.s32.totalorder %v4369_v8, 112  ;;  %vm398_vm7 = vcmp.lt.s32.totalorder %v4369_v8, 113  ;;  %vm472_vm8 = vcmp.lt.s32.totalorder %v4369_v8, 111 }
   0x7   :  { %7576 = sst [smem:[#allocation74_spill]] %s7398_s21  ;;  %s7429_s25 = smov 111  }
   0x8   :  { %v4279_v0 = vld [vmem:[%s7577_s26 + $0x10] sm:$0xff]  ;;  %v4284_v1 = vld [vmem:[%s7577_s26] sm:$0xff]  ;;  %v4293_v2 = vld [vmem:[%s7577_s26 + $0x18] sm:$0xff]  ;;  %s7578_s5 = sld [smem:[#allocation69_spill]]  ;;  %s7579_s3 = sld [smem:[#allocation70_spill]] }
   0x9   :  { %242 = vrot.lane.b32.xlu1 %v4279_v0, %s7407_s28  ;;  %238 = vrot.lane.b32.xlu0 %v4284_v1, %s7407_s28  ;;  %v4298_v3 = vld [vmem:[%s7577_s26 + $0x8] sm:$0xff]  ;;  %s7604_s29 = sld [smem:[#allocation71_spill]]  ;;  %s7605_s26 = sld [smem:[#allocation72_spill]] }
   0xa   :  { %s7427_s0 = smov 121   ;;  %s7638_s21 = smov 112  }
   0xb   :  { %s7749_s30 = smov 8   ;;  %s7751_s27 = smov 120  }
   0xd   :  { %244 = vrot.lane.b32.xlu1 %v4293_v2, %s7407_s28  ;;  %240 = vrot.lane.b32.xlu0 %v4298_v3, %s7407_s28  ;;  %s7428_s28 = smov 9  }
   0xe   :  { %v176_v5 = vld [vmem:[%s7578_s5] sm:$0xff]  ;;  %v4377_v10 = vld [vmem:[%s7579_s3 + $0x8] sm:$0xff]  ;;  %v4387_v14 = vld [vmem:[%s7579_s3 + $0x18] sm:$0xff]  ;;  %s7616_s5 = sld [smem:[#allocation73_spill]] }
   0xf   :  { %v4382_v13 = vld [vmem:[%s7579_s3] sm:$0xff]  ;;  %v4392_v15 = vld [vmem:[%s7579_s3 + $0x10] sm:$0xff]  ;;  %v4397_v16 = vrot.slane %v4377_v10, %v4372_v9  ;;  %v4408_v19 = vrot.slane %v4387_v14, %v4372_v9  ;;  %v4426_v28 = vrot.slane %v4377_v10, %v4400_v17  ;;  %v4444_v39 = vrot.slane %v4387_v14, %v4400_v17 }
  0x10   :  { %v4404_v18 = vrot.slane %v4382_v13, %v4372_v9  ;;  %v4412_v21 = vrot.slane %v4392_v15, %v4372_v9  ;;  %v4436_v37 = vrot.slane %v4382_v13, %v4400_v17  ;;  %v4440_v38 = vrot.slane %v4392_v15, %v4400_v17 }
  0x11   :  { %201 = vrot.lane.b32.xlu1 %v4298_v3, %s7409_s8  ;;  %199 = vrot.lane.b32.xlu0 %v4284_v1, %s7409_s8  ;;  %7581 = vst [vmem:[#allocation3_spill] sm:$0xff] %v4408_v19  ;;  %7582 = vst [vmem:[#allocation4_spill] sm:$0xff] %v4426_v28  ;;  %v4462_v55 = vrot.slane %v4377_v10, %v4447_v41 }
  0x12   :  { %7580 = vst [vmem:[#allocation2_spill] sm:$0xff] %v4404_v18  ;;  %7583 = vst [vmem:[#allocation5_spill] sm:$0xff] %v4436_v37 }
  0x13   :  { %7584 = vst [vmem:[#allocation6_spill] sm:$0xff] %v4440_v38  ;;  %7585 = vst [vmem:[#allocation7_spill] sm:$0xff] %v4444_v39 }
  0x14   :  { %7586 = vst [vmem:[#allocation8_spill] sm:$0xff] %v4462_v55 }
  0x15   :  { %205 = vrot.lane.b32.xlu1 %v4293_v2, %s7409_s8  ;;  %203 = vrot.lane.b32.xlu0 %v4279_v0, %s7409_s8  ;;  %s7425_s8 = smov 8  }
  0x19   :  { %314 = vrot.lane.b32.xlu1 %v4298_v3, %s7411_s22  ;;  %312 = vrot.lane.b32.xlu0 %v4284_v1, %s7411_s22 }
  0x1d   :  { %318 = vrot.lane.b32.xlu1 %v4293_v2, %s7411_s22  ;;  %316 = vrot.lane.b32.xlu0 %v4279_v0, %s7411_s22  ;;  %s7423_s22 = smov 120  }
  0x21   :  { %277 = vrot.lane.b32.xlu1 %v4298_v3, %s7405_s23  ;;  %275 = vrot.lane.b32.xlu0 %v4284_v1, %s7405_s23 }
  0x25   :  { %281 = vrot.lane.b32.xlu1 %v4293_v2, %s7405_s23  ;;  %279 = vrot.lane.b32.xlu0 %v4279_v0, %s7405_s23  ;;  %s7424_s23 = smov 7  }
  0x29   :  { %355 = vrot.lane.b32.xlu1 %v4298_v3, %s7433_s6  ;;  %353 = vrot.lane.b32.xlu0 %v4284_v1, %s7433_s6 }
  0x2d   :  { %359 = vrot.lane.b32.xlu1 %v4293_v2, %s7433_s6  ;;  %357 = vrot.lane.b32.xlu0 %v4279_v0, %s7433_s6 }
  0x31   :  { %429 = vrot.lane.b32.xlu1 %v4298_v3, %s7431_s24  ;;  %427 = vrot.lane.b32.xlu0 %v4284_v1, %s7431_s24 }
  0x35   :  { %433 = vrot.lane.b32.xlu1 %v4293_v2, %s7431_s24  ;;  %431 = vrot.lane.b32.xlu0 %v4279_v0, %s7431_s24 }
  0x39   :  { %392 = vrot.lane.b32.xlu1 %v4298_v3, %s7403_s1  ;;  %390 = vrot.lane.b32.xlu0 %v4284_v1, %s7403_s1 }
  0x3d   :  { %396 = vrot.lane.b32.xlu1 %v4293_v2, %s7403_s1  ;;  %394 = vrot.lane.b32.xlu0 %v4279_v0, %s7403_s1  ;;  %s7615_s1 = smov 1  }
  0x41   :  { %466 = vrot.lane.b32.xlu1 %v4298_v3, %s7429_s25  ;;  %464 = vrot.lane.b32.xlu0 %v4284_v1, %s7429_s25 }
  0x45   :  { %470 = vrot.lane.b32.xlu1 %v4293_v2, %s7429_s25  ;;  %468 = vrot.lane.b32.xlu0 %v4279_v0, %s7429_s25 }
  0x49   :  { %600 = vperm.xlu0 %3988, %v176_v5  }
  0x7b   :  { %v243_v11 = vpop.permute.xlu1 %242  ;;  %v239_v12 = vpop.permute.xlu0 %238 }
  0x7f   :  { %v245_v20 = vpop.permute.xlu1 %244  ;;  %v241_v22 = vpop.permute.xlu0 %240 }
  0x80   :  { %v247_v23 = vsel %vm246_vm0, %v243_v11, %v245_v20  ;;  %v250_v24 = vsel %vm246_vm0, %v245_v20, %v239_v12  ;;  %v248_v25 = vsel %vm246_vm0, %v241_v22, %v243_v11  ;;  %v249_v26 = vsel %vm246_vm0, %v239_v12, %v241_v22 }
  0x81   :  { %v268_v27 = vmul.f32 %v4397_v16, %v249_v26  ;;  %v267_v29 = vmul.f32 %v4404_v18, %v250_v24  ;;  %v270_v30 = vmul.f32 %v4408_v19, %v247_v23  ;;  %v269_v31 = vmul.f32 %v4412_v21, %v248_v25 }
  0x82   :  { %v4470_v20 = vsub.s32 2, %v4367_v7  ;;  %v4474_v22 = vrot.slane %v4382_v13, %v4447_v41  ;;  %v4478_v23 = vrot.slane %v4392_v15, %v4447_v41  ;;  %v4483_v26 = vrot.slane %v4387_v14, %v4447_v41 }
  0x83   :  { %v202_v32 = vpop.permute.xlu1 %201  ;;  %v200_v33 = vpop.permute.xlu0 %199  ;;  %v272_v34 = vpack.c.bf16 %v268_v27, %v268_v27  ;;  %v271_v40 = vpack.c.bf16 %v267_v29, %v267_v29  ;;  %v274_v42 = vpack.c.bf16 %v270_v30, %v270_v30  ;;  %v273_v43 = vpack.c.bf16 %v269_v31, %v269_v31 }
  0x84   :  { %v212_v35 = vsel %vm209_vm1, %v200_v33, %v202_v32  ;;  %7587 = vst [vmem:[#allocation9_spill] sm:$0xff] %v4478_v23  ;;  %7588 = vst [vmem:[#allocation10_spill] sm:$0xff] %v4483_v26 }
  0x85   :  { %v231_v36 = vmul.f32 %v4426_v28, %v212_v35  ;;  %v506_v47 = vrot.slane %v272_v34, 4  ;;  %v505_v56 = vrot.slane %v271_v40, 4  ;;  %v508_v57 = vrot.slane %v274_v42, 4 }
  0x86   :  { %v507_v63 = vrot.slane %v273_v43, 4 }
  0x87   :  { %v206_v44 = vpop.permute.xlu1 %205  ;;  %v204_v45 = vpop.permute.xlu0 %203  ;;  %v235_v46 = vpack.c.bf16 %v231_v36, %v231_v36 }
  0x88   :  { %v213_v48 = vsel %vm209_vm1, %v206_v44, %v200_v33  ;;  %v210_v49 = vsel %vm209_vm1, %v204_v45, %v206_v44  ;;  %v211_v50 = vsel %vm209_vm1, %v202_v32, %v204_v45  ;;  %v4494_v32 = vrot.slane %v4377_v10, %v4470_v20 }
  0x89   :  { %v230_v51 = vmul.f32 %v4436_v37, %v213_v48  ;;  %v232_v52 = vmul.f32 %v4440_v38, %v211_v50  ;;  %v233_v53 = vmul.f32 %v4444_v39, %v210_v49  ;;  %v540_v54 = vsel %vm533_vm2, %v235_v46, %v506_v47 }
  0x8a   :  { %619 = vmatprep.subr.bf16.mxu0 %v540_v54  ;;  %7589 = vst [vmem:[#allocation11_spill] sm:$0xff] %v4494_v32  ;;  %v4502_v44 = vsub.s32 5, %v4367_v7  ;;  %v4507_v46 = vrot.slane %v4382_v13, %v4470_v20  ;;  %v4511_v47 = vrot.slane %v4392_v15, %v4470_v20  ;;  %v4515_v48 = vrot.slane %v4387_v14, %v4470_v20 }
  0x8b   :  { %v315_v58 = vpop.permute.xlu1 %314  ;;  %v313_v59 = vpop.permute.xlu0 %312  ;;  %v234_v60 = vpack.c.bf16 %v230_v51, %v230_v51  ;;  %v237_v61 = vpack.c.bf16 %v233_v53, %v233_v53  ;;  %v236_v62 = vpack.c.bf16 %v232_v52, %v232_v52 }
  0x8c   :  { %v323_v5 = vsel %vm320_vm3, %v313_v59, %v315_v58  ;;  %7590 = vst [vmem:[#allocation12_spill] sm:$0xff] %v4507_v46  ;;  %7591 = vst [vmem:[#allocation13_spill] sm:$0xff] %v4511_v47 }
  0x8d   :  { %v536_v6 = vsel %vm533_vm2, %v234_v60, %v505_v56  ;;  %v548_v11 = vsel %vm533_vm2, %v237_v61, %v508_v57  ;;  %v544_v12 = vsel %vm533_vm2, %v236_v62, %v507_v63  ;;  %v342_v24 = vmul.f32 %v4462_v55, %v323_v5  ;;  %7592 = vst [vmem:[#allocation14_spill] sm:$0xff] %v4515_v48 }
  0x8e   :  { %620 = vmatpush1.bf16.msra.mxu0 %v536_v6  ;;  %660 = vmatprep.subr.bf16.mxu1 %v548_v11  ;;  %v4526_v60 = vrot.slane %v4382_v13, %v4502_v44 }
  0x8f   :  { %v319_v25 = vpop.permute.xlu1 %318  ;;  %661 = vmatpush1.bf16.msra.mxu1 %v544_v12  ;;  %v317_v27 = vpop.permute.xlu0 %316  ;;  %v346_v35 = vpack.c.bf16 %v342_v24, %v342_v24 }
  0x90   :  { %v324_v29 = vsel %vm320_vm3, %v319_v25, %v313_v59  ;;  %v321_v30 = vsel %vm320_vm3, %v317_v27, %v319_v25  ;;  %v322_v31 = vsel %vm320_vm3, %v315_v58, %v317_v27 }
  0x91   :  { %v341_v33 = vmul.f32 %v4474_v22, %v324_v29  ;;  %v343_v34 = vmul.f32 %v4478_v23, %v322_v31  ;;  %v344_v36 = vmul.f32 %v4483_v26, %v321_v30  ;;  %v514_v51 = vrot.slane %v346_v35, 4 }
  0x92   :  { %v4544_v35 = vrot.slane %v4392_v15, %v4502_v44 }
  0x93   :  { %v278_v40 = vpop.permute.xlu1 %277  ;;  %v276_v42 = vpop.permute.xlu0 %275  ;;  %v345_v49 = vpack.c.bf16 %v341_v33, %v341_v33  ;;  %v347_v50 = vpack.c.bf16 %v343_v34, %v343_v34  ;;  %v348_v52 = vpack.c.bf16 %v344_v36, %v344_v36  ;;  %v4536_v33 = vrot.slane %v4387_v14, %v4502_v44 }
  0x94   :  { %v286_v43 = vsel %vm283_vm4, %v276_v42, %v278_v40  ;;  %v4540_v34 = vrot.slane %v4377_v10, %v4502_v44  ;;  %7595 = vst [vmem:[#allocation17_spill] sm:$0xff] %v4544_v35 }
  0x95   :  { %v305_v45 = vmul.f32 %v4494_v32, %v286_v43  ;;  %v513_v6 = vrot.slane %v345_v49, 4  ;;  %v515_v11 = vrot.slane %v347_v50, 4  ;;  %v516_v12 = vrot.slane %v348_v52, 4  ;;  %7593 = vst [vmem:[#allocation15_spill] sm:$0xff] %v4536_v33 }
  0x96   :  { %7594 = vst [vmem:[#allocation16_spill] sm:$0xff] %v4540_v34 }
  0x97   :  { %v309_v53 = vpack.c.bf16 %v305_v45, %v305_v45  ;;  %v282_v54 = vpop.permute.xlu1 %281  ;;  %v280_v56 = vpop.permute.xlu0 %279 }
  0x98   :  { %v287_v57 = vsel %vm283_vm4, %v282_v54, %v276_v42  ;;  %v284_v58 = vsel %vm283_vm4, %v280_v56, %v282_v54  ;;  %v285_v59 = vsel %vm283_vm4, %v278_v40, %v280_v56 }
  0x99   :  { %v304_v61 = vmul.f32 %v4507_v46, %v287_v57  ;;  %v306_v62 = vmul.f32 %v4511_v47, %v285_v59  ;;  %v307_v63 = vmul.f32 %v4515_v48, %v284_v58  ;;  %v556_v5 = vsel %vm533_vm2, %v309_v53, %v514_v51 }
  0x9a   :  { %621 = vmatprep.subr.bf16.mxu0 %v556_v5  ;;  %v4560_v58 = vsub.s32 7, %v4367_v7  ;;  %v350_v59 = vpack.c.bf16 %v4298_v3, %v4298_v3 }
  0x9b   :  { %v308_v24 = vpack.c.bf16 %v304_v61, %v304_v61  ;;  %v310_v25 = vpack.c.bf16 %v306_v62, %v306_v62  ;;  %v311_v27 = vpack.c.bf16 %v307_v63, %v307_v63  ;;  %v356_v29 = vpop.permute.xlu1 %355  ;;  %v354_v30 = vpop.permute.xlu0 %353  ;;  %v352_v61 = vpack.c.bf16 %v4293_v2, %v4293_v2 }
  0x9c   :  { %v364_v31 = vsel %vm361_vm5, %v354_v30, %v356_v29  ;;  %v349_v62 = vpack.c.bf16 %v4284_v1, %v4284_v1  ;;  %v351_v63 = vpack.c.bf16 %v4279_v0, %v4279_v0  ;;  %v4573_v2 = vrot.slane %v4382_v13, %v4560_v58 }
  0x9d   :  { %v382_v36 = vmul.f32 %v4526_v60, %v364_v31  ;;  %v552_v40 = vsel %vm533_vm2, %v308_v24, %v513_v6  ;;  %v564_v42 = vsel %vm533_vm2, %v311_v27, %v516_v12  ;;  %v560_v43 = vsel %vm533_vm2, %v310_v25, %v515_v11 }
  0x9e   :  { %622 = vmatpush1.bf16.msra.mxu0 %v552_v40  ;;  %662 = vmatprep.subr.bf16.mxu1 %v564_v42  ;;  %7596 = vst [vmem:[#allocation18_spill] sm:$0xff] %v4573_v2  ;;  %v4577_v1 = vrot.slane %v4387_v14, %v4560_v58  ;;  %v4581_v0 = vrot.slane %v4377_v10, %v4560_v58  ;;  %v4588_v31 = vsub.s32 6, %v4367_v7 }
  0x9f   :  { %v386_v45 = vpack.c.bf16 %v382_v36, %v382_v36  ;;  %v360_v49 = vpop.permute.xlu1 %359  ;;  %663 = vmatpush1.bf16.msra.mxu1 %v560_v43  ;;  %v358_v50 = vpop.permute.xlu0 %357 }
  0xa0   :  { %v365_v51 = vsel %vm361_vm5, %v360_v49, %v354_v30  ;;  %v362_v52 = vsel %vm361_vm5, %v358_v50, %v360_v49  ;;  %v363_v53 = vsel %vm361_vm5, %v356_v29, %v358_v50  ;;  %7597 = vst [vmem:[#allocation19_spill] sm:$0xff] %v4577_v1  ;;  %7598 = vst [vmem:[#allocation20_spill] sm:$0xff] %v4581_v0 }
  0xa1   :  { %v385_v54 = vmul.f32 %v4536_v33, %v365_v51  ;;  %v383_v56 = vmul.f32 %v4540_v34, %v363_v53  ;;  %v384_v57 = vmul.f32 %v4544_v35, %v362_v52  ;;  %v521_v5 = vrot.slane %v386_v45, 4 }
  0xa2   :  { %v4585_v30 = vrot.slane %v4392_v15, %v4560_v58 }
  0xa3   :  { %v389_v6 = vpack.c.bf16 %v385_v54, %v385_v54  ;;  %v387_v11 = vpack.c.bf16 %v383_v56, %v383_v56  ;;  %v388_v12 = vpack.c.bf16 %v384_v57, %v384_v57  ;;  %v430_v24 = vpop.permute.xlu1 %429  ;;  %v428_v25 = vpop.permute.xlu0 %427  ;;  %v568_v45 = vsel %vm533_vm2, %v349_v62, %v521_v5 }
  0xa4   :  { %7599 = vst [vmem:[#allocation21_spill] sm:$0xff] %v4585_v30  ;;  %v438_v52 = vsel %vm435_vm6, %v428_v25, %v430_v24  ;;  %v4607_v56 = vrot.slane %v4382_v13, %v4588_v31  ;;  %v4615_v5 = vrot.slane %v4387_v14, %v4588_v31  ;;  %v4623_v13 = vrot.slane %v4392_v15, %v4588_v31 }
  0xa5   :  { %v524_v27 = vrot.slane %v389_v6, 4  ;;  %v522_v29 = vrot.slane %v387_v11, 4  ;;  %v523_v3 = vrot.slane %v388_v12, 4  ;;  %v456_v62 = vmul.f32 %v4573_v2, %v438_v52 }
  0xa6   :  { %7600 = vst [vmem:[#allocation22_spill] sm:$0xff] %v4607_v56  ;;  %7601 = vst [vmem:[#allocation23_spill] sm:$0xff] %v4615_v5  ;;  %v4619_v6 = vrot.slane %v4377_v10, %v4588_v31 }
  0xa7   :  { %v434_v36 = vpop.permute.xlu1 %433  ;;  %v432_v40 = vpop.permute.xlu0 %431  ;;  %v572_v42 = vsel %vm533_vm2, %v350_v59, %v522_v29  ;;  %v580_v43 = vsel %vm533_vm2, %v352_v61, %v524_v27  ;;  %v576_v49 = vsel %vm533_vm2, %v351_v63, %v523_v3  ;;  %7603 = vst [vmem:[#allocation25_spill] sm:$0xff] %v4623_v13  ;;  %v460_v3 = vpack.c.bf16 %v456_v62, %v456_v62 }
  0xa8   :  { %v439_v50 = vsel %vm435_vm6, %v434_v36, %v428_v25  ;;  %v436_v51 = vsel %vm435_vm6, %v432_v40, %v434_v36  ;;  %v437_v7 = vsel %vm435_vm6, %v430_v24, %v432_v40  ;;  %623 = vmatprep.subr.bf16.mxu0 %v572_v42  ;;  %664 = vmatprep.subr.bf16.mxu1 %v580_v43 }
  0xa9   :  { %624 = vmatpush1.bf16.msra.mxu0 %v568_v45  ;;  %665 = vmatpush1.bf16.msra.mxu1 %v576_v49  ;;  %v459_v53 = vmul.f32 %v4577_v1, %v439_v50  ;;  %v457_v54 = vmul.f32 %v4581_v0, %v437_v7  ;;  %v458_v57 = vmul.f32 %v4585_v30, %v436_v51  ;;  %v3742_v50 = vld [vmem:[%s7579_s3 + $0x20] ss:$0 sm:$0xff] }
  0xaa   :  { %7602 = vst [vmem:[#allocation24_spill] sm:$0xff] %v4619_v6  ;;  %v5264_v1 = vld [vmem:[%s7386_s9] sm:$0xff]  ;;  %s7750_s9 = smov 7  }
  0xab   :  { %v393_v59 = vpop.permute.xlu1 %392  ;;  %v391_v61 = vpop.permute.xlu0 %390  ;;  %v463_v11 = vpack.c.bf16 %v459_v53, %v459_v53  ;;  %v461_v12 = vpack.c.bf16 %v457_v54, %v457_v54  ;;  %v462_v25 = vpack.c.bf16 %v458_v57, %v458_v57  ;;  %7644 = vst [vmem:[#allocation53_spill] sm:$0xff] %v5264_v1 }
  0xac   :  { %v401_v63 = vsel %vm398_vm7, %v391_v61, %v393_v59 }
  0xad   :  { %v419_v24 = vmul.f32 %v4607_v56, %v401_v63  ;;  %v532_v43 = vrot.slane %v463_v11, 4  ;;  %v530_v45 = vrot.slane %v461_v12, 4  ;;  %v531_v51 = vrot.slane %v462_v25, 4  ;;  %v3743_v25 = vld [vmem:[%s7579_s3 + $0x28] ss:$0 sm:$0xff] }
  0xaf   :  { %v397_v27 = vpop.permute.xlu1 %396  ;;  %v395_v29 = vpop.permute.xlu0 %394  ;;  %v423_v49 = vpack.c.bf16 %v419_v24, %v419_v24  ;;  %v3745_v24 = vld [vmem:[%s7579_s3 + $0x38] ss:$0 sm:$0xff] }
  0xb0   :  { %v402_v14 = vsel %vm398_vm7, %v397_v27, %v391_v61  ;;  %v399_v36 = vsel %vm398_vm7, %v395_v29, %v397_v27  ;;  %v400_v10 = vsel %vm398_vm7, %v393_v59, %v395_v29  ;;  %v529_v59 = vrot.slane %v460_v3, 4  ;;  %v3744_v29 = vld [vmem:[%s7579_s3 + $0x30] ss:$0 sm:$0xff] }
  0xb1   :  { %v422_v15 = vmul.f32 %v4615_v5, %v402_v14  ;;  %v420_v40 = vmul.f32 %v4619_v6, %v400_v10  ;;  %v421_v42 = vmul.f32 %v4623_v13, %v399_v36 }
  0xb2   :  { %v584_v27 = vsel %vm533_vm2, %v423_v49, %v529_v59  ;;  %v3992_v59 = vld [vmem:[%s7605_s26 + $0x48] sm:$0xff]  }
  0xb3   :  { %v426_v7 = vpack.c.bf16 %v422_v15, %v422_v15  ;;  %v424_v52 = vpack.c.bf16 %v420_v40, %v420_v40  ;;  %v425_v53 = vpack.c.bf16 %v421_v42, %v421_v42  ;;  %v467_v54 = vpop.permute.xlu1 %466  ;;  %v465_v57 = vpop.permute.xlu0 %464 }
  0xb4   :  { %v475_v61 = vsel %vm472_vm8, %v465_v57, %v467_v54 }
  0xb5   :  { %v588_v62 = vsel %vm533_vm2, %v424_v52, %v530_v45  ;;  %v596_v63 = vsel %vm533_vm2, %v426_v7, %v532_v43  ;;  %v592_v11 = vsel %vm533_vm2, %v425_v53, %v531_v51  ;;  %v493_v12 = vmul.f32 %v3742_v50, %v475_v61  ;;  %v175_v53 = vld [vmem:[%s7604_s29] sm:$0xf]  ;;  %s7426_s29 = smov 119  }
  0xb6   :  { %625 = vmatprep.subr.bf16.mxu0 %v588_v62  ;;  %666 = vmatprep.subr.bf16.mxu1 %v596_v63  ;;  %v3993_v61 = vld [vmem:[%s7605_s26 + $0xc0] sm:$0xff]   ;;  %v3995_v63 = vld [vmem:[%s7605_s26 + $0x8] sm:$0xff]  }
  0xb7   :  { %v471_v3 = vpop.permute.xlu1 %470  ;;  %667 = vmatpush1.bf16.msra.mxu1 %v592_v11  ;;  %v469_v14 = vpop.permute.xlu0 %468  ;;  %626 = vmatpush1.bf16.msra.mxu0 %v584_v27  ;;  %v497_v43 = vpack.c.bf16 %v493_v12, %v493_v12  ;;  %v3994_v62 = vld [vmem:[%s7605_s26 + $0x80] sm:$0xff]   ;;  %v3996_v11 = vld [vmem:[%s7605_s26 + $0x50] sm:$0xff]   ;;  %v3997_v12 = vld [vmem:[%s7605_s26 + $0xc8] sm:$0xff]  }
  0xb8   :  { %v476_v36 = vsel %vm472_vm8, %v471_v3, %v465_v57  ;;  %v473_v10 = vsel %vm472_vm8, %v469_v14, %v471_v3  ;;  %v474_v15 = vsel %vm472_vm8, %v467_v54, %v469_v14  ;;  %v3990_v54 = vld [vmem:[%s7605_s26 + $0x40] sm:$0xff]   ;;  %v4000_v27 = vld [vmem:[%s7605_s26 + $0x58] sm:$0xff]  }
  0xb9   :  { %v496_v40 = vmul.f32 %v3745_v24, %v476_v36  ;;  %v494_v42 = vmul.f32 %v3743_v25, %v474_v15  ;;  %v495_v45 = vmul.f32 %v3744_v29, %v473_v10  ;;  %v608_v7 = vsel %vm533_vm2, %v497_v43, 0  ;;  %v3991_v57 = vld [vmem:[%s7605_s26] sm:$0xff]   ;;  %v3998_v24 = vld [vmem:[%s7605_s26 + $0x10] sm:$0xff]   ;;  %v3999_v25 = vld [vmem:[%s7605_s26 + $0x88] sm:$0xff]  }
  0xba   :  { %v4001_v29 = vld [vmem:[%s7605_s26 + $0xd0] sm:$0xff]   ;;  %v4002_v14 = vld [vmem:[%s7605_s26 + $0x18] sm:$0xff]  }
  0xbb   :  { %v500_v49 = vpack.c.bf16 %v496_v40, %v496_v40  ;;  %v498_v50 = vpack.c.bf16 %v494_v42, %v494_v42  ;;  %v499_v51 = vpack.c.bf16 %v495_v45, %v495_v45  ;;  %v4003_v36 = vld [vmem:[%s7605_s26 + $0x90] sm:$0xff]  }
  0xbd   :  { %3746 = vmatprep.subr.msk.bf16.mxu0 %vm533_vm2, %v498_v50  ;;  %3748 = vmatprep.subr.msk.bf16.mxu1 %vm533_vm2, %v500_v49  ;;  %v614_v52 = vsel %vm533_vm2, %v499_v51, 0  ;;  %v4004_v49 = vld [vmem:[%s7605_s26 + $0x60] sm:$0xff]   ;;  %v4005_v50 = vld [vmem:[%s7605_s26 + $0xd8] sm:$0xff]  }
  0xbe   :  { %628 = vmatpush1.bf16.msra.mxu0 %v608_v7  ;;  %669 = vmatpush1.bf16.msra.mxu1 %v614_v52  ;;  %v4006_v52 = vld [vmem:[%s7605_s26 + $0x20] sm:$0xff]  }
  0xbf   :  { %3843 = vmatprep.subr.bf16.mxu0 %v3990_v54  ;;  %3865 = vmatprep.subr.bf16.mxu1 %v3993_v61 }
  0xc1   :  { %3747 = vmatmul.mubr.msk.bf16.vlgmr.msra.gmra.mrb[0].mxu0 %vm603_vm9, %v175_v53  ;;  %3749 = vmatmul.mubr.msk.bf16.vlgmr.msra.gmra.mrb[0].mxu1 %vm603_vm9, %v175_v53  ;;  %v4007_v53 = vld [vmem:[%s7605_s26 + $0x98] sm:$0xff]  }
  0xc2   :  { %3844 = vmatpush3.bf16.msra.mxu0 %v3991_v57  ;;  %3866 = vmatpush3.bf16.msra.mxu1 %v3994_v62 }
  0xc3   :  { %3845 = vmatprep.subr.bf16.mxu0 %v3992_v59  ;;  %3867 = vmatprep.subr.bf16.mxu1 %v3997_v12  ;;  %v4010_v12 = vld [vmem:[%s7605_s26 + $0x28] sm:$0xff]  }
  0xc6   :  { %3846 = vmatpush3.bf16.msra.mxu0 %v3995_v63  ;;  %3868 = vmatpush3.bf16.msra.mxu1 %v3999_v25  ;;  %v4008_v63 = vld [vmem:[%s7605_s26 + $0x68] sm:$0xff]  }
  0xc7   :  { %3847 = vmatprep.subr.bf16.mxu0 %v3996_v11  ;;  %3869 = vmatprep.subr.bf16.mxu1 %v4001_v29  ;;  %v4009_v11 = vld [vmem:[%s7605_s26 + $0xe0] sm:$0xff]   ;;  %v4012_v29 = vld [vmem:[%s7605_s26 + $0x70] sm:$0xff]  }
  0xc8   :  { %v601_v3 = vpop.permute.xlu0 %600 }
  0xca   :  { %3848 = vmatpush3.bf16.msra.mxu0 %v3998_v24  ;;  %3870 = vmatpush3.bf16.msra.mxu1 %v4003_v36  ;;  %v4011_v24 = vld [vmem:[%s7605_s26 + $0xa0] sm:$0xff]   ;;  %v4015_v36 = vld [vmem:[%s7605_s26 + $0xa8] sm:$0xff]  }
  0xcb   :  { %3849 = vmatprep.subr.bf16.mxu0 %v4000_v27  ;;  %3871 = vmatprep.subr.bf16.mxu1 %v4005_v50 }
  0xce   :  { %3850 = vmatpush3.bf16.msra.mxu0 %v4002_v14  ;;  %3872 = vmatpush3.bf16.msra.mxu1 %v4007_v53  ;;  %v4013_v14 = vld [vmem:[%s7605_s26 + $0xe8] sm:$0xff]  }
  0xcf   :  { %3851 = vmatprep.subr.bf16.mxu0 %v4004_v49  ;;  %3873 = vmatprep.subr.bf16.mxu1 %v4009_v11  ;;  %v4021_v49 = vld [vmem:[%s7605_s26 + $0xb8] sm:$0xff]  }
  0xd2   :  { %3852 = vmatpush3.bf16.msra.mxu0 %v4006_v52  ;;  %3874 = vmatpush3.bf16.msra.mxu1 %v4011_v24 }
  0xd3   :  { %3853 = vmatprep.subr.bf16.mxu0 %v4008_v63  ;;  %3875 = vmatprep.subr.bf16.mxu1 %v4013_v14 }
  0xd6   :  { %3854 = vmatpush3.bf16.msra.mxu0 %v4010_v12  ;;  %3876 = vmatpush3.bf16.msra.mxu1 %v4015_v36 }
  0xd7   :  { %3855 = vmatprep.subr.bf16.mxu0 %v4012_v29 }
 0x194   :  { %v694_v10 = vpop.f32.mrb[0].mxu1  ;;  %v653_v15 = vpop.f32.mrb[0].mxu0 }
 0x195   :  { %v695_v40 = vadd.f32 %v694_v10, %v601_v3  ;;  %v654_v42 = vadd.f32 %v653_v15, %v601_v3  ;;  %v655_v43 = vpop.f32.mrb[1].mxu0  ;;  %v696_v45 = vpop.f32.mrb[1].mxu1  ;;  %v4016_v15 = vld [vmem:[%s7605_s26 + $0x78] sm:$0xff]  }
 0x196   :  { %v657_v51 = vpop.f32.mrb[2].mxu0  ;;  %v698_v7 = vpop.f32.mrb[2].mxu1  ;;  %v656_v59 = vadd.f32 %v655_v43, %v601_v3  ;;  %v697_v27 = vadd.f32 %v696_v45, %v601_v3  ;;  %v4014_v3 = vld [vmem:[%s7605_s26 + $0x30] sm:$0xff]   ;;  %v4020_v45 = vld [vmem:[%s7605_s26 + $0xf8] sm:$0xff]  }
 0x197   :  { %v4723_v54 = vmax.f32 %v695_v40, 0.0  ;;  %v4725_v57 = vmax.f32 %v654_v42, 0.0  ;;  %v658_v61 = vpop.f32.mrb[3].mxu0  ;;  %v699_v62 = vpop.f32.mrb[3].mxu1  ;;  %3856 = vmatpush3.bf16.msra.mxu0 %v4014_v3  ;;  %v4017_v40 = vld [vmem:[%s7605_s26 + $0xf0] sm:$0xff]   ;;  %v4018_v42 = vld [vmem:[%s7605_s26 + $0x38] sm:$0xff]  }
 0x198   :  { %v4743_v25 = vmax.f32 %v656_v59, 0.0  ;;  %v4761_v10 = vmax.f32 %v697_v27, 0.0  ;;  %v4019_v43 = vld [vmem:[%s7605_s26 + $0xb0] sm:$0xff]   ;;  %3857 = vmatprep.subr.bf16.mxu0 %v4016_v15  ;;  %3877 = vmatprep.subr.bf16.mxu1 %v4017_v40 }
 0x199   :  { %709 = vrot.lane.b32.xlu0 %v4723_v54, %s7433_s6  ;;  %705 = vrot.lane.b32.xlu1 %v4725_v57, %s7433_s6 }
 0x19a   :  { %3878 = vmatpush3.bf16.msra.mxu1 %v4019_v43 }
 0x19b   :  { %3858 = vmatpush3.bf16.msra.mxu0 %v4018_v42  ;;  %3879 = vmatprep.subr.bf16.mxu1 %v4020_v45 }
 0x19d   :  { %721 = vrot.lane.b32.xlu0 %v4725_v57, %s7431_s24  ;;  %707 = vrot.lane.b32.xlu1 %v4743_v25, %s7433_s6 }
 0x19e   :  { %3880 = vmatpush3.bf16.msra.mxu1 %v4021_v49 }
 0x1a1   :  { %725 = vrot.lane.b32.xlu0 %v4723_v54, %s7431_s24  ;;  %711 = vrot.lane.b32.xlu1 %v4761_v10, %s7433_s6 }
 0x1a5   :  { %737 = vrot.lane.b32.xlu0 %v4725_v57, %s7429_s25  ;;  %723 = vrot.lane.b32.xlu1 %v4743_v25, %s7431_s24 }
 0x1a9   :  { %741 = vrot.lane.b32.xlu0 %v4723_v54, %s7429_s25  ;;  %727 = vrot.lane.b32.xlu1 %v4761_v10, %s7431_s24 }
 0x1ad   :  { %739 = vrot.lane.b32.xlu1 %v4743_v25, %s7429_s25 }
 0x1b1   :  { %743 = vrot.lane.b32.xlu1 %v4761_v10, %s7429_s25  ;;  %s7636_s25 = smov 127  }
 0x20b   :  { %v710_v50 = vpop.permute.xlu0 %709  ;;  %v706_v51 = vpop.permute.xlu1 %705 }
 0x20f   :  { %v722_v7 = vpop.permute.xlu0 %721  ;;  %v708_v52 = vpop.permute.xlu1 %707 }
 0x210   :  { %v4799_v63 = vsel %vm361_vm5, %v708_v52, %v710_v50  ;;  %v4803_v11 = vsel %vm361_vm5, %v706_v51, %v708_v52 }
 0x211   :  { %v717_v29 = vmax.f32 %v4725_v57, %v4803_v11  ;;  %v718_v14 = vmax.f32 %v4743_v25, %v4799_v63 }
 0x213   :  { %v726_v53 = vpop.permute.xlu0 %725  ;;  %v712_v59 = vpop.permute.xlu1 %711 }
 0x214   :  { %v4819_v3 = vsel %vm361_vm5, %v710_v50, %v712_v59  ;;  %v4823_v36 = vsel %vm361_vm5, %v712_v59, %v706_v51 }
 0x215   :  { %v719_v52 = vmax.f32 %v4723_v54, %v4819_v3  ;;  %v720_v59 = vmax.f32 %v4761_v10, %v4823_v36 }
 0x217   :  { %v724_v61 = vpop.permute.xlu1 %723  ;;  %v738_v62 = vpop.permute.xlu0 %737 }
 0x218   :  { %v4807_v24 = vsel %vm435_vm6, %v724_v61, %v726_v53  ;;  %v4811_v27 = vsel %vm435_vm6, %v722_v7, %v724_v61 }
 0x219   :  { %7606 = vst [vmem:[#allocation26_spill] sm:$0xff] %v4807_v24  ;;  %7607 = vst [vmem:[#allocation27_spill] sm:$0xff] %v4811_v27  ;;  %v733_v15 = vmax.f32 %v717_v29, %v4811_v27  ;;  %v734_v40 = vmax.f32 %v718_v14, %v4807_v24 }
 0x21b   :  { %v728_v12 = vpop.permute.xlu1 %727  ;;  %v742_v42 = vpop.permute.xlu0 %741 }
 0x21c   :  { %v4829_v45 = vsel %vm435_vm6, %v726_v53, %v728_v12  ;;  %v4833_v49 = vsel %vm435_vm6, %v728_v12, %v722_v7 }
 0x21d   :  { %7608 = vst [vmem:[#allocation28_spill] sm:$0xff] %v4829_v45  ;;  %7609 = vst [vmem:[#allocation29_spill] sm:$0xff] %v4833_v49  ;;  %v735_v7 = vmax.f32 %v719_v52, %v4829_v45  ;;  %v736_v12 = vmax.f32 %v720_v59, %v4833_v49  ;;  %v7614_v59 = vmov 0  }
 0x21f   :  { %v740_v43 = vpop.permute.xlu1 %739 }
 0x220   :  { %v4837_v50 = vsel %vm472_vm8, %v740_v43, %v742_v42  ;;  %v4841_v51 = vsel %vm472_vm8, %v738_v62, %v740_v43 }
 0x221   :  { %7610 = vst [vmem:[#allocation30_spill] sm:$0xff] %v4837_v50  ;;  %7611 = vst [vmem:[#allocation31_spill] sm:$0xff] %v4841_v51  ;;  %v749_v53 = vmax.f32 %v733_v15, %v4841_v51  ;;  %v750_v61 = vmax.f32 %v734_v40, %v4837_v50 }
 0x223   :  { %v753_v29 = vpack.c.bf16 %v749_v53, %v749_v53  ;;  %v744_v14 = vpop.permute.xlu1 %743  ;;  %v754_v4 = vpack.c.bf16 %v750_v61, %v750_v61 }
 0x224   :  { %v4853_v43 = vsel %vm472_vm8, %v742_v42, %v744_v14  ;;  %v4857_v5 = vsel %vm472_vm8, %v744_v14, %v738_v62  ;;  %v7436_v62 = vmov 0.0  }
 0x225   :  { %7612 = vst [vmem:[#allocation32_spill] sm:$0xff] %v4853_v43  ;;  %7613 = vst [vmem:[#allocation33_spill] sm:$0xff] %v4857_v5  ;;  %v751_v13 = vmax.f32 %v735_v7, %v4853_v43  ;;  %981 = vmatprep.mubr.bf16.mxu0 %v754_v4  ;;  %v752_v15 = vmax.f32 %v736_v12, %v4857_v5  ;;  %3943 = vmatprep.subr.bf16.mxu0 %v7436_v62 }
 0x226   :  { %982 = vmatmul.mubr.bf16.vlgmr.msra.gmra.mrb[4].mxu0 %v753_v29 }
 0x227   :  { %v755_v40 = vpack.c.bf16 %v751_v13, %v751_v13  ;;  %v756_v52 = vpack.c.bf16 %v752_v15, %v752_v15  ;;  %3953 = vmatprep.mubr.msk.bf16.mxu0 %vm4163_vm10, %v7436_v62  ;;  %v179_v13 = vld [vmem:[%s7616_s5] sm:$0xff] }
 0x228   :  { %v4031_v15 = vld [vmem:[%s7384_s4 + $0x24] ss:$16 sps:$4 sm:$0xff]  }
 0x229   :  { %1021 = vmatprep.mubr.bf16.mxu1 %v756_v52  ;;  %v4037_v52 = vld [vmem:[%s7384_s4 + $0x44] ss:$16 sps:$4 sm:$0xff]  }
 0x22a   :  { %1022 = vmatmul.mubr.bf16.vlgmr.msra.gmra.mrb[4].mxu1 %v755_v40  ;;  %v4029_v40 = vld [vmem:[%s7384_s4 + $0x20] ss:$16 sps:$4 sm:$0xff]  }
 0x22b   :  { %1375 = vmatprep.mubr.bf16.mxu1 %v7614_v59 }
 0x2f9   :  { %v3859_v53 = vpop.f32.mrb[4].mxu0 }
 0x2fa   :  { %v3860_v61 = vpop.f32.mrb[5].mxu0 }
 0x2fb   :  { %v3861_v42 = vadd.f32 %v3860_v61, %v3859_v53  ;;  %v3862_v50 = vpop.f32.mrb[6].mxu0  ;;  %v4035_v53 = vld [vmem:[%s7384_s4 + $0x40] ss:$16 sps:$4 sm:$0xff]   ;;  %v4043_v61 = vld [vmem:[%s7384_s4 + $0x64] ss:$16 sps:$4 sm:$0xff]  }
 0x2fc   :  { %v3863_v51 = vpop.f32.mrb[7].mxu0  ;;  %v4023_v50 = vld [vmem:[%s7384_s4] ss:$16 sps:$4 sm:$0xff]  }
 0x2fd   :  { %v3881_v6 = vpop.f32.mrb[4].mxu1  ;;  %v4025_v51 = vld [vmem:[%s7384_s4 + $0x4] ss:$16 sps:$4 sm:$0xff]  }
 0x2fe   :  { %v3882_v7 = vpop.f32.mrb[5].mxu1  ;;  %1343 = vmatprep.subr.bf16.mxu1 %v4025_v51 }
 0x2ff   :  { %v3883_v4 = vadd.f32 %v3882_v7, %v3881_v6  ;;  %v3884_v14 = vpop.f32.mrb[6].mxu1  ;;  %v180_v6 = vld [vmem:[%s7616_s5 + $0x8] sm:$0xff]  ;;  %1344 = vmatpush1.bf16.msra.mxu1 %v4023_v50  ;;  %v4049_v7 = vld [vmem:[%s7384_s4 + $0x84] ss:$16 sps:$4 sm:$0xff]   ;;  %s7753_s5 = smov 121  }
 0x300   :  { %v3885_v12 = vpop.f32.mrb[7].mxu1  ;;  %1345 = vmatprep.subr.bf16.mxu1 %v4031_v15  ;;  %v4055_v14 = vld [vmem:[%s7384_s4 + $0xa4] ss:$16 sps:$4 sm:$0xff]  }
 0x301   :  { %v4863_v29 = vadd.f32 %v3883_v4, %v3861_v42  ;;  %v4041_v42 = vld [vmem:[%s7384_s4 + $0x60] ss:$16 sps:$4 sm:$0xff]  }
 0x302   :  { %v4047_v4 = vld [vmem:[%s7384_s4 + $0x80] ss:$16 sps:$4 sm:$0xff]  }
 0x303   :  { %1029 = vrot.lane.b32.xlu1 %v4863_v29, %s7428_s28  ;;  %1037 = vrot.lane.b32.xlu0 %v4863_v29, %s7425_s8  ;;  %s7617_s8 = smov 17   ;;  %v4053_v12 = vld [vmem:[%s7384_s4 + $0xa0] ss:$16 sps:$4 sm:$0xff]  }
 0x304   :  { %1346 = vmatpush1.bf16.msra.mxu1 %v4029_v40 }
 0x305   :  { %1347 = vmatprep.subr.bf16.mxu1 %v4037_v52 }
 0x307   :  { %1045 = vrot.lane.b32.xlu1 %v4863_v29, %s7424_s23  ;;  %1053 = vrot.lane.b32.xlu0 %v4863_v29, %s7615_s1  ;;  %s7619_s23 = smov 15  }
 0x308   :  { %1348 = vmatpush1.bf16.msra.mxu1 %v4035_v53 }
 0x309   :  { %1349 = vmatprep.subr.bf16.mxu1 %v4043_v61 }
 0x30b   :  { %1078 = vrot.lane.b32.xlu1 %v4863_v29, %s7423_s22  ;;  %1062 = vrot.lane.b32.xlu0 %v4863_v29, %s7433_s6  ;;  %s7641_s6 = smov 111   ;;  %s7748_s22 = smov 9  }
 0x30c   :  { %1350 = vmatpush1.bf16.msra.mxu1 %v4041_v42 }
 0x30d   :  { %1351 = vmatprep.subr.bf16.mxu1 %v4049_v7 }
 0x30f   :  { %1086 = vrot.lane.b32.xlu1 %v4863_v29, %s7426_s29  ;;  %1070 = vrot.lane.b32.xlu0 %v4863_v29, %s7427_s0  ;;  %s7618_s29 = smov 16  }
 0x310   :  { %1352 = vmatpush1.bf16.msra.mxu1 %v4047_v4 }
 0x311   :  { %1353 = vmatprep.subr.bf16.mxu1 %v4055_v14 }
 0x313   :  { %1125 = vperm.xlu1 %3989, %v180_v6   ;;  %1120 = vperm.xlu0 %3988, %v179_v13   ;;  %v77_v6 = vld [vmem:[%s7385_s2] sm:$0xff] }
 0x314   :  { %1354 = vmatpush1.bf16.msra.mxu1 %v4053_v12  ;;  %v4961_v13 = vrot.slane %v77_v6, %v4400_v17  ;;  %v4964_v50 = vrot.slane %v77_v6, %v4372_v9  ;;  %v4969_v53 = vrot.slane %v77_v6, %v4470_v20  ;;  %v4972_v61 = vrot.slane %v77_v6, %v4447_v41 }
 0x315   :  { %v4975_v17 = vrot.slane %v77_v6, %v4560_v58  ;;  %v4978_v9 = vrot.slane %v77_v6, %v4502_v44 }
 0x316   :  { %7620 = vst [vmem:[#allocation34_spill] sm:$0xff] %v4961_v13  ;;  %7621 = vst [vmem:[#allocation35_spill] sm:$0xff] %v4964_v50 }
 0x317   :  { %1439 = vrot.lane.b32.xlu1 %v4743_v25, %s7617_s8  ;;  %1433 = vrot.lane.b32.xlu0 %v4725_v57, %s7617_s8  ;;  %7622 = vst [vmem:[#allocation36_spill] sm:$0xff] %v4969_v53  ;;  %7623 = vst [vmem:[#allocation37_spill] sm:$0xff] %v4972_v61 }
 0x318   :  { %7624 = vst [vmem:[#allocation38_spill] sm:$0xff] %v4975_v17  ;;  %7625 = vst [vmem:[#allocation39_spill] sm:$0xff] %v4978_v9 }
 0x31b   :  { %1489 = vrot.lane.b32.xlu1 %v4725_v57, %s7618_s29  ;;  %1451 = vrot.lane.b32.xlu0 %v4761_v10, %s7617_s8 }
 0x31f   :  { %1507 = vrot.lane.b32.xlu1 %v4761_v10, %s7618_s29  ;;  %1495 = vrot.lane.b32.xlu0 %v4743_v25, %s7618_s29 }
 0x323   :  { %1501 = vrot.lane.b32.xlu1 %v4723_v54, %s7618_s29  ;;  %1445 = vrot.lane.b32.xlu0 %v4723_v54, %s7617_s8 }
 0x327   :  { %1551 = vrot.lane.b32.xlu1 %v4743_v25, %s7619_s23  ;;  %1545 = vrot.lane.b32.xlu0 %v4725_v57, %s7619_s23 }
 0x32b   :  { %1601 = vrot.lane.b32.xlu1 %v4725_v57, %s7615_s1  ;;  %1563 = vrot.lane.b32.xlu0 %v4761_v10, %s7619_s23 }
 0x32f   :  { %1619 = vrot.lane.b32.xlu1 %v4761_v10, %s7615_s1  ;;  %1607 = vrot.lane.b32.xlu0 %v4743_v25, %s7615_s1 }
 0x333   :  { %1613 = vrot.lane.b32.xlu1 %v4723_v54, %s7615_s1  ;;  %1557 = vrot.lane.b32.xlu0 %v4723_v54, %s7619_s23 }
 0x375   :  { %v1030_v51 = vpop.permute.xlu1 %1029  ;;  %v1038_v15 = vpop.permute.xlu0 %1037 }
 0x376   :  { %v1035_v40 = vmul.f32 %v4961_v13, %v1030_v51  ;;  %v1043_v52 = vmul.f32 %v4964_v50, %v1038_v15  ;;  %v4984_v50 = vrot.slane %v77_v6, %v4588_v31 }
 0x378   :  { %v1044_v42 = vpack.c.bf16 %v1043_v52, %v1043_v52  ;;  %v1036_v14 = vpack.c.bf16 %v1035_v40, %v1035_v40  ;;  %7626 = vst [vmem:[#allocation40_spill] sm:$0xff] %v4984_v50 }
 0x379   :  { %v1046_v7 = vpop.permute.xlu1 %1045  ;;  %v1054_v4 = vpop.permute.xlu0 %1053 }
 0x37a   :  { %v1095_v12 = vrot.slane %v1044_v42, 4  ;;  %v1051_v51 = vmul.f32 %v4969_v53, %v1046_v7  ;;  %v1059_v15 = vmul.f32 %v4972_v61, %v1054_v4  ;;  %v7627_v42 = vmov 0.0  }
 0x37c   :  { %v1060_v20 = vpack.c.bf16 %v1059_v15, %v1059_v15  ;;  %v1104_v62 = vsel %vm533_vm2, %v1036_v14, %v1095_v12  ;;  %v1052_v58 = vpack.c.bf16 %v1051_v51, %v1051_v51  ;;  %v3782_v14 = vld [vmem:[%s7385_s2 + $0x8] ss:$0 sm:$0xff]  ;;  %v1061_v15 = vpack.c.bf16 %v4863_v29, %v4863_v29 }
 0x37d   :  { %v1079_v41 = vpop.permute.xlu1 %1078  ;;  %3944 = vmatpush3.bf16.msra.mxu0 %v1104_v62  ;;  %v1063_v52 = vpop.permute.xlu0 %1062 }
 0x37e   :  { %v1097_v13 = vrot.slane %v1060_v20, 4  ;;  %v1084_v44 = vmul.f32 %v4975_v17, %v1079_v41  ;;  %v1068_v40 = vmul.f32 %v4978_v9, %v1063_v52  ;;  %3945 = vmatprep.subr.bf16.mxu0 %v7627_v42 }
 0x380   :  { %v1069_v7 = vpack.c.bf16 %v1068_v40, %v1068_v40  ;;  %v1108_v4 = vsel %vm533_vm2, %v1052_v58, %v1097_v13  ;;  %v1085_v31 = vpack.c.bf16 %v1084_v44, %v1084_v44  ;;  %v4028_v44 = vld [vmem:[%s7384_s4 + $0xc] ss:$16 sps:$4 sm:$0xff]  }
 0x381   :  { %v1087_v62 = vpop.permute.xlu1 %1086  ;;  %3946 = vmatpush3.bf16.msra.mxu0 %v1108_v4  ;;  %v1071_v12 = vpop.permute.xlu0 %1070  ;;  %v4026_v4 = vld [vmem:[%s7384_s4 + $0x8] ss:$16 sps:$4 sm:$0xff]  }
 0x382   :  { %v1099_v6 = vrot.slane %v1069_v7, 4  ;;  %v1076_v51 = vmul.f32 %v4984_v50, %v1071_v12  ;;  %3947 = vmatprep.subr.bf16.mxu0 %v7627_v42  ;;  %v1092_v20 = vmul.f32 %v3782_v14, %v1087_v62  ;;  %v1101_v52 = vrot.slane %v1085_v31, 4  ;;  %v4022_v7 = vld [vmem:[%s7383_s7] sm:$0xff]   ;;  %v4034_v14 = vld [vmem:[%s7384_s4 + $0x2c] ss:$16 sps:$4 sm:$0xff]   ;;  %s7637_s7 = smov 113  }
 0x383   :  { %v4032_v62 = vld [vmem:[%s7384_s4 + $0x28] ss:$16 sps:$4 sm:$0xff]   ;;  %v4040_v12 = vld [vmem:[%s7384_s4 + $0x4c] ss:$16 sps:$4 sm:$0xff]  }
 0x384   :  { %v1077_v41 = vpack.c.bf16 %v1076_v51, %v1076_v51  ;;  %v1112_v13 = vsel %vm533_vm2, %v1061_v15, %v1099_v6  ;;  %v1093_v58 = vpack.c.bf16 %v1092_v20, %v1092_v20  ;;  %v4038_v31 = vld [vmem:[%s7384_s4 + $0x48] ss:$16 sps:$4 sm:$0xff]   ;;  %v4046_v6 = vld [vmem:[%s7384_s4 + $0x6c] ss:$16 sps:$4 sm:$0xff]  }
 0x385   :  { %3948 = vmatpush3.bf16.msra.mxu0 %v1112_v13  ;;  %v4044_v51 = vld [vmem:[%s7384_s4 + $0x68] ss:$16 sps:$4 sm:$0xff]   ;;  %v4052_v15 = vld [vmem:[%s7384_s4 + $0x8c] ss:$16 sps:$4 sm:$0xff]  }
 0x386   :  { %3949 = vmatprep.subr.bf16.mxu0 %v7627_v42  ;;  %v1116_v40 = vsel %vm533_vm2, %v1077_v41, %v1101_v52  ;;  %v1137_v29 = vsel %vm533_vm2, %v1093_v58, 0  ;;  %v4050_v20 = vld [vmem:[%s7384_s4 + $0x88] ss:$16 sps:$4 sm:$0xff]   ;;  %v4058_v41 = vld [vmem:[%s7384_s4 + $0xac] ss:$16 sps:$4 sm:$0xff]  }
 0x387   :  { %v4056_v13 = vld [vmem:[%s7384_s4 + $0xa8] ss:$16 sps:$4 sm:$0xff]   ;;  %v4061_v52 = vld [vmem:[%s7384_s4 + $0xc4] ss:$16 sps:$4 sm:$0xff]   ;;  %v4064_v58 = vld [vmem:[%s7384_s4 + $0xcc] ss:$16 sps:$4 sm:$0xff]  }
 0x388   :  { %1355 = vmatprep.subr.bf16.mxu1 %v4061_v52 }
 0x389   :  { %3950 = vmatpush3.bf16.msra.mxu0 %v1116_v40  ;;  %v4059_v40 = vld [vmem:[%s7384_s4 + $0xc0] ss:$16 sps:$4 sm:$0xff]  }
 0x38a   :  { %3951 = vmatprep.subr.bf16.mxu0 %v7627_v42  ;;  %1356 = vmatpush1.bf16.msra.mxu1 %v4059_v40 }
 0x38d   :  { %3952 = vmatpush3.bf16.msra.mxu0 %v1137_v29  ;;  %v4067_v29 = vld [vmem:[%s7384_s4 + $0xe4] ss:$16 sps:$4 sm:$0xff]  }
 0x38e   :  { %1386 = vmatprep.subr.bf16.mxu0 %v4028_v44  ;;  %v4062_v44 = vld [vmem:[%s7384_s4 + $0xc8] ss:$16 sps:$4 sm:$0xff]   ;;  %1357 = vmatprep.subr.bf16.mxu1 %v4067_v29 }
 0x390   :  { %3954 = vmatmul.mubr.msk.bf16.vlgmr.msra.gmra.mrb[8].mxu0 %vm603_vm9, %v4022_v7  ;;  %v4070_v7 = vld [vmem:[%s7384_s4 + $0xec] ss:$16 sps:$4 sm:$0xff]  }
 0x391   :  { %1387 = vmatpush1.bf16.msra.mxu0 %v4026_v4  ;;  %1418 = vmatprep.mubr.bf16.mxu0 %v7614_v59  ;;  %v4065_v4 = vld [vmem:[%s7384_s4 + $0xe0] ss:$16 sps:$4 sm:$0xff]  }
 0x392   :  { %1388 = vmatprep.subr.bf16.mxu0 %v4034_v14  ;;  %v4068_v14 = vld [vmem:[%s7384_s4 + $0xe8] ss:$16 sps:$4 sm:$0xff]   ;;  %1358 = vmatpush1.bf16.msra.mxu1 %v4065_v4 }
 0x395   :  { %1389 = vmatpush1.bf16.msra.mxu0 %v4032_v62  ;;  %v1121_v62 = vpop.permute.xlu0 %1120 }
 0x396   :  { %1390 = vmatprep.subr.bf16.mxu0 %v4040_v12 }
 0x399   :  { %1391 = vmatpush1.bf16.msra.mxu0 %v4038_v31 }
 0x39a   :  { %1392 = vmatprep.subr.bf16.mxu0 %v4046_v6 }
 0x39d   :  { %1393 = vmatpush1.bf16.msra.mxu0 %v4044_v51  ;;  %v1126_v51 = vpop.permute.xlu1 %1125 }
 0x39e   :  { %1394 = vmatprep.subr.bf16.mxu0 %v4052_v15 }
 0x3a1   :  { %1395 = vmatpush1.bf16.msra.mxu0 %v4050_v20 }
 0x3a2   :  { %1396 = vmatprep.subr.bf16.mxu0 %v4058_v41 }
 0x3a5   :  { %1397 = vmatpush1.bf16.msra.mxu0 %v4056_v13 }
 0x3a6   :  { %1398 = vmatprep.subr.bf16.mxu0 %v4064_v58 }
 0x3a9   :  { %1399 = vmatpush1.bf16.msra.mxu0 %v4062_v44 }
 0x3aa   :  { %1400 = vmatprep.subr.bf16.mxu0 %v4070_v7 }
 0x3ad   :  { %1401 = vmatpush1.bf16.msra.mxu0 %v4068_v14 }
 0x463   :  { %v1173_v12 = vpop.f32.mrb[8].mxu0 }
 0x464   :  { %v1174_v31 = vadd.f32 %v1173_v12, %v1121_v62  ;;  %v3955_v6 = vpop.f32.mrb[9].mxu0 }
 0x465   :  { %v1176_v15 = vpop.f32.mrb[10].mxu0 }
 0x466   :  { %v1177_v20 = vadd.f32 %v1176_v15, %v1126_v51  ;;  %v3956_v41 = vpop.f32.mrb[11].mxu0  ;;  %v1180_v13 = vmax.f32 %v1174_v31, 0.0 }
 0x467   :  { %v5161_v41 = vpop.permute.xlu0 %1433 }
 0x468   :  { %v1181_v52 = vmax.f32 %v1177_v20, 0.0  ;;  %v5159_v20 = vpop.permute.xlu1 %1439 }
 0x46a   :  { %v1182_v58 = vpack.c.bf16 %v1181_v52, %v1180_v13 }
 0x46b   :  { %v5173_v52 = vpop.permute.xlu0 %1451 }
 0x46c   :  { %1376 = vmatmul.mubr.bf16.vlgmr.msra.gmra.mrb[8].mxu1 %v1182_v58  ;;  %1419 = vmatmul.mubr.bf16.vlgmr.msra.gmra.mrb[12].mxu0 %v1182_v58  ;;  %v5171_v13 = vpop.permute.xlu1 %1489 }
 0x46f   :  { %v5181_v6 = vpop.permute.xlu0 %1495 }
 0x470   :  { %v5179_v58 = vpop.permute.xlu1 %1507 }
 0x473   :  { %v5193_v15 = vpop.permute.xlu0 %1445 }
 0x474   :  { %v5191_v31 = vpop.permute.xlu1 %1501 }
 0x477   :  { %v5201_v50 = vpop.permute.xlu0 %1545 }
 0x478   :  { %v5199_v51 = vpop.permute.xlu1 %1551 }
 0x47b   :  { %v5213_v17 = vpop.permute.xlu0 %1563 }
 0x47c   :  { %v5211_v9 = vpop.permute.xlu1 %1601 }
 0x47f   :  { %v5221_v53 = vpop.permute.xlu0 %1607 }
 0x480   :  { %v5219_v61 = vpop.permute.xlu1 %1619 }
 0x483   :  { %v5233_v59 = vpop.permute.xlu0 %1557 }
 0x484   :  { %v5231_v42 = vpop.permute.xlu1 %1613  ;;  %7640 = vst [vmem:[#allocation50_spill] sm:$0xff] %v5233_v59 }
 0x485   :  { %7639 = vst [vmem:[#allocation49_spill] sm:$0xff] %v5231_v42 }
 0x53f   :  { %v5067_v40 = vpop.f32.mrb[8].mxu1  ;;  %v5069_v44 = vpop.f32.mrb[12].mxu0 }
 0x540   :  { %7628 = vst [vmem:[#allocation41_spill] sm:$0xff] %v5067_v40  ;;  %7629 = vst [vmem:[#allocation42_spill] sm:$0xff] %v5069_v44  ;;  %1541 = vrot.lane.b32.xlu1 %v5067_v40, %s7619_s23  ;;  %1429 = vrot.lane.b32.xlu0 %v5067_v40, %s7617_s8  ;;  %v5075_v29 = vpop.f32.mrb[9].mxu1  ;;  %v5077_v7 = vpop.f32.mrb[13].mxu0 }
 0x541   :  { %7630 = vst [vmem:[#allocation43_spill] sm:$0xff] %v5075_v29  ;;  %7631 = vst [vmem:[#allocation44_spill] sm:$0xff] %v5077_v7  ;;  %v5079_v4 = vpop.f32.mrb[10].mxu1  ;;  %v5081_v14 = vpop.f32.mrb[14].mxu0 }
 0x542   :  { %7632 = vst [vmem:[#allocation45_spill] sm:$0xff] %v5079_v4  ;;  %7633 = vst [vmem:[#allocation46_spill] sm:$0xff] %v5081_v14  ;;  %v5083_v62 = vpop.f32.mrb[11].mxu1  ;;  %v5085_v12 = vpop.f32.mrb[15].mxu0 }
 0x543   :  { %7634 = vst [vmem:[#allocation47_spill] sm:$0xff] %v5083_v62  ;;  %7635 = vst [vmem:[#allocation48_spill] sm:$0xff] %v5085_v12 }
 0x544   :  { %1485 = vrot.lane.b32.xlu0 %v5067_v40, %s7618_s29  ;;  %1547 = vrot.lane.b32.xlu1 %v5075_v29, %s7619_s23 }
 0x548   :  { %1431 = vrot.lane.b32.xlu1 %v5079_v4, %s7617_s8  ;;  %1441 = vrot.lane.b32.xlu0 %v5069_v44, %s7617_s8 }
 0x54c   :  { %1487 = vrot.lane.b32.xlu1 %v5079_v4, %s7618_s29  ;;  %1497 = vrot.lane.b32.xlu0 %v5069_v44, %s7618_s29 }
 0x550   :  { %1597 = vrot.lane.b32.xlu0 %v5067_v40, %s7615_s1  ;;  %1443 = vrot.lane.b32.xlu1 %v5081_v14, %s7617_s8 }
 0x554   :  { %1553 = vrot.lane.b32.xlu0 %v5069_v44, %s7619_s23  ;;  %1499 = vrot.lane.b32.xlu1 %v5081_v14, %s7618_s29 }
 0x558   :  { %1609 = vrot.lane.b32.xlu0 %v5069_v44, %s7615_s1  ;;  %1599 = vrot.lane.b32.xlu1 %v5079_v4, %s7615_s1 }
 0x55c   :  { %1669 = vrot.lane.b32.xlu0 %v5069_v44, %s7636_s25  ;;  %1555 = vrot.lane.b32.xlu1 %v5081_v14, %s7619_s23 }
 0x560   :  { %1661 = vrot.lane.b32.xlu0 %v5067_v40, %s7636_s25  ;;  %1611 = vrot.lane.b32.xlu1 %v5081_v14, %s7615_s1 }
 0x564   :  { %1717 = vrot.lane.b32.xlu0 %v5069_v44, %s7637_s7  ;;  %1671 = vrot.lane.b32.xlu1 %v5081_v14, %s7636_s25 }
 0x568   :  { %1705 = vrot.lane.b32.xlu0 %v5067_v40, %s7637_s7  ;;  %1663 = vrot.lane.b32.xlu1 %v5079_v4, %s7636_s25 }
 0x56c   :  { %1435 = vrot.lane.b32.xlu0 %v5075_v29, %s7617_s8  ;;  %1719 = vrot.lane.b32.xlu1 %v5081_v14, %s7637_s7 }
 0x570   :  { %1447 = vrot.lane.b32.xlu0 %v5077_v7, %s7617_s8  ;;  %1707 = vrot.lane.b32.xlu1 %v5079_v4, %s7637_s7 }
 0x574   :  { %1491 = vrot.lane.b32.xlu0 %v5075_v29, %s7618_s29  ;;  %1437 = vrot.lane.b32.xlu1 %v5083_v62, %s7617_s8 }
 0x578   :  { %1503 = vrot.lane.b32.xlu0 %v5077_v7, %s7618_s29  ;;  %1449 = vrot.lane.b32.xlu1 %v5085_v12, %s7617_s8 }
 0x57c   :  { %1559 = vrot.lane.b32.xlu0 %v5077_v7, %s7619_s23  ;;  %1493 = vrot.lane.b32.xlu1 %v5083_v62, %s7618_s29 }
 0x580   :  { %1603 = vrot.lane.b32.xlu0 %v5075_v29, %s7615_s1  ;;  %1505 = vrot.lane.b32.xlu1 %v5085_v12, %s7618_s29 }
 0x584   :  { %1615 = vrot.lane.b32.xlu0 %v5077_v7, %s7615_s1  ;;  %1771 = vrot.lane.b32.xlu1 %v5081_v14, %s7638_s21 }
 0x588   :  { %1665 = vrot.lane.b32.xlu0 %v5075_v29, %s7636_s25  ;;  %1763 = vrot.lane.b32.xlu1 %v5079_v4, %s7638_s21 }
 0x58c   :  { %1673 = vrot.lane.b32.xlu0 %v5077_v7, %s7636_s25  ;;  %1721 = vrot.lane.b32.xlu1 %v4723_v54, %s7637_s7 }
 0x590   :  { %1711 = vrot.lane.b32.xlu0 %v5075_v29, %s7637_s7  ;;  %1723 = vrot.lane.b32.xlu1 %v5077_v7, %s7637_s7 }
 0x594   :  { %1543 = vrot.lane.b32.xlu0 %v5079_v4, %s7619_s23  ;;  %1561 = vrot.lane.b32.xlu1 %v5085_v12, %s7619_s23 }
 0x598   :  { %1549 = vrot.lane.b32.xlu0 %v5083_v62, %s7619_s23  ;;  %1605 = vrot.lane.b32.xlu1 %v5083_v62, %s7615_s1 }
 0x59c   :  { %1765 = vrot.lane.b32.xlu0 %v5075_v29, %s7638_s21  ;;  %1617 = vrot.lane.b32.xlu1 %v5085_v12, %s7615_s1 }
 0x5a0   :  { %1769 = vrot.lane.b32.xlu0 %v5069_v44, %s7638_s21  ;;  %1773 = vrot.lane.b32.xlu1 %v5077_v7, %s7638_s21 }
 0x5a4   :  { %1761 = vrot.lane.b32.xlu0 %v5067_v40, %s7638_s21  ;;  %1727 = vrot.lane.b32.xlu1 %v4761_v10, %s7637_s7 }
 0x5a8   :  { %1715 = vrot.lane.b32.xlu0 %v4743_v25, %s7637_s7  ;;  %1667 = vrot.lane.b32.xlu1 %v5083_v62, %s7636_s25 }
 0x5ac   :  { %1709 = vrot.lane.b32.xlu0 %v4725_v57, %s7637_s7  ;;  %1675 = vrot.lane.b32.xlu1 %v5085_v12, %s7636_s25 }
 0x5b0   :  { %1809 = vrot.lane.b32.xlu0 %v5075_v29, %s7641_s6  ;;  %1713 = vrot.lane.b32.xlu1 %v5083_v62, %s7637_s7 }
 0x5b2   :  { %v5239_v5 = vpop.permute.xlu1 %1541  ;;  %v1430_v43 = vpop.permute.xlu0 %1429 }
 0x5b3   :  { %7642 = vst [vmem:[#allocation51_spill] sm:$0xff] %v5239_v5  ;;  %v1517_v5 = vsel %vm246_vm0, %v5171_v13, %v5181_v6 }
 0x5b4   :  { %1813 = vrot.lane.b32.xlu0 %v5069_v44, %s7641_s6  ;;  %1767 = vrot.lane.b32.xlu1 %v5083_v62, %s7638_s21 }
 0x5b6   :  { %v5245_v56 = vpop.permute.xlu0 %1485  ;;  %v5247_v45 = vpop.permute.xlu1 %1547 }
 0x5b7   :  { %7643 = vst [vmem:[#allocation52_spill] sm:$0xff] %v5247_v45 }
 0x5b8   :  { %1725 = vrot.lane.b32.xlu0 %v5085_v12, %s7637_s7  ;;  %1815 = vrot.lane.b32.xlu1 %v5081_v14, %s7641_s6  ;;  %v3818_v14 = vcombine.high %v5264_v1, %v5264_v1  ;;  %v182_v1 = vld [vmem:[%s7387_s10] sm:$0xff] }
 0x5ba   :  { %v1432_v29 = vpop.permute.xlu1 %1431  ;;  %v1442_v30 = vpop.permute.xlu0 %1441  ;;  %3820 = vmatprep.mubr.msk.bf16.mxu1 %vm2021_vm11, %v3818_v14  ;;  %3822 = vmatprep.mubr.msk.bf16.mxu0 %vm2021_vm11, %v3818_v14 }
 0x5bc   :  { %1775 = vrot.lane.b32.xlu0 %v5085_v12, %s7638_s21  ;;  %1811 = vrot.lane.b32.xlu1 %v5083_v62, %s7641_s6 }
 0x5be   :  { %v5257_v44 = vpop.permute.xlu1 %1487  ;;  %v5259_v49 = vpop.permute.xlu0 %1497 }
 0x5c0   :  { %1805 = vrot.lane.b32.xlu0 %v5067_v40, %s7641_s6  ;;  %1807 = vrot.lane.b32.xlu1 %v5079_v4, %s7641_s6  ;;  %v184_v40 = vld [vmem:[%s7388_s12] sm:$0xff] }
 0x5c2   :  { %v5274_v62 = vpop.permute.xlu0 %1597  ;;  %v1444_v24 = vpop.permute.xlu1 %1443 }
 0x5c3   :  { %7645 = vst [vmem:[#allocation54_spill] sm:$0xff] %v5274_v62 }
 0x5c4   :  { %1817 = vrot.lane.b32.xlu0 %v5077_v7, %s7641_s6  ;;  %1819 = vrot.lane.b32.xlu1 %v5085_v12, %s7641_s6 }
 0x5c6   :  { %v5286_v4 = vpop.permute.xlu0 %1553  ;;  %v5288_v14 = vpop.permute.xlu1 %1499 }
 0x5c7   :  { %7646 = vst [vmem:[#allocation55_spill] sm:$0xff] %v5286_v4 }
 0x5c8   :  { %2012 = vperm.xlu0 %3988, %v182_v1   ;;  %2129 = vperm.xlu1 %3989, %v184_v40  }
 0x5ca   :  { %v5290_v0 = vpop.permute.xlu0 %1609  ;;  %v5292_v7 = vpop.permute.xlu1 %1599 }
 0x5cb   :  { %7647 = vst [vmem:[#allocation56_spill] sm:$0xff] %v5290_v0  ;;  %7648 = vst [vmem:[#allocation57_spill] sm:$0xff] %v5292_v7 }
 0x5ce   :  { %v5294_v27 = vpop.permute.xlu0 %1669  ;;  %v5296_v12 = vpop.permute.xlu1 %1555 }
 0x5cf   :  { %7649 = vst [vmem:[#allocation58_spill] sm:$0xff] %v5294_v27  ;;  %7650 = vst [vmem:[#allocation59_spill] sm:$0xff] %v5296_v12 }
 0x5d2   :  { %v5298_v2 = vpop.permute.xlu0 %1661  ;;  %v5300_v23 = vpop.permute.xlu1 %1611 }
 0x5d3   :  { %7651 = vst [vmem:[#allocation60_spill] sm:$0xff] %v5298_v2  ;;  %7652 = vst [vmem:[#allocation61_spill] sm:$0xff] %v5300_v23 }
 0x5d6   :  { %v5302_v47 = vpop.permute.xlu0 %1717  ;;  %v5304_v48 = vpop.permute.xlu1 %1671 }
 0x5d7   :  { %7653 = vst [vmem:[#allocation62_spill] sm:$0xff] %v5302_v47  ;;  %7654 = vst [vmem:[#allocation63_spill] sm:$0xff] %v5304_v48  ;;  %v1461_v47 = vsel %vm209_vm1, %v5161_v41, %v5159_v20 }
 0x5d8   :  { %v5327_v23 = vmul.f32 %v1461_v47, %v4426_v28 }
 0x5da   :  { %v5306_v26 = vpop.permute.xlu0 %1705  ;;  %v5308_v1 = vpop.permute.xlu1 %1663 }
 0x5db   :  { %7655 = vst [vmem:[#allocation64_spill] sm:$0xff] %v5306_v26  ;;  %7656 = vst [vmem:[#allocation65_spill] sm:$0xff] %v5308_v1 }
 0x5de   :  { %v1436_v40 = vpop.permute.xlu0 %1435  ;;  %v5310_v0 = vpop.permute.xlu1 %1719 }
 0x5df   :  { %7657 = vst [vmem:[#allocation66_spill] sm:$0xff] %v5310_v0  ;;  %v1459_v27 = vsel %vm209_vm1, %v1430_v43, %v1436_v40 }
 0x5e0   :  { %v1466_v1 = vmul.f32 %v1459_v27, %v4426_v28 }
 0x5e2   :  { %v1448_v7 = vpop.permute.xlu0 %1447  ;;  %v5312_v62 = vpop.permute.xlu1 %1707 }
 0x5e3   :  { %7658 = vst [vmem:[#allocation67_spill] sm:$0xff] %v5312_v62  ;;  %v1462_v0 = vsel %vm209_vm1, %v1448_v7, %v1430_v43  ;;  %v1453_v12 = vsel %vm209_vm1, %v1442_v30, %v1448_v7 }
 0x5e4   :  { %v1465_v47 = vmul.f32 %v1462_v0, %v4436_v37  ;;  %v1464_v0 = vsel %vm209_vm1, %v5173_v52, %v5161_v41  ;;  %v1511_v41 = vsel %vm246_vm0, %v5191_v31, %v5179_v58 }
 0x5e6   :  { %v1492_v2 = vpop.permute.xlu0 %1491  ;;  %v1438_v48 = vpop.permute.xlu1 %1437 }
 0x5e7   :  { %v1460_v26 = vsel %vm209_vm1, %v1432_v29, %v1438_v48  ;;  %v1457_v59 = vsel %vm209_vm1, %v1438_v48, %v1444_v24  ;;  %v1468_v48 = vmul.f32 %v1453_v12, %v4444_v39 }
 0x5e8   :  { %v1470_v62 = vmul.f32 %v1460_v26, %v4426_v28  ;;  %v1456_v26 = vsel %vm209_vm1, %v1436_v40, %v1442_v30  ;;  %v1471_v28 = vmul.f32 %v1457_v59, %v4440_v38  ;;  %v1482_v30 = vpack.c.bf16 %v5327_v23, %v5327_v23 }
 0x5e9   :  { %v1530_v59 = vmul.f32 %v1517_v5, %v4397_v16 }
 0x5ea   :  { %v1504_v27 = vpop.permute.xlu0 %1503  ;;  %v1450_v45 = vpop.permute.xlu1 %1449  ;;  %v1478_v55 = vpack.c.bf16 %v1470_v62, %v1466_v1 }
 0x5eb   :  { %v1454_v43 = vsel %vm209_vm1, %v1444_v24, %v1450_v45  ;;  %v1463_v7 = vsel %vm209_vm1, %v1450_v45, %v1432_v29  ;;  %v1520_v24 = vsel %vm246_vm0, %v5179_v58, %v5171_v13  ;;  %v1515_v45 = vsel %vm246_vm0, %v5245_v56, %v1492_v2 }
 0x5ec   :  { %v1469_v4 = vmul.f32 %v1463_v7, %v4436_v37  ;;  %v1472_v42 = vmul.f32 %v1454_v43, %v4444_v39  ;;  %2037 = vmatprep.subr.bf16.mxu1 %v1478_v55  ;;  %v1467_v55 = vmul.f32 %v1456_v26, %v4440_v38  ;;  %v1512_v13 = vsel %vm246_vm0, %v1492_v2, %v5259_v49 }
 0x5ed   :  { %v1522_v1 = vmul.f32 %v1515_v45, %v4397_v16  ;;  %v1473_v58 = vmul.f32 %v1464_v0, %v4436_v37  ;;  %v1529_v2 = vmul.f32 %v1520_v24, %v4404_v18  ;;  %v1518_v43 = vsel %vm246_vm0, %v1504_v27, %v5245_v56 }
 0x5ee   :  { %v1477_v29 = vpack.c.bf16 %v1469_v4, %v1465_v47  ;;  %v5363_v23 = vpop.permute.xlu0 %1559  ;;  %v1494_v62 = vpop.permute.xlu1 %1493  ;;  %v1480_v12 = vpack.c.bf16 %v1472_v42, %v1468_v48  ;;  %v1479_v42 = vpack.c.bf16 %v1471_v28, %v1467_v55  ;;  %v1514_v47 = vsel %vm246_vm0, %v5181_v6, %v5191_v31 }
 0x5ef   :  { %v1513_v5 = vsel %vm246_vm0, %v1494_v62, %v5288_v14  ;;  %v1516_v4 = vsel %vm246_vm0, %v5257_v44, %v1494_v62  ;;  %v1455_v28 = vsel %vm209_vm1, %v5193_v15, %v5173_v52  ;;  %v1523_v7 = vmul.f32 %v1512_v13, %v4412_v21 }
 0x5f0   :  { %v1526_v40 = vmul.f32 %v1516_v4, %v4397_v16  ;;  %v1527_v26 = vmul.f32 %v1513_v5, %v4412_v21  ;;  %2038 = vmatpush1.bf16.msra.mxu1 %v1477_v29  ;;  %2078 = vmatprep.subr.bf16.mxu0 %v1480_v12  ;;  %v1509_v48 = vsel %vm246_vm0, %v5259_v49, %v1504_v27 }
 0x5f1   :  { %2079 = vmatpush1.bf16.msra.mxu0 %v1479_v42  ;;  %v1532_v6 = vmul.f32 %v1511_v41, %v4408_v19  ;;  %v1458_v56 = vsel %vm209_vm1, %v5159_v20, %v5193_v15  ;;  %v1538_v27 = vpack.c.bf16 %v1530_v59, %v1530_v59  ;;  %v1521_v45 = vmul.f32 %v1518_v43, %v4404_v18 }
 0x5f2   :  { %v1534_v0 = vpack.c.bf16 %v1526_v40, %v1522_v1  ;;  %v5398_v24 = vpop.permute.xlu0 %1603  ;;  %v1506_v31 = vpop.permute.xlu1 %1505  ;;  %v1535_v55 = vpack.c.bf16 %v1527_v26, %v1523_v7  ;;  %v1476_v62 = vmul.f32 %v1455_v28, %v4444_v39  ;;  %v1524_v12 = vmul.f32 %v1509_v48, %v4408_v19  ;;  %v7672_v39 = vld [vmem:[#allocation57_spill] sm:$0xff] }
 0x5f3   :  { %v1510_v52 = vsel %vm246_vm0, %v5288_v14, %v1506_v31  ;;  %v1519_v49 = vsel %vm246_vm0, %v1506_v31, %v5257_v44  ;;  %v1531_v41 = vmul.f32 %v1514_v47, %v4412_v21  ;;  %v1475_v14 = vmul.f32 %v1458_v56, %v4440_v38 }
 0x5f4   :  { %v1525_v29 = vmul.f32 %v1519_v49, %v4404_v18  ;;  %v1528_v15 = vmul.f32 %v1510_v52, %v4408_v19  ;;  %v1859_v20 = vrot.slane %v1534_v0, 4  ;;  %v1540_v59 = vpack.c.bf16 %v1532_v6, %v1532_v6 }
 0x5f5   :  { %v1481_v42 = vpack.c.bf16 %v1473_v58, %v1473_v58  ;;  %v1537_v40 = vpack.c.bf16 %v1529_v2, %v1529_v2  ;;  %v1860_v26 = vrot.slane %v1535_v55, 4  ;;  %v1864_v28 = vrot.slane %v1538_v27, 4 }
 0x5f6   :  { %v1533_v13 = vpack.c.bf16 %v1525_v29, %v1521_v45  ;;  %v5418_v5 = vpop.permute.xlu0 %1615  ;;  %v5420_v44 = vpop.permute.xlu1 %1771  ;;  %v1536_v4 = vpack.c.bf16 %v1528_v15, %v1524_v12  ;;  %v1952_v1 = vsel %vm533_vm2, %v1482_v30, %v1859_v20  ;;  %v1484_v7 = vpack.c.bf16 %v1476_v62, %v1476_v62 }
 0x5f7   :  { %2039 = vmatprep.subr.bf16.mxu1 %v1952_v1  ;;  %v1539_v47 = vpack.c.bf16 %v1531_v41, %v1531_v41  ;;  %v1483_v0 = vpack.c.bf16 %v1475_v14, %v1475_v14  ;;  %v1868_v6 = vrot.slane %v1540_v59, 4  ;;  %v1865_v58 = vsel %vm533_vm2, %v1859_v20, %v1864_v28  ;;  %v7669_v1 = vld [vmem:[#allocation13_spill] sm:$0xff] }
 0x5f8   :  { %v1858_v43 = vrot.slane %v1533_v13, 4  ;;  %v1861_v48 = vrot.slane %v1536_v4, 4  ;;  %v1693_v2 = vmul.f32 %v4803_v11, %v4526_v60  ;;  %v1862_v49 = vrot.slane %v1537_v40, 4 }
 0x5f9   :  { %v1956_v27 = vsel %vm533_vm2, %v1483_v0, %v1860_v26  ;;  %v1573_v45 = vsel %vm283_vm4, %v5201_v50, %v5199_v51  ;;  %v1866_v29 = vrot.slane %v1539_v47, 4  ;;  %v5445_v15 = vmul.f32 %v4799_v63, %v4540_v34 }
 0x5fa   :  { %v5423_v31 = vpop.permute.xlu0 %1665  ;;  %v5425_v56 = vpop.permute.xlu1 %1763  ;;  %v1948_v52 = vsel %vm533_vm2, %v1481_v42, %v1858_v43  ;;  %v1960_v30 = vsel %vm533_vm2, %v1484_v7, %v1861_v48  ;;  %v1869_v55 = vsel %vm533_vm2, %v1861_v48, %v1868_v6  ;;  %v1863_v11 = vsel %vm533_vm2, %v1858_v43, %v1862_v49  ;;  %v7662_v49 = vld [vmem:[#allocation52_spill] sm:$0xff] }
 0x5fb   :  { %2040 = vmatpush1.bf16.msra.mxu1 %v1948_v52  ;;  %2080 = vmatprep.subr.bf16.mxu0 %v1960_v30  ;;  %v1701_v20 = vpack.c.bf16 %v1693_v2, %v1693_v2  ;;  %v5448_v41 = vmul.f32 %v1573_v45, %v4494_v32  ;;  %v1867_v14 = vsel %vm533_vm2, %v1860_v26, %v1866_v29  ;;  %v7659_v52 = vld [vmem:[#allocation49_spill] sm:$0xff]  ;;  %v7661_v30 = vld [vmem:[#allocation8_spill] sm:$0xff] }
 0x5fc   :  { %2041 = vmatprep.subr.bf16.mxu1 %v1865_v58  ;;  %2081 = vmatpush1.bf16.msra.mxu0 %v1956_v27  ;;  %v1576_v13 = vsel %vm283_vm4, %v5213_v17, %v5201_v50  ;;  %v1632_v59 = vsel %vm320_vm3, %v5219_v61, %v5211_v9  ;;  %v1629_v50 = vsel %vm320_vm3, %v5211_v9, %v5221_v53  ;;  %v7663_v27 = vld [vmem:[#allocation51_spill] sm:$0xff] }
 0x5fd   :  { %2082 = vmatprep.subr.bf16.mxu0 %v1869_v55  ;;  %v5477_v28 = vrot.slane %v1701_v20, 4  ;;  %v5481_v7 = vmul.f32 %v4819_v3, %v4544_v35  ;;  %v5485_v48 = vmul.f32 %v4823_v36, %v4536_v33  ;;  %v5490_v9 = vmul.f32 %v1576_v13, %v4507_v46  ;;  %v7660_v3 = vld [vmem:[#allocation55_spill] sm:$0xff] }
 0x5fe   :  { %v5438_v62 = vpop.permute.xlu0 %1673  ;;  %v5440_v12 = vpop.permute.xlu1 %1721  ;;  %v5493_v0 = vmul.f32 %v1632_v59, %v4474_v22  ;;  %v1623_v6 = vsel %vm320_vm3, %v7659_v52, %v5219_v61  ;;  %v1565_v36 = vsel %vm283_vm4, %v7660_v3, %v5363_v23  ;;  %v5504_v58 = vmul.f32 %v1629_v50, %v7661_v30  ;;  %v7666_v13 = vld [vmem:[#allocation59_spill] sm:$0xff] }
 0x5ff   :  { %2042 = vmatpush1.bf16.msra.mxu1 %v1863_v11  ;;  %v1626_v2 = vsel %vm320_vm3, %v5221_v53, %v7659_v52  ;;  %v1571_v45 = vsel %vm283_vm4, %v7663_v27, %v7662_v49  ;;  %v1568_v61 = vsel %vm283_vm4, %v7662_v49, %v7660_v3  ;;  %v7664_v11 = vld [vmem:[#allocation50_spill] sm:$0xff] }
 0x600   :  { %2083 = vmatpush1.bf16.msra.mxu0 %v1867_v14  ;;  %v1567_v20 = vsel %vm283_vm4, %v7664_v11, %v5213_v17  ;;  %v7665_v14 = vld [vmem:[#allocation54_spill] sm:$0xff]  ;;  %v1570_v17 = vsel %vm283_vm4, %v5199_v51, %v7664_v11  ;;  %v1578_v26 = vmul.f32 %v1571_v45, %v4494_v32  ;;  %v1579_v40 = vmul.f32 %v1568_v61, %v7669_v1 }
 0x601   :  { %v1627_v53 = vsel %vm320_vm3, %v7665_v14, %v5398_v24  ;;  %v7667_v52 = vld [vmem:[#allocation10_spill] sm:$0xff] }
 0x602   :  { %v5459_v63 = vpop.permute.xlu0 %1711  ;;  %v5461_v4 = vpop.permute.xlu1 %1723  ;;  %v5532_v3 = vmul.f32 %v1623_v6, %v7667_v52  ;;  %v7668_v49 = vld [vmem:[#allocation14_spill] sm:$0xff]  ;;  %v7670_v6 = vld [vmem:[#allocation56_spill] sm:$0xff]  ;;  %v1634_v51 = vmul.f32 %v1627_v53, %v7661_v30 }
 0x603   :  { %v1580_v43 = vmul.f32 %v1565_v36, %v7668_v49  ;;  %v1624_v47 = vsel %vm320_vm3, %v5398_v24, %v7670_v6  ;;  %v1630_v36 = vsel %vm320_vm3, %v5418_v5, %v7665_v14  ;;  %v7671_v24 = vld [vmem:[#allocation61_spill] sm:$0xff] }
 0x606   :  { %v1544_v55 = vpop.permute.xlu0 %1543  ;;  %v1562_v29 = vpop.permute.xlu1 %1561 }
 0x607   :  { %v1566_v59 = vsel %vm283_vm4, %v7666_v13, %v1562_v29  ;;  %v1575_v50 = vsel %vm283_vm4, %v1562_v29, %v1544_v55  ;;  %v1574_v29 = vsel %vm283_vm4, %v5363_v23, %v7663_v27 }
 0x608   :  { %v1584_v42 = vmul.f32 %v1566_v59, %v7668_v49  ;;  %v1581_v45 = vmul.f32 %v1575_v50, %v4507_v46 }
 0x60a   :  { %v1550_v61 = vpop.permute.xlu0 %1549  ;;  %v1606_v11 = vpop.permute.xlu1 %1605  ;;  %v1592_v59 = vpack.c.bf16 %v1584_v42, %v1580_v43  ;;  %v7673_v43 = vld [vmem:[#allocation9_spill] sm:$0xff] }
 0x60b   :  { %v1569_v23 = vsel %vm283_vm4, %v1550_v61, %v7666_v13  ;;  %v1572_v27 = vsel %vm283_vm4, %v1544_v55, %v1550_v61  ;;  %v1625_v53 = vsel %vm320_vm3, %v1606_v11, %v7671_v24  ;;  %v1628_v14 = vsel %vm320_vm3, %v7672_v39, %v1606_v11 }
 0x60c   :  { %v1582_v50 = vmul.f32 %v1572_v27, %v4494_v32  ;;  %v1583_v37 = vmul.f32 %v1569_v23, %v7669_v1  ;;  %v1638_v42 = vmul.f32 %v1628_v14, %v7661_v30  ;;  %v1639_v38 = vmul.f32 %v1625_v53, %v7673_v43  ;;  %2084 = vmatprep.subr.bf16.mxu0 %v1592_v59 }
 0x60d   :  { %v1588_v13 = vmul.f32 %v1567_v20, %v7668_v49  ;;  %v1577_v55 = vmul.f32 %v1574_v29, %v4507_v46  ;;  %v1635_v61 = vmul.f32 %v1624_v47, %v7673_v43  ;;  %v1621_v11 = vsel %vm320_vm3, %v7670_v6, %v5418_v5  ;;  %v7703_v49 = vld [vmem:[#allocation42_spill] sm:$0xff] }
 0x60e   :  { %v1633_v27 = vmul.f32 %v1630_v36, %v4474_v22  ;;  %v1591_v32 = vpack.c.bf16 %v1583_v37, %v1579_v40  ;;  %v1646_v23 = vpack.c.bf16 %v1638_v42, %v1634_v51  ;;  %v5579_v19 = vpop.permute.xlu0 %1765  ;;  %v1618_v14 = vpop.permute.xlu1 %1617  ;;  %v1590_v53 = vpack.c.bf16 %v1582_v50, %v1578_v26 }
 0x60f   :  { %v1589_v59 = vpack.c.bf16 %v1581_v45, %v1577_v55  ;;  %v1647_v18 = vpack.c.bf16 %v1639_v38, %v1635_v61  ;;  %v1622_v20 = vsel %vm320_vm3, %v7671_v24, %v1618_v14  ;;  %v1631_v47 = vsel %vm320_vm3, %v1618_v14, %v7672_v39  ;;  %v7676_v55 = vld [vmem:[#allocation27_spill] sm:$0xff]  ;;  %v7678_v61 = vld [vmem:[#allocation26_spill] sm:$0xff] }
 0x610   :  { %v1636_v5 = vmul.f32 %v1621_v11, %v7667_v52  ;;  %v1637_v29 = vmul.f32 %v1631_v47, %v4474_v22  ;;  %v1640_v37 = vmul.f32 %v1622_v20, %v7667_v52  ;;  %2043 = vmatprep.subr.bf16.mxu1 %v1590_v53  ;;  %2085 = vmatpush1.bf16.msra.mxu0 %v1591_v32  ;;  %v1883_v40 = vrot.slane %v1646_v23, 4  ;;  %v7680_v20 = vld [vmem:[#allocation29_spill] sm:$0xff] }
 0x611   :  { %v1650_v26 = vpack.c.bf16 %v5504_v58, %v5504_v58  ;;  %v1643_v6 = vmul.f32 %v1626_v2, %v7673_v43  ;;  %v1587_v51 = vmul.f32 %v1570_v17, %v7669_v1  ;;  %2044 = vmatpush1.bf16.msra.mxu1 %v1589_v59  ;;  %v1652_v39 = vpack.c.bf16 %v5532_v3, %v5532_v3  ;;  %v7675_v58 = vld [vmem:[#allocation18_spill] sm:$0xff]  ;;  %v7677_v17 = vld [vmem:[#allocation20_spill] sm:$0xff]  ;;  %v7679_v59 = vld [vmem:[#allocation19_spill] sm:$0xff] }
 0x612   :  { %v1645_v36 = vpack.c.bf16 %v1637_v29, %v1633_v27  ;;  %v1648_v45 = vpack.c.bf16 %v1640_v37, %v1636_v5  ;;  %v5598_v24 = vpop.permute.xlu0 %1769  ;;  %v5600_v32 = vpop.permute.xlu1 %1773  ;;  %v7674_v50 = vpack.c.bf16 %v5448_v41, %v5448_v41  ;;  %v5608_v2 = vmul.f32 %v7676_v55, %v7675_v58 }
 0x613   :  { %v5612_v11 = vmul.f32 %v7678_v61, %v7677_v17  ;;  %v1593_v3 = vpack.c.bf16 %v5490_v9, %v5490_v9  ;;  %v1884_v27 = vrot.slane %v1647_v18, 4  ;;  %v1649_v23 = vpack.c.bf16 %v5493_v0, %v5493_v0  ;;  %v7683_v61 = vld [vmem:[#allocation58_spill] sm:$0xff] }
 0x614   :  { %v1968_v42 = vsel %vm533_vm2, %v7674_v50, %v1883_v40  ;;  %v1596_v14 = vpack.c.bf16 %v1588_v13, %v1588_v13  ;;  %v1882_v41 = vrot.slane %v1645_v36, 4  ;;  %v1885_v53 = vrot.slane %v1648_v45, 4 }
 0x615   :  { %2045 = vmatprep.subr.bf16.mxu1 %v1968_v42  ;;  %v5620_v47 = vmul.f32 %v7680_v20, %v7679_v59  ;;  %v1888_v5 = vrot.slane %v1650_v26, 4  ;;  %v1651_v29 = vpack.c.bf16 %v1643_v6, %v1643_v6  ;;  %v1595_v37 = vpack.c.bf16 %v1587_v51, %v1587_v51  ;;  %v7682_v26 = vld [vmem:[#allocation60_spill] sm:$0xff]  ;;  %v7684_v20 = vld [vmem:[#allocation21_spill] sm:$0xff] }
 0x616   :  { %v1704_v50 = vpack.c.bf16 %v5485_v48, %v5485_v48  ;;  %v1892_v55 = vrot.slane %v1652_v39, 4  ;;  %v5624_v9 = vpop.permute.xlu0 %1761  ;;  %v5626_v18 = vpop.permute.xlu1 %1727  ;;  %v1964_v0 = vsel %vm533_vm2, %v1593_v3, %v1882_v41  ;;  %v1976_v13 = vsel %vm533_vm2, %v1596_v14, %v1885_v53 }
 0x617   :  { %v7681_v36 = vpack.c.bf16 %v5445_v15, %v5445_v15  ;;  %v1681_v6 = vsel %vm361_vm5, %v7682_v26, %v5423_v31  ;;  %2046 = vmatpush1.bf16.msra.mxu1 %v1964_v0  ;;  %2086 = vmatprep.subr.bf16.mxu0 %v1976_v13  ;;  %v1889_v48 = vsel %vm533_vm2, %v1883_v40, %v1888_v5  ;;  %v1886_v42 = vrot.slane %v1649_v23, 4  ;;  %v7685_v40 = vld [vmem:[#allocation28_spill] sm:$0xff] }
 0x618   :  { %v1972_v51 = vsel %vm533_vm2, %v1595_v37, %v1884_v27  ;;  %v1679_v15 = vsel %vm361_vm5, %v5423_v31, %v7683_v61  ;;  %2047 = vmatprep.subr.bf16.mxu1 %v1889_v48  ;;  %v1893_v3 = vsel %vm533_vm2, %v1885_v53, %v1892_v55  ;;  %v5652_v5 = vmul.f32 %v7685_v40, %v7684_v20  ;;  %v7690_v37 = vld [vmem:[#allocation43_spill] sm:$0xff] }
 0x619   :  { %v5633_v45 = vrot.slane %v7681_v36, 4  ;;  %2087 = vmatpush1.bf16.msra.mxu0 %v1972_v51  ;;  %v1890_v23 = vrot.slane %v1651_v29, 4  ;;  %v1685_v0 = vmul.f32 %v1681_v6, %v4526_v60  ;;  %v1677_v31 = vsel %vm361_vm5, %v7683_v61, %v5438_v62  ;;  %v7686_v29 = vld [vmem:[#allocation63_spill] sm:$0xff]  ;;  %v7687_v51 = vld [vmem:[#allocation65_spill] sm:$0xff] }
 0x61a   :  { %2088 = vmatprep.subr.bf16.mxu0 %v1893_v3  ;;  %v1683_v53 = vsel %vm361_vm5, %v5438_v62, %v7682_v26  ;;  %v1716_v55 = vpop.permute.xlu0 %1715  ;;  %v1668_v13 = vpop.permute.xlu1 %1667  ;;  %v1887_v36 = vsel %vm533_vm2, %v1882_v41, %v1886_v42  ;;  %v1686_v48 = vmul.f32 %v1679_v15, %v4540_v34  ;;  %v5674_v40 = vrot.slane %v1704_v50, 4  ;;  %v7688_v62 = vld [vmem:[#allocation64_spill] sm:$0xff]  ;;  %v7689_v15 = vld [vmem:[#allocation47_spill] sm:$0xff]  ;;  %v7692_v50 = vld [vmem:[#allocation62_spill] sm:$0xff] }
 0x61b   :  { %v1680_v6 = vsel %vm361_vm5, %v1668_v13, %v7686_v29  ;;  %v1682_v3 = vsel %vm361_vm5, %v7687_v51, %v1668_v13  ;;  %2048 = vmatpush1.bf16.msra.mxu1 %v1887_v36  ;;  %v1891_v61 = vsel %vm533_vm2, %v1884_v27, %v1890_v23  ;;  %v1735_v41 = vsel %vm398_vm7, %v7688_v62, %v5459_v63 }
 0x61c   :  { %v1689_v26 = vmul.f32 %v1682_v3, %v4526_v60  ;;  %v1690_v42 = vmul.f32 %v1680_v6, %v4540_v34  ;;  %v7691_v39 = vpack.c.bf16 %v7689_v15, %v7690_v37  ;;  %v1687_v13 = vmul.f32 %v1677_v31, %v4544_v35  ;;  %v7693_v6 = vld [vmem:[#allocation48_spill] sm:$0xff]  ;;  %v7696_v15 = vld [vmem:[#allocation22_spill] sm:$0xff] }
 0x61d   :  { %2089 = vmatpush1.bf16.msra.mxu0 %v1891_v61  ;;  %v1688_v27 = vmul.f32 %v1683_v53, %v4536_v33  ;;  %v1732_v23 = vsel %vm398_vm7, %v5459_v63, %v7692_v50  ;;  %v1729_v36 = vsel %vm398_vm7, %v7692_v50, %v5461_v4  ;;  %v7694_v3 = vld [vmem:[#allocation44_spill] sm:$0xff]  ;;  %v1779_v37 = vsel %vm435_vm6, %v5579_v19, %v5598_v24  ;;  %v7702_v34 = vld [vmem:[#allocation46_spill] sm:$0xff] }
 0x61e   :  { %2049 = vmatprep.subr.bf16.mxu1 %v7691_v39  ;;  %v7695_v14 = vpack.c.bf16 %v7693_v6, %v7694_v3  ;;  %v1738_v39 = vsel %vm398_vm7, %v5461_v4, %v7688_v62  ;;  %v1697_v63 = vpack.c.bf16 %v1689_v26, %v1685_v0  ;;  %v1698_v31 = vpack.c.bf16 %v1690_v42, %v1686_v48  ;;  %v1710_v53 = vpop.permute.xlu0 %1709  ;;  %v1676_v61 = vpop.permute.xlu1 %1675  ;;  %v7697_v0 = vld [vmem:[#allocation45_spill] sm:$0xff]  ;;  %v7700_v42 = vld [vmem:[#allocation24_spill] sm:$0xff] }
 0x61f   :  { %v5707_v50 = vmul.f32 %v1735_v41, %v7696_v15  ;;  %v1678_v4 = vsel %vm361_vm5, %v7686_v29, %v1676_v61  ;;  %v1684_v62 = vsel %vm361_vm5, %v1676_v61, %v7687_v51  ;;  %v7698_v48 = vld [vmem:[#allocation41_spill] sm:$0xff]  ;;  %v1742_v41 = vmul.f32 %v1732_v23, %v7700_v42  ;;  %v7705_v29 = vld [vmem:[#allocation23_spill] sm:$0xff] }
 0x620   :  { %2090 = vmatprep.subr.bf16.mxu0 %v7695_v14  ;;  %v1777_v14 = vsel %vm435_vm6, %v5598_v24, %v5600_v32  ;;  %v7699_v26 = vpack.c.bf16 %v7697_v0, %v7698_v48  ;;  %v7701_v6 = vld [vmem:[#allocation25_spill] sm:$0xff]  ;;  %v1906_v38 = vrot.slane %v1697_v63, 4  ;;  %v1691_v24 = vmul.f32 %v1678_v4, %v4544_v35 }
 0x621   :  { %v5724_v3 = vmul.f32 %v1729_v36, %v7701_v6  ;;  %v7704_v46 = vpack.c.bf16 %v7702_v34, %v7703_v49  ;;  %v5731_v1 = vmul.f32 %v1738_v39, %v7705_v29  ;;  %v1786_v51 = vmul.f32 %v1779_v37, %v7677_v17 }
 0x622   :  { %2050 = vmatpush1.bf16.msra.mxu1 %v7699_v26  ;;  %v1692_v61 = vmul.f32 %v1684_v62, %v4536_v33  ;;  %v1907_v0 = vrot.slane %v1698_v31, 4  ;;  %v5736_v23 = vmul.f32 %v1777_v14, %v7684_v20  ;;  %v1734_v36 = vsel %vm398_vm7, %v1716_v55, %v5440_v12  ;;  %v5741_v4 = vpop.permute.xlu0 %1809  ;;  %v1714_v34 = vpop.permute.xlu1 %1713  ;;  %v7707_v31 = vld [vmem:[#allocation66_spill] sm:$0xff]  ;;  %v7709_v26 = vld [vmem:[#allocation67_spill] sm:$0xff] }
 0x623   :  { %2091 = vmatpush1.bf16.msra.mxu0 %v7704_v46  ;;  %v1699_v63 = vpack.c.bf16 %v1691_v24, %v1687_v13  ;;  %v7706_v46 = vpack.c.bf16 %v4725_v57, %v4725_v57  ;;  %v1737_v39 = vsel %vm398_vm7, %v1710_v53, %v1716_v55  ;;  %v1733_v14 = vsel %vm398_vm7, %v1714_v34, %v7707_v31 }
 0x624   :  { %v1700_v37 = vpack.c.bf16 %v1692_v61, %v1688_v27  ;;  %v7708_v62 = vpack.c.bf16 %v4743_v25, %v4743_v25  ;;  %v1781_v57 = vsel %vm435_vm6, %v5624_v9, %v5579_v19  ;;  %v1736_v55 = vsel %vm398_vm7, %v7709_v26, %v1714_v34 }
 0x625   :  { %v1980_v49 = vsel %vm533_vm2, %v7706_v46, %v1906_v38  ;;  %v1908_v48 = vrot.slane %v1699_v63, 4  ;;  %v1746_v27 = vmul.f32 %v1733_v14, %v7700_v42  ;;  %v1783_v25 = vsel %vm435_vm6, %v5600_v32, %v5624_v9 }
 0x626   :  { %v1984_v13 = vsel %vm533_vm2, %v7708_v62, %v1907_v0  ;;  %v1750_v24 = vmul.f32 %v1734_v36, %v7700_v42  ;;  %v1913_v61 = vsel %vm533_vm2, %v1907_v0, %v5633_v45  ;;  %v1909_v19 = vrot.slane %v1700_v37, 4  ;;  %v5776_v46 = vpop.permute.xlu0 %1813  ;;  %v1768_v14 = vpop.permute.xlu1 %1767 }
 0x627   :  { %2051 = vmatprep.subr.bf16.mxu1 %v1984_v13  ;;  %v1731_v63 = vsel %vm398_vm7, %v5440_v12, %v5626_v18  ;;  %v1749_v34 = vmul.f32 %v1737_v39, %v7696_v15  ;;  %v7710_v32 = vpack.c.bf16 %v4723_v54, %v4723_v54  ;;  %v1754_v36 = vpack.c.bf16 %v1746_v27, %v1742_v41 }
 0x628   :  { %2052 = vmatpush1.bf16.msra.mxu1 %v1980_v49  ;;  %v1745_v45 = vmul.f32 %v1736_v55, %v7696_v15  ;;  %v1780_v0 = vsel %vm435_vm6, %v1768_v14, %v5420_v44  ;;  %v1782_v12 = vsel %vm435_vm6, %v5425_v56, %v1768_v14  ;;  %v7711_v49 = vpack.c.bf16 %v4761_v10, %v4761_v10 }
 0x629   :  { %2053 = vmatprep.subr.bf16.mxu1 %v1913_v61  ;;  %v1988_v9 = vsel %vm533_vm2, %v7710_v32, %v1908_v48  ;;  %v1785_v54 = vmul.f32 %v1781_v57, %v7675_v58  ;;  %v1789_v37 = vmul.f32 %v1782_v12, %v7675_v58  ;;  %v1790_v41 = vmul.f32 %v1780_v0, %v7677_v17 }
 0x62a   :  { %v1992_v39 = vsel %vm533_vm2, %v7711_v49, %v1909_v19  ;;  %v1911_v62 = vsel %vm533_vm2, %v1906_v38, %v5477_v28  ;;  %v7712_v13 = vpack.c.bf16 %v5481_v7, %v5481_v7  ;;  %v1758_v27 = vpack.c.bf16 %v1750_v24, %v1750_v24  ;;  %v1726_v28 = vpop.permute.xlu0 %1725  ;;  %v5806_v38 = vpop.permute.xlu1 %1815 }
 0x62b   :  { %2092 = vmatprep.subr.bf16.mxu0 %v1992_v39  ;;  %v1740_v10 = vsel %vm398_vm7, %v5626_v18, %v1710_v53  ;;  %v1917_v57 = vsel %vm533_vm2, %v1909_v19, %v5674_v40  ;;  %v1757_v61 = vpack.c.bf16 %v1749_v34, %v1749_v34  ;;  %v1797_v14 = vpack.c.bf16 %v1789_v37, %v1785_v54  ;;  %v5844_v54 = vld [vmem:[%s7579_s3 + $0x28] ss:$0 sm:$0xff] }
 0x62c   :  { %v1914_v55 = vrot.slane %v7712_v13, 4  ;;  %2054 = vmatpush1.bf16.msra.mxu1 %v1911_v62  ;;  %2093 = vmatpush1.bf16.msra.mxu0 %v1988_v9  ;;  %v1798_v32 = vpack.c.bf16 %v1790_v41, %v1786_v51  ;;  %v1753_v7 = vpack.c.bf16 %v1745_v45, %v5707_v50  ;;  %v1730_v24 = vsel %vm398_vm7, %v7707_v31, %v1726_v28  ;;  %v5856_v13 = vld [vmem:[%s7579_s3 + $0x20] ss:$0 sm:$0xff] }
 0x62d   :  { %2055 = vmatprep.subr.bf16.mxu1 %v1754_v36  ;;  %2094 = vmatprep.subr.bf16.mxu0 %v1917_v57  ;;  %v1739_v18 = vsel %vm398_vm7, %v1726_v28, %v7709_v26  ;;  %v1930_v53 = vrot.slane %v1797_v14, 4  ;;  %v1747_v51 = vmul.f32 %v1730_v24, %v7701_v6  ;;  %v7713_v9 = vpack.c.bf16 %v5612_v11, %v5612_v11 }
 0x62e   :  { %v1915_v40 = vsel %vm533_vm2, %v1908_v48, %v1914_v55  ;;  %v1748_v19 = vmul.f32 %v1739_v18, %v7705_v29  ;;  %v1931_v34 = vrot.slane %v1798_v32, 4  ;;  %v1788_v36 = vmul.f32 %v1783_v25, %v7679_v59  ;;  %v1776_v45 = vpop.permute.xlu0 %1775  ;;  %v1812_v0 = vpop.permute.xlu1 %1811  ;;  %v7715_v55 = vld [vmem:[#allocation31_spill] sm:$0xff] }
 0x62f   :  { %v1936_v50 = vrot.slane %v7713_v9, 4  ;;  %v1751_v31 = vmul.f32 %v1731_v63, %v7701_v6  ;;  %v1823_v26 = vsel %vm472_vm8, %v5741_v4, %v5776_v46  ;;  %v1755_v48 = vpack.c.bf16 %v1747_v51, %v5724_v3 }
 0x630   :  { %2056 = vmatpush1.bf16.msra.mxu1 %v1753_v7  ;;  %2095 = vmatpush1.bf16.msra.mxu0 %v1915_v40  ;;  %v2000_v12 = vsel %vm533_vm2, %v1758_v27, %v1931_v34  ;;  %v1996_v11 = vsel %vm533_vm2, %v1757_v61, %v1930_v53  ;;  %v1756_v49 = vpack.c.bf16 %v1748_v19, %v5731_v1 }
 0x631   :  { %v1752_v25 = vmul.f32 %v1740_v10, %v7705_v29  ;;  %v1778_v63 = vsel %vm435_vm6, %v5420_v44, %v1776_v45  ;;  %v1784_v39 = vsel %vm435_vm6, %v1776_v45, %v5425_v56  ;;  %v1824_v3 = vsel %vm472_vm8, %v1812_v0, %v5806_v38  ;;  %2057 = vmatprep.subr.bf16.mxu1 %v2000_v12  ;;  %v7716_v10 = vld [vmem:[#allocation30_spill] sm:$0xff] }
 0x632   :  { %v1830_v1 = vmul.f32 %v5844_v54, %v1823_v26  ;;  %v1791_v37 = vmul.f32 %v1778_v63, %v7684_v20  ;;  %v1792_v44 = vmul.f32 %v1784_v39, %v7679_v59  ;;  %v1834_v41 = vmul.f32 %v5844_v54, %v1824_v3  ;;  %2096 = vmatprep.subr.bf16.mxu0 %v1756_v49  ;;  %v1806_v28 = vpop.permute.xlu0 %1805  ;;  %v1808_v7 = vpop.permute.xlu1 %1807  ;;  %v5892_v63 = vld [vmem:[%s7579_s3 + $0x38] ss:$0 sm:$0xff] }
 0x633   :  { %v7714_v56 = vpack.c.bf16 %v5608_v2, %v5608_v2  ;;  %v1837_v27 = vmul.f32 %v5856_v13, %v7715_v55  ;;  %v1838_v57 = vmul.f32 %v5844_v54, %v7716_v10  ;;  %v1937_v61 = vsel %vm533_vm2, %v1931_v34, %v1936_v50  ;;  %v7719_v55 = vld [vmem:[#allocation33_spill] sm:$0xff] }
 0x634   :  { %2058 = vmatpush1.bf16.msra.mxu1 %v1996_v11  ;;  %2097 = vmatpush1.bf16.msra.mxu0 %v1755_v48  ;;  %v1759_v14 = vpack.c.bf16 %v1751_v31, %v1751_v31  ;;  %v1799_v32 = vpack.c.bf16 %v1791_v37, %v5736_v23  ;;  %v1800_v2 = vpack.c.bf16 %v1792_v44, %v1788_v36 }
 0x635   :  { %v1934_v62 = vrot.slane %v7714_v56, 4  ;;  %2059 = vmatprep.subr.bf16.mxu1 %v1937_v61  ;;  %v1842_v24 = vpack.c.bf16 %v1834_v41, %v1830_v1  ;;  %v1760_v18 = vpack.c.bf16 %v1752_v25, %v1752_v25  ;;  %v1825_v40 = vsel %vm472_vm8, %v1806_v28, %v5741_v4  ;;  %v7718_v56 = vld [vmem:[#allocation32_spill] sm:$0xff]  ;;  %v7720_v61 = vld [vmem:[#allocation53_spill] sm:$0xff] }
 0x636   :  { %v1826_v51 = vsel %vm472_vm8, %v1808_v7, %v1812_v0  ;;  %v1932_v34 = vrot.slane %v1799_v32, 4  ;;  %v1829_v9 = vmul.f32 %v5856_v13, %v1825_v40  ;;  %v1933_v50 = vrot.slane %v1800_v2, 4  ;;  %v1818_v45 = vpop.permute.xlu0 %1817  ;;  %v1820_v0 = vpop.permute.xlu1 %1819 }
 0x637   :  { %v1935_v19 = vsel %vm533_vm2, %v1930_v53, %v1934_v62  ;;  %v1833_v23 = vmul.f32 %v5856_v13, %v1826_v51  ;;  %v1803_v36 = vpack.c.bf16 %v5652_v5, %v5652_v5  ;;  %v7717_v31 = vpack.c.bf16 %v5620_v47, %v5620_v47 }
 0x638   :  { %2060 = vmatpush1.bf16.msra.mxu1 %v1935_v19  ;;  %v1845_v4 = vpack.c.bf16 %v1837_v27, %v1837_v27  ;;  %v2008_v53 = vsel %vm533_vm2, %v1760_v18, %v1933_v50  ;;  %v2004_v12 = vsel %vm533_vm2, %v1759_v14, %v1932_v34  ;;  %v1821_v11 = vsel %vm472_vm8, %v5776_v46, %v1818_v45 }
 0x639   :  { %v1940_v26 = vrot.slane %v7717_v31, 4  ;;  %v1841_v48 = vpack.c.bf16 %v1833_v23, %v1829_v9  ;;  %2061 = vmatprep.subr.bf16.mxu1 %v1842_v24  ;;  %v1827_v5 = vsel %vm472_vm8, %v1818_v45, %v1806_v28  ;;  %v1822_v47 = vsel %vm472_vm8, %v5806_v38, %v1820_v0  ;;  %2098 = vmatprep.subr.bf16.mxu0 %v2008_v53  ;;  %v5900_v38 = vld [vmem:[%s7579_s3 + $0x30] ss:$0 sm:$0xff] }
 0x63a   :  { %v1828_v49 = vsel %vm472_vm8, %v1820_v0, %v1808_v7  ;;  %v1846_v25 = vpack.c.bf16 %v1838_v57, %v1838_v57  ;;  %v1832_v39 = vmul.f32 %v5892_v63, %v1827_v5  ;;  %2099 = vmatpush1.bf16.msra.mxu0 %v2004_v12  ;;  %v1938_v1 = vrot.slane %v1803_v36, 4  ;;  %v183_v12 = vld [vmem:[%s7389_s11] sm:$0xf] }
 0x63b   :  { %v1836_v46 = vmul.f32 %v5892_v63, %v1828_v49  ;;  %v1941_v3 = vsel %vm533_vm2, %v1933_v50, %v1940_v26  ;;  %v1831_v37 = vmul.f32 %v5900_v38, %v1821_v11  ;;  %v1835_v44 = vmul.f32 %v5900_v38, %v1822_v47 }
 0x63c   :  { %2062 = vmatpush1.bf16.msra.mxu1 %v1841_v48  ;;  %2100 = vmatprep.subr.bf16.mxu0 %v1941_v3  ;;  %v1839_v62 = vmul.f32 %v5900_v38, %v7718_v56  ;;  %v1840_v27 = vmul.f32 %v5892_v63, %v7719_v55  ;;  %v1939_v10 = vsel %vm533_vm2, %v1932_v34, %v1938_v1  ;;  %v2026_v57 = vsel %vm533_vm2, %v1845_v4, 0 }
 0x63d   :  { %3819 = vmatprep.subr.msk.bf16.mxu1 %vm533_vm2, %v1846_v25  ;;  %v1844_v41 = vpack.c.bf16 %v1836_v46, %v1832_v39  ;;  %v3817_v14 = vcombine.low %v7720_v61, %v7720_v61  ;;  %v1843_v32 = vpack.c.bf16 %v1835_v44, %v1831_v37  ;;  %v7721_v7 = vmov 0  }
 0x63e   :  { %2101 = vmatpush1.bf16.msra.mxu0 %v1939_v10  ;;  %v1847_v2 = vpack.c.bf16 %v1839_v62, %v1839_v62  ;;  %v1848_v28 = vpack.c.bf16 %v1840_v27, %v1840_v27 }
 0x63f   :  { %2102 = vmatprep.subr.bf16.mxu0 %v1844_v41 }
 0x640   :  { %2064 = vmatpush1.bf16.msra.mxu1 %v2026_v57  ;;  %v2032_v24 = vsel %vm533_vm2, %v1847_v2, 0 }
 0x642   :  { %2103 = vmatpush1.bf16.msra.mxu0 %v1843_v32  ;;  %v186_v32 = vld [vmem:[%s7390_s14] sm:$0xff] }
 0x643   :  { %2070 = vmatmul.mubr.bf16.vlgmr.msra.gmra.mrb[12].mxu1 %v3817_v14  ;;  %3821 = vmatprep.subr.msk.bf16.mxu0 %vm533_vm2, %v1848_v28 }
 0x644   :  { %2180 = vmatprep.mubr.bf16.mxu1 %v7721_v7 }
 0x646   :  { %2105 = vmatpush1.bf16.msra.mxu0 %v2032_v24 }
 0x647   :  { %v2013_v18 = vpop.permute.xlu0 %2012  ;;  %v2130_v3 = vpop.permute.xlu1 %2129 }
 0x649   :  { %2111 = vmatmul.mubr.bf16.vlgmr.msra.gmra.mrb[16].mxu0 %v3817_v14 }
 0x64a   :  { %2583 = vmatprep.mubr.bf16.mxu0 %v7721_v7 }
 0x716   :  { %v2071_v40 = vpop.f32.mrb[12].mxu1 }
 0x717   :  { %v2072_v51 = vadd.f32 %v2071_v40, %v2013_v18  ;;  %v2073_v19 = vpop.f32.mrb[13].mxu1 }
 0x718   :  { %v2074_v34 = vadd.f32 %v2073_v19, %v2013_v18  ;;  %v2075_v9 = vpop.f32.mrb[14].mxu1 }
 0x719   :  { %v2119_v23 = vmax.f32 %v2072_v51, 0.0  ;;  %v2076_v50 = vpop.f32.mrb[15].mxu1  ;;  %v7722_v9 = vld [vmem:[#allocation4_spill] sm:$0xff] }
 0x71a   :  { %v2120_v36 = vmax.f32 %v2074_v34, 0.0 }
 0x71b   :  { %v2123_v31 = vpack.c.bf16 %v2119_v23, %v2119_v23 }
 0x71c   :  { %v2124_v26 = vpack.c.bf16 %v2120_v36, %v2120_v36  ;;  %v2112_v4 = vpop.f32.mrb[16].mxu0 }
 0x71d   :  { %v2137_v48 = vsel %vm533_vm2, %v2123_v31, 0  ;;  %v2113_v45 = vadd.f32 %v2112_v4, %v2013_v18  ;;  %v2114_v0 = vpop.f32.mrb[17].mxu0 }
 0x71e   :  { %3823 = vmatprep.subr.msk.bf16.mxu1 %vm533_vm2, %v2124_v26  ;;  %v2115_v53 = vadd.f32 %v2114_v0, %v2013_v18  ;;  %v2116_v11 = vpop.f32.mrb[18].mxu0 }
 0x71f   :  { %2149 = vmatpush1.bf16.msra.mxu1 %v2137_v48  ;;  %v2121_v5 = vmax.f32 %v2113_v45, 0.0  ;;  %v2117_v47 = vpop.f32.mrb[19].mxu0 }
 0x720   :  { %v2122_v49 = vmax.f32 %v2115_v53, 0.0 }
 0x721   :  { %v2125_v25 = vpack.c.bf16 %v2121_v5, %v2121_v5 }
 0x722   :  { %3824 = vmatmul.mubr.msk.bf16.vlgmr.msra.gmra.mrb[16].mxu1 %vm2132_vm12, %v183_v12  ;;  %v2126_v39 = vpack.c.bf16 %v2122_v49, %v2122_v49 }
 0x723   :  { %2221 = vmatprep.mubr.bf16.mxu1 %v7721_v7  ;;  %v2143_v46 = vsel %vm533_vm2, %v2125_v25, 0 }
 0x724   :  { %3825 = vmatprep.subr.msk.bf16.mxu1 %vm533_vm2, %v2126_v39 }
 0x725   :  { %2190 = vmatpush1.bf16.msra.mxu1 %v2143_v46 }
 0x72a   :  { %3826 = vmatmul.mubr.msk.bf16.vlgmr.msra.gmra.mrb[20].mxu1 %vm2132_vm12, %v183_v12 }
 0x72b   :  { %2542 = vmatprep.mubr.bf16.mxu1 %v7721_v7 }
 0x7f5   :  { %v2182_v1 = vpop.f32.mrb[16].mxu1 }
 0x7f6   :  { %v5928_v37 = vadd.f32 %v2182_v1, %v2130_v3  ;;  %v2184_v44 = vpop.f32.mrb[17].mxu1 }
 0x7f7   :  { %v5930_v41 = vadd.f32 %v2184_v44, %v2130_v3  ;;  %v2186_v56 = vpop.f32.mrb[18].mxu1 }
 0x7f8   :  { %v2187_v62 = vpop.f32.mrb[19].mxu1  ;;  %2250 = vrot.lane.b32.xlu0 %v5928_v37, %s7618_s29 }
 0x7f9   :  { %2252 = vrot.lane.b32.xlu1 %v5930_v41, %s7618_s29 }
 0x7fc   :  { %2230 = vrot.lane.b32.xlu0 %v5928_v37, %s7617_s8 }
 0x7fd   :  { %v2223_v55 = vpop.f32.mrb[20].mxu1  ;;  %2232 = vrot.lane.b32.xlu1 %v5930_v41, %s7617_s8 }
 0x7fe   :  { %v2225_v27 = vpop.f32.mrb[21].mxu1  ;;  %v5960_v61 = vadd.f32 %v2223_v55, %v2130_v3 }
 0x7ff   :  { %v2227_v10 = vpop.f32.mrb[22].mxu1  ;;  %v5962_v14 = vadd.f32 %v2225_v27, %v2130_v3  ;;  %v7723_v27 = vld [vmem:[#allocation2_spill] sm:$0xff] }
 0x800   :  { %2290 = vrot.lane.b32.xlu0 %v5928_v37, %s7615_s1  ;;  %v2228_v57 = vpop.f32.mrb[23].mxu1 }
 0x801   :  { %2292 = vrot.lane.b32.xlu1 %v5930_v41, %s7615_s1  ;;  %v7724_v57 = vld [vmem:[#allocation3_spill] sm:$0xff] }
 0x804   :  { %2270 = vrot.lane.b32.xlu0 %v5928_v37, %s7619_s23 }
 0x805   :  { %2272 = vrot.lane.b32.xlu1 %v5930_v41, %s7619_s23 }
 0x808   :  { %2314 = vrot.lane.b32.xlu0 %v5928_v37, %s7636_s25 }
 0x809   :  { %2316 = vrot.lane.b32.xlu1 %v5930_v41, %s7636_s25 }
 0x80c   :  { %2354 = vrot.lane.b32.xlu0 %v5928_v37, %s7638_s21 }
 0x80d   :  { %2356 = vrot.lane.b32.xlu1 %v5930_v41, %s7638_s21 }
 0x810   :  { %2334 = vrot.lane.b32.xlu0 %v5928_v37, %s7637_s7 }
 0x811   :  { %2336 = vrot.lane.b32.xlu1 %v5930_v41, %s7637_s7 }
 0x814   :  { %2254 = vrot.lane.b32.xlu0 %v5960_v61, %s7618_s29 }
 0x815   :  { %2256 = vrot.lane.b32.xlu1 %v5962_v14, %s7618_s29 }
 0x818   :  { %2234 = vrot.lane.b32.xlu0 %v5960_v61, %s7617_s8 }
 0x819   :  { %2236 = vrot.lane.b32.xlu1 %v5962_v14, %s7617_s8 }
 0x81c   :  { %2294 = vrot.lane.b32.xlu0 %v5960_v61, %s7615_s1 }
 0x81d   :  { %2296 = vrot.lane.b32.xlu1 %v5962_v14, %s7615_s1 }
 0x820   :  { %2274 = vrot.lane.b32.xlu0 %v5960_v61, %s7619_s23 }
 0x821   :  { %2276 = vrot.lane.b32.xlu1 %v5962_v14, %s7619_s23 }
 0x824   :  { %2318 = vrot.lane.b32.xlu0 %v5960_v61, %s7636_s25 }
 0x825   :  { %2320 = vrot.lane.b32.xlu1 %v5962_v14, %s7636_s25 }
 0x828   :  { %2358 = vrot.lane.b32.xlu0 %v5960_v61, %s7638_s21 }
 0x829   :  { %2360 = vrot.lane.b32.xlu1 %v5962_v14, %s7638_s21 }
 0x82c   :  { %2338 = vrot.lane.b32.xlu0 %v5960_v61, %s7637_s7 }
 0x82d   :  { %2340 = vrot.lane.b32.xlu1 %v5962_v14, %s7637_s7 }
 0x830   :  { %2374 = vrot.lane.b32.xlu0 %v5928_v37, %s7641_s6 }
 0x831   :  { %2376 = vrot.lane.b32.xlu1 %v5930_v41, %s7641_s6 }
 0x834   :  { %2378 = vrot.lane.b32.xlu0 %v5960_v61, %s7641_s6 }
 0x835   :  { %2380 = vrot.lane.b32.xlu1 %v5962_v14, %s7641_s6 }
 0x838   :  { %2492 = vperm.xlu0 %3988, %v186_v32  }
 0x86a   :  { %v2251_v2 = vpop.permute.xlu0 %2250 }
 0x86b   :  { %v2253_v28 = vpop.permute.xlu1 %2252 }
 0x86c   :  { %v2260_v24 = vsel %vm246_vm0, %v2251_v2, %v2253_v28 }
 0x86d   :  { %v2263_v18 = vmul.f32 %v2260_v24, %v4397_v16  ;;  %v7725_v24 = vld [vmem:[#allocation11_spill] sm:$0xff] }
 0x86e   :  { %v2231_v40 = vpop.permute.xlu0 %2230 }
 0x86f   :  { %v2267_v51 = vpack.c.bf16 %v2263_v18, %v2263_v18  ;;  %v2233_v19 = vpop.permute.xlu1 %2232 }
 0x870   :  { %v2240_v34 = vsel %vm209_vm1, %v2231_v40, %v2233_v19 }
 0x871   :  { %v2243_v23 = vmul.f32 %v2240_v34, %v7722_v9  ;;  %v2399_v36 = vrot.slane %v2267_v51, 4 }
 0x872   :  { %v2291_v50 = vpop.permute.xlu0 %2290 }
 0x873   :  { %v2247_v31 = vpack.c.bf16 %v2243_v23, %v2243_v23  ;;  %v2293_v26 = vpop.permute.xlu1 %2292 }
 0x874   :  { %v2300_v5 = vsel %vm320_vm3, %v2291_v50, %v2293_v26 }
 0x875   :  { %v2432_v4 = vsel %vm533_vm2, %v2247_v31, %v2399_v36  ;;  %v2303_v25 = vmul.f32 %v2300_v5, %v7661_v30  ;;  %v7726_v5 = vld [vmem:[#allocation6_spill] sm:$0xff] }
 0x876   :  { %2510 = vmatprep.subr.bf16.mxu1 %v2432_v4  ;;  %v6010_v48 = vpop.permute.xlu0 %2270 }
 0x877   :  { %v2273_v45 = vpop.permute.xlu1 %2272  ;;  %v2307_v55 = vpack.c.bf16 %v2303_v25, %v2303_v25 }
 0x878   :  { %v2280_v46 = vsel %vm283_vm4, %v6010_v48, %v2273_v45 }
 0x879   :  { %v2283_v18 = vmul.f32 %v2280_v46, %v7725_v24 }
 0x87a   :  { %v6012_v0 = vpop.permute.xlu0 %2314 }
 0x87b   :  { %v6014_v53 = vpop.permute.xlu1 %2316 }
 0x87c   :  { %v2324_v34 = vsel %vm361_vm5, %v6012_v0, %v6014_v53 }
 0x87e   :  { %v6016_v12 = vpop.permute.xlu0 %2354 }
 0x87f   :  { %v6018_v11 = vpop.permute.xlu1 %2356 }
 0x882   :  { %v6022_v47 = vpop.permute.xlu0 %2334 }
 0x883   :  { %v6024_v49 = vpop.permute.xlu1 %2336 }
 0x886   :  { %v2255_v39 = vpop.permute.xlu0 %2254 }
 0x887   :  { %v2259_v3 = vsel %vm246_vm0, %v2253_v28, %v2255_v39  ;;  %v2257_v1 = vpop.permute.xlu1 %2256 }
 0x888   :  { %v2264_v44 = vmul.f32 %v2259_v3, %v4412_v21  ;;  %v2258_v56 = vsel %vm246_vm0, %v2255_v39, %v2257_v1  ;;  %v2261_v62 = vsel %vm246_vm0, %v2257_v1, %v2251_v2  ;;  %v2407_v3 = vrot.slane %v2307_v55, 4  ;;  %v7727_v1 = vld [vmem:[#allocation5_spill] sm:$0xff] }
 0x889   :  { %v2262_v10 = vmul.f32 %v2261_v62, %v7723_v27  ;;  %v2265_v32 = vmul.f32 %v2258_v56, %v7724_v57  ;;  %v7728_v62 = vld [vmem:[#allocation7_spill] sm:$0xff] }
 0x88a   :  { %v2235_v51 = vpop.permute.xlu0 %2234  ;;  %v2268_v4 = vpack.c.bf16 %v2264_v44, %v2264_v44 }
 0x88b   :  { %v2266_v23 = vpack.c.bf16 %v2262_v10, %v2262_v10  ;;  %v2269_v36 = vpack.c.bf16 %v2265_v32, %v2265_v32  ;;  %v2239_v2 = vsel %vm209_vm1, %v2233_v19, %v2235_v51  ;;  %v2237_v31 = vpop.permute.xlu1 %2236  ;;  %v2311_v10 = vpack.c.bf16 %v5930_v41, %v5930_v41 }
 0x88c   :  { %v2244_v25 = vmul.f32 %v2239_v2, %v7726_v5  ;;  %v2238_v39 = vsel %vm209_vm1, %v2235_v51, %v2237_v31  ;;  %v2241_v46 = vsel %vm209_vm1, %v2237_v31, %v2231_v40  ;;  %v2287_v32 = vpack.c.bf16 %v2283_v18, %v2283_v18 }
 0x88d   :  { %v2242_v56 = vmul.f32 %v2241_v46, %v7727_v1  ;;  %v2245_v28 = vmul.f32 %v2238_v39, %v7728_v62  ;;  %v2326_v19 = vmul.f32 %v2324_v34, %v4526_v60  ;;  %v2398_v44 = vrot.slane %v2266_v23, 4 }
 0x88e   :  { %v2248_v24 = vpack.c.bf16 %v2244_v25, %v2244_v25  ;;  %v2295_v2 = vpop.permute.xlu0 %2294  ;;  %v2401_v30 = vrot.slane %v2269_v36, 4  ;;  %v2400_v31 = vrot.slane %v2268_v4, 4  ;;  %v2448_v25 = vsel %vm533_vm2, %v2287_v32, %v2407_v3  ;;  %v7730_v32 = vld [vmem:[#allocation12_spill] sm:$0xff] }
 0x88f   :  { %v2246_v27 = vpack.c.bf16 %v2242_v56, %v2242_v56  ;;  %v2249_v51 = vpack.c.bf16 %v2245_v28, %v2245_v28  ;;  %v2299_v40 = vsel %vm320_vm3, %v2293_v26, %v2295_v2  ;;  %v2297_v55 = vpop.permute.xlu1 %2296  ;;  %v2364_v26 = vsel %vm435_vm6, %v6016_v12, %v6018_v11 }
 0x890   :  { %v2304_v46 = vmul.f32 %v2299_v40, %v7673_v43  ;;  %v2298_v39 = vsel %vm320_vm3, %v2295_v2, %v2297_v55  ;;  %v2301_v18 = vsel %vm320_vm3, %v2297_v55, %v2291_v50  ;;  %v2436_v50 = vsel %vm533_vm2, %v2248_v24, %v2400_v31  ;;  %v7731_v31 = vld [vmem:[#allocation14_spill] sm:$0xff] }
 0x891   :  { %v2302_v34 = vmul.f32 %v2301_v18, %v4474_v22  ;;  %v2305_v23 = vmul.f32 %v2298_v39, %v7667_v52  ;;  %v2428_v36 = vsel %vm533_vm2, %v2246_v27, %v2398_v44  ;;  %v2440_v28 = vsel %vm533_vm2, %v2249_v51, %v2401_v30  ;;  %v7729_v44 = vld [vmem:[#allocation13_spill] sm:$0xff] }
 0x892   :  { %2511 = vmatpush1.bf16.msra.mxu1 %v2428_v36  ;;  %2551 = vmatprep.subr.bf16.mxu0 %v2440_v28  ;;  %v2275_v4 = vpop.permute.xlu0 %2274  ;;  %v2308_v30 = vpack.c.bf16 %v2304_v46, %v2304_v46  ;;  %v2312_v18 = vpack.c.bf16 %v5960_v61, %v5960_v61  ;;  %v2330_v46 = vpack.c.bf16 %v2326_v19, %v2326_v19 }
 0x893   :  { %v2306_v56 = vpack.c.bf16 %v2302_v34, %v2302_v34  ;;  %v2309_v2 = vpack.c.bf16 %v2305_v23, %v2305_v23  ;;  %v2279_v40 = vsel %vm283_vm4, %v2273_v45, %v2275_v4  ;;  %v2277_v27 = vpop.permute.xlu1 %2276  ;;  %2512 = vmatprep.subr.bf16.mxu1 %v2448_v25  ;;  %2552 = vmatpush1.bf16.msra.mxu0 %v2436_v50 }
 0x894   :  { %v2284_v51 = vmul.f32 %v2279_v40, %v7729_v44  ;;  %v2278_v55 = vsel %vm283_vm4, %v2275_v4, %v2277_v27  ;;  %v2281_v3 = vsel %vm283_vm4, %v2277_v27, %v6010_v48  ;;  %v2313_v45 = vpack.c.bf16 %v5962_v14, %v5962_v14 }
 0x895   :  { %v2282_v24 = vmul.f32 %v2281_v3, %v7730_v32  ;;  %v2285_v39 = vmul.f32 %v2278_v55, %v7731_v31  ;;  %v2366_v34 = vmul.f32 %v2364_v26, %v7675_v58  ;;  %v2406_v23 = vrot.slane %v2306_v56, 4  ;;  %v7732_v55 = vld [vmem:[#allocation16_spill] sm:$0xff] }
 0x896   :  { %v2288_v36 = vpack.c.bf16 %v2284_v51, %v2284_v51  ;;  %v2319_v28 = vpop.permute.xlu0 %2318  ;;  %v2409_v4 = vrot.slane %v2309_v2, 4  ;;  %v2408_v27 = vrot.slane %v2308_v30, 4  ;;  %v2344_v30 = vsel %vm398_vm7, %v6022_v47, %v6024_v49 }
 0x897   :  { %v2286_v25 = vpack.c.bf16 %v2282_v24, %v2282_v24  ;;  %v2289_v50 = vpack.c.bf16 %v2285_v39, %v2285_v39  ;;  %v2323_v48 = vsel %vm361_vm5, %v6014_v53, %v2319_v28  ;;  %v2321_v40 = vpop.permute.xlu1 %2320  ;;  %v2414_v53 = vrot.slane %v2330_v46, 4 }
 0x898   :  { %v2327_v14 = vmul.f32 %v2323_v48, %v7732_v55  ;;  %v2322_v3 = vsel %vm361_vm5, %v2319_v28, %v2321_v40  ;;  %v2325_v19 = vsel %vm361_vm5, %v2321_v40, %v6012_v0  ;;  %v2452_v0 = vsel %vm533_vm2, %v2288_v36, %v2408_v27 }
 0x899   :  { %v2328_v26 = vmul.f32 %v2322_v3, %v4544_v35  ;;  %v2329_v56 = vmul.f32 %v2325_v19, %v4536_v33  ;;  %v2444_v2 = vsel %vm533_vm2, %v2286_v25, %v2406_v23  ;;  %v2456_v51 = vsel %vm533_vm2, %v2289_v50, %v2409_v4 }
 0x89a   :  { %v2331_v24 = vpack.c.bf16 %v2327_v14, %v2327_v14  ;;  %2513 = vmatpush1.bf16.msra.mxu1 %v2444_v2  ;;  %2553 = vmatprep.subr.bf16.mxu0 %v2456_v51  ;;  %v2359_v39 = vpop.permute.xlu0 %2358  ;;  %v2370_v28 = vpack.c.bf16 %v2366_v34, %v2366_v34  ;;  %v2346_v34 = vmul.f32 %v2344_v30, %v7696_v15 }
 0x89b   :  { %v2332_v48 = vpack.c.bf16 %v2328_v26, %v2328_v26  ;;  %v2333_v40 = vpack.c.bf16 %v2329_v56, %v2329_v56  ;;  %v2363_v23 = vsel %vm435_vm6, %v6018_v11, %v2359_v39  ;;  %v2361_v4 = vpop.permute.xlu1 %2360  ;;  %2554 = vmatpush1.bf16.msra.mxu0 %v2452_v0  ;;  %v7733_v2 = vpack.c.bf16 %v5928_v37, %v5928_v37 }
 0x89c   :  { %v2415_v46 = vrot.slane %v2331_v24, 4  ;;  %v2367_v25 = vmul.f32 %v2363_v23, %v7677_v17  ;;  %v2362_v50 = vsel %vm435_vm6, %v2359_v39, %v2361_v4  ;;  %v2365_v14 = vsel %vm435_vm6, %v2361_v4, %v6016_v12 }
 0x89d   :  { %v2417_v36 = vrot.slane %v2333_v40, 4  ;;  %v2368_v27 = vmul.f32 %v2362_v50, %v7684_v20  ;;  %v2369_v3 = vmul.f32 %v2365_v14, %v7679_v59  ;;  %v2416_v11 = vrot.slane %v2332_v48, 4  ;;  %v6775_v59 = vld [vmem:[%s7394_s17] sm:$0xff] }
 0x89e   :  { %v2371_v19 = vpack.c.bf16 %v2367_v25, %v2367_v25  ;;  %v2339_v26 = vpop.permute.xlu0 %2338  ;;  %v2464_v56 = vsel %vm533_vm2, %v2311_v10, %v2415_v46  ;;  %v2460_v12 = vsel %vm533_vm2, %v7733_v2, %v2414_v53  ;;  %v2350_v10 = vpack.c.bf16 %v2346_v34, %v2346_v34  ;;  %7771 = vst [vmem:[#allocation62_spill] sm:$0xff] %v6775_v59 }
 0x89f   :  { %v2372_v51 = vpack.c.bf16 %v2368_v27, %v2368_v27  ;;  %v2373_v30 = vpack.c.bf16 %v2369_v3, %v2369_v3  ;;  %v2343_v24 = vsel %vm398_vm7, %v6024_v49, %v2339_v26  ;;  %v2341_v39 = vpop.permute.xlu1 %2340  ;;  %2514 = vmatprep.subr.bf16.mxu1 %v2464_v56  ;;  %v2472_v0 = vsel %vm533_vm2, %v2313_v45, %v2417_v36 }
 0x8a0   :  { %v2347_v48 = vmul.f32 %v2343_v24, %v7700_v42  ;;  %v2342_v41 = vsel %vm398_vm7, %v2339_v26, %v2341_v39  ;;  %v2345_v37 = vsel %vm398_vm7, %v2341_v39, %v6022_v47  ;;  %2515 = vmatpush1.bf16.msra.mxu1 %v2460_v12  ;;  %2555 = vmatprep.subr.bf16.mxu0 %v2472_v0  ;;  %v2422_v40 = vrot.slane %v2370_v28, 4 }
 0x8a1   :  { %v2348_v53 = vmul.f32 %v2342_v41, %v7701_v6  ;;  %v2349_v49 = vmul.f32 %v2345_v37, %v7705_v29  ;;  %v2423_v23 = vrot.slane %v2371_v19, 4  ;;  %v2468_v45 = vsel %vm533_vm2, %v2312_v18, %v2416_v11  ;;  %v185_v41 = vld [vmem:[%s7391_s13] sm:$0xf]  ;;  %s7752_s13 = smov 119  }
 0x8a2   :  { %v2351_v4 = vpack.c.bf16 %v2347_v48, %v2347_v48  ;;  %v2375_v46 = vpop.permute.xlu0 %2374  ;;  %v2424_v25 = vrot.slane %v2372_v51, 4  ;;  %v2425_v50 = vrot.slane %v2373_v30, 4  ;;  %2556 = vmatpush1.bf16.msra.mxu0 %v2468_v45  ;;  %v2476_v61 = vsel %vm533_vm2, %v2350_v10, %v2422_v40  ;;  %v4082_v37 = vld [vmem:[%s7605_s26] sm:$0xff]   ;;  %v4086_v40 = vld [vmem:[%s7605_s26 + $0x8] sm:$0xff]   ;;  %v4089_v45 = vld [vmem:[%s7605_s26 + $0xd0] sm:$0xff]  }
 0x8a3   :  { %v2352_v14 = vpack.c.bf16 %v2348_v53, %v2348_v53  ;;  %v2353_v47 = vpack.c.bf16 %v2349_v49, %v2349_v49  ;;  %v2377_v36 = vpop.permute.xlu1 %2376  ;;  %v4083_v10 = vld [vmem:[%s7605_s26 + $0x80] sm:$0xff]   ;;  %v4084_v53 = vld [vmem:[%s7605_s26 + $0x48] sm:$0xff]  }
 0x8a4   :  { %v2384_v34 = vsel %vm472_vm8, %v2375_v46, %v2377_v36  ;;  %v2480_v27 = vsel %vm533_vm2, %v2351_v4, %v2423_v23  ;;  %v4085_v49 = vld [vmem:[%s7605_s26 + $0xc8] sm:$0xff]   ;;  %v4088_v4 = vld [vmem:[%s7605_s26 + $0x50] sm:$0xff]  }
 0x8a5   :  { %v2386_v28 = vmul.f32 %v5856_v13, %v2384_v34  ;;  %2516 = vmatprep.subr.bf16.mxu1 %v2480_v27  ;;  %v2488_v3 = vsel %vm533_vm2, %v2353_v47, %v2425_v50  ;;  %v2484_v18 = vsel %vm533_vm2, %v2352_v14, %v2424_v25  ;;  %v4087_v23 = vld [vmem:[%s7605_s26 + $0x88] sm:$0xff]   ;;  %v4091_v25 = vld [vmem:[%s7605_s26 + $0x90] sm:$0xff]   ;;  %v4092_v50 = vld [vmem:[%s7605_s26 + $0x58] sm:$0xff]  }
 0x8a6   :  { %2557 = vmatprep.subr.bf16.mxu0 %v2488_v3  ;;  %v2379_v11 = vpop.permute.xlu0 %2378  ;;  %2517 = vmatpush1.bf16.msra.mxu1 %v2476_v61  ;;  %v4093_v14 = vld [vmem:[%s7605_s26 + $0xd8] sm:$0xff]   ;;  %v4096_v34 = vld [vmem:[%s7605_s26 + $0x60] sm:$0xff]   ;;  %v4100_v61 = vld [vmem:[%s7605_s26 + $0x68] sm:$0xff]  }
 0x8a7   :  { %v2383_v19 = vsel %vm472_vm8, %v2377_v36, %v2379_v11  ;;  %v2381_v26 = vpop.permute.xlu1 %2380  ;;  %2558 = vmatpush1.bf16.msra.mxu0 %v2484_v18  ;;  %v2390_v56 = vpack.c.bf16 %v2386_v28, %v2386_v28  ;;  %v4094_v47 = vld [vmem:[%s7605_s26 + $0x18] sm:$0xff]   ;;  %v4097_v27 = vld [vmem:[%s7605_s26 + $0xe0] sm:$0xff]   ;;  %v4101_v18 = vld [vmem:[%s7605_s26 + $0xe8] sm:$0xff]  }
 0x8a8   :  { %v2387_v2 = vmul.f32 %v5844_v54, %v2383_v19  ;;  %v2382_v13 = vsel %vm472_vm8, %v2379_v11, %v2381_v26  ;;  %v2385_v12 = vsel %vm472_vm8, %v2381_v26, %v2375_v46  ;;  %v4090_v46 = vld [vmem:[%s7605_s26 + $0x10] sm:$0xff]   ;;  %v4095_v36 = vld [vmem:[%s7605_s26 + $0x98] sm:$0xff]   ;;  %v4098_v28 = vld [vmem:[%s7605_s26 + $0x20] sm:$0xff]  }
 0x8a9   :  { %v2388_v51 = vmul.f32 %v5900_v38, %v2382_v13  ;;  %v2389_v30 = vmul.f32 %v5892_v63, %v2385_v12  ;;  %v2499_v48 = vsel %vm533_vm2, %v2390_v56, 0  ;;  %v4080_v63 = vld [vmem:[%s7605_s26 + $0x40] sm:$0xff]   ;;  %v4102_v11 = vld [vmem:[%s7605_s26 + $0x28] sm:$0xff]   ;;  %v4104_v26 = vld [vmem:[%s7605_s26 + $0x70] sm:$0xff]  }
 0x8aa   :  { %v2391_v24 = vpack.c.bf16 %v2387_v2, %v2387_v2  ;;  %v4081_v38 = vld [vmem:[%s7605_s26 + $0xc0] sm:$0xff]   ;;  %v4103_v19 = vld [vmem:[%s7605_s26 + $0xa8] sm:$0xff]   ;;  %v4105_v56 = vld [vmem:[%s7605_s26 + $0xf0] sm:$0xff]  }
 0x8ab   :  { %v2392_v39 = vpack.c.bf16 %v2388_v51, %v2388_v51  ;;  %v2393_v0 = vpack.c.bf16 %v2389_v30, %v2389_v30  ;;  %v4099_v3 = vld [vmem:[%s7605_s26 + $0xa0] sm:$0xff]   ;;  %v4106_v2 = vld [vmem:[%s7605_s26 + $0x30] sm:$0xff]   ;;  %v4108_v12 = vld [vmem:[%s7605_s26 + $0x78] sm:$0xff]  }
 0x8ac   :  { %3827 = vmatprep.subr.msk.bf16.mxu1 %vm533_vm2, %v2391_v24  ;;  %v4107_v13 = vld [vmem:[%s7605_s26 + $0xb0] sm:$0xff]   ;;  %v4109_v51 = vld [vmem:[%s7605_s26 + $0xf8] sm:$0xff]   ;;  %v7835_v8 = vld [vmem:[#allocation62_spill] sm:$0xff] }
 0x8ad   :  { %2519 = vmatpush1.bf16.msra.mxu1 %v2499_v48  ;;  %3829 = vmatprep.subr.msk.bf16.mxu0 %vm533_vm2, %v2393_v0  ;;  %v2505_v54 = vsel %vm533_vm2, %v2392_v39, 0  ;;  %v4110_v30 = vld [vmem:[%s7605_s26 + $0x38] sm:$0xff]   ;;  %v7734_v39 = vmov 0.0   ;;  %v4112_v0 = vld [vmem:[%s7384_s4 + $0x4] ss:$16 sps:$4 sm:$0xff]  }
 0x8ae   :  { %2560 = vmatpush1.bf16.msra.mxu0 %v2505_v54  ;;  %3893 = vmatprep.subr.bf16.mxu1 %v4080_v63  ;;  %v4111_v24 = vld [vmem:[%s7605_s26 + $0xb8] sm:$0xff]  }
 0x8af   :  { %3915 = vmatprep.subr.bf16.mxu0 %v4081_v38 }
 0x8b0   :  { %3828 = vmatmul.mubr.msk.bf16.vlgmr.msra.gmra.mrb[24].mxu1 %vm603_vm9, %v185_v41 }
 0x8b1   :  { %3830 = vmatmul.mubr.msk.bf16.vlgmr.msra.gmra.mrb[20].mxu0 %vm603_vm9, %v185_v41  ;;  %3894 = vmatpush3.bf16.msra.mxu1 %v4082_v37 }
 0x8b2   :  { %3916 = vmatpush3.bf16.msra.mxu0 %v4083_v10  ;;  %3895 = vmatprep.subr.bf16.mxu1 %v4084_v53 }
 0x8b3   :  { %3917 = vmatprep.subr.bf16.mxu0 %v4085_v49 }
 0x8b5   :  { %3896 = vmatpush3.bf16.msra.mxu1 %v4086_v40 }
 0x8b6   :  { %3918 = vmatpush3.bf16.msra.mxu0 %v4087_v23  ;;  %3897 = vmatprep.subr.bf16.mxu1 %v4088_v4 }
 0x8b7   :  { %3919 = vmatprep.subr.bf16.mxu0 %v4089_v45  ;;  %v2493_v48 = vpop.permute.xlu0 %2492 }
 0x8b9   :  { %3898 = vmatpush3.bf16.msra.mxu1 %v4090_v46 }
 0x8ba   :  { %3920 = vmatpush3.bf16.msra.mxu0 %v4091_v25  ;;  %3899 = vmatprep.subr.bf16.mxu1 %v4092_v50 }
 0x8bb   :  { %3921 = vmatprep.subr.bf16.mxu0 %v4093_v14 }
 0x8bd   :  { %3900 = vmatpush3.bf16.msra.mxu1 %v4094_v47 }
 0x8be   :  { %3922 = vmatpush3.bf16.msra.mxu0 %v4095_v36  ;;  %3901 = vmatprep.subr.bf16.mxu1 %v4096_v34 }
 0x8bf   :  { %3923 = vmatprep.subr.bf16.mxu0 %v4097_v27 }
 0x8c1   :  { %3902 = vmatpush3.bf16.msra.mxu1 %v4098_v28 }
 0x8c2   :  { %3924 = vmatpush3.bf16.msra.mxu0 %v4099_v3  ;;  %3903 = vmatprep.subr.bf16.mxu1 %v4100_v61 }
 0x8c3   :  { %3925 = vmatprep.subr.bf16.mxu0 %v4101_v18 }
 0x8c5   :  { %3904 = vmatpush3.bf16.msra.mxu1 %v4102_v11 }
 0x8c6   :  { %3926 = vmatpush3.bf16.msra.mxu0 %v4103_v19  ;;  %3905 = vmatprep.subr.bf16.mxu1 %v4104_v26 }
 0x8c7   :  { %3927 = vmatprep.subr.bf16.mxu0 %v4105_v56 }
 0x8c9   :  { %3906 = vmatpush3.bf16.msra.mxu1 %v4106_v2 }
 0x8ca   :  { %3928 = vmatpush3.bf16.msra.mxu0 %v4107_v13  ;;  %3907 = vmatprep.subr.bf16.mxu1 %v4108_v12 }
 0x8cb   :  { %3929 = vmatprep.subr.bf16.mxu0 %v4109_v51 }
 0x8cd   :  { %3908 = vmatpush3.bf16.msra.mxu1 %v4110_v30 }
 0x8ce   :  { %3930 = vmatpush3.bf16.msra.mxu0 %v4111_v24  ;;  %3957 = vmatprep.subr.bf16.mxu1 %v7734_v39 }
 0x8cf   :  { %2850 = vmatprep.subr.bf16.mxu0 %v4112_v0 }
 0x983   :  { %v2544_v54 = vpop.f32.mrb[24].mxu1 }
 0x984   :  { %v2545_v41 = vadd.f32 %v2544_v54, %v2493_v48  ;;  %v2546_v63 = vpop.f32.mrb[25].mxu1  ;;  %v2585_v38 = vpop.f32.mrb[20].mxu0 }
 0x985   :  { %v2547_v37 = vadd.f32 %v2546_v63, %v2493_v48  ;;  %v2548_v10 = vpop.f32.mrb[26].mxu1  ;;  %v2587_v53 = vpop.f32.mrb[21].mxu0  ;;  %v2586_v46 = vadd.f32 %v2585_v38, %v2493_v48 }
 0x986   :  { %v6269_v49 = vmax.f32 %v2545_v41, 0.0  ;;  %v2549_v40 = vpop.f32.mrb[27].mxu1  ;;  %v2589_v23 = vpop.f32.mrb[22].mxu0  ;;  %v2588_v25 = vadd.f32 %v2587_v53, %v2493_v48 }
 0x987   :  { %v6271_v4 = vmax.f32 %v2547_v37, 0.0  ;;  %v2590_v45 = vpop.f32.mrb[23].mxu0  ;;  %v6285_v50 = vmax.f32 %v2586_v46, 0.0 }
 0x988   :  { %2596 = vrot.lane.b32.xlu1 %v6269_v49, %s7636_s25  ;;  %v6287_v14 = vmax.f32 %v2588_v25, 0.0 }
 0x989   :  { %7735 = vst [vmem:[#allocation49_spill] sm:$0xff] %v6271_v4  ;;  %2598 = vrot.lane.b32.xlu0 %v6271_v4, %s7636_s25  ;;  %7736 = vst [vmem:[#allocation55_spill] sm:$0xff] %v6285_v50 }
 0x98a   :  { %7737 = vst [vmem:[#allocation52_spill] sm:$0xff] %v6287_v14 }
 0x98c   :  { %2612 = vrot.lane.b32.xlu1 %v6269_v49, %s7638_s21 }
 0x98d   :  { %2614 = vrot.lane.b32.xlu0 %v6271_v4, %s7638_s21 }
 0x990   :  { %2628 = vrot.lane.b32.xlu1 %v6269_v49, %s7641_s6 }
 0x991   :  { %2630 = vrot.lane.b32.xlu0 %v6271_v4, %s7641_s6 }
 0x994   :  { %2600 = vrot.lane.b32.xlu1 %v6285_v50, %s7636_s25 }
 0x995   :  { %2602 = vrot.lane.b32.xlu0 %v6287_v14, %s7636_s25 }
 0x998   :  { %2616 = vrot.lane.b32.xlu1 %v6285_v50, %s7638_s21 }
 0x999   :  { %2618 = vrot.lane.b32.xlu0 %v6287_v14, %s7638_s21 }
 0x99c   :  { %2632 = vrot.lane.b32.xlu1 %v6285_v50, %s7641_s6 }
 0x99d   :  { %2634 = vrot.lane.b32.xlu0 %v6287_v14, %s7641_s6 }
 0x9fa   :  { %v2597_v47 = vpop.permute.xlu1 %2596 }
 0x9fb   :  { %v2599_v36 = vpop.permute.xlu0 %2598 }
 0x9fc   :  { %v6303_v11 = vsel %vm361_vm5, %v2597_v47, %v2599_v36 }
 0x9fd   :  { %v2608_v2 = vmax.f32 %v6269_v49, %v6303_v11 }
 0x9fe   :  { %v2613_v34 = vpop.permute.xlu1 %2612 }
 0x9ff   :  { %v2615_v27 = vpop.permute.xlu0 %2614 }
 0xa00   :  { %v6311_v26 = vsel %vm435_vm6, %v2613_v34, %v2615_v27 }
 0xa01   :  { %7738 = vst [vmem:[#allocation51_spill] sm:$0xff] %v6311_v26  ;;  %v2624_v48 = vmax.f32 %v2608_v2, %v6311_v26  ;;  %v4114_v2 = vld [vmem:[%s7384_s4 + $0x24] ss:$16 sps:$4 sm:$0xff]  }
 0xa02   :  { %v2629_v28 = vpop.permute.xlu1 %2628 }
 0xa03   :  { %v2631_v3 = vpop.permute.xlu0 %2630 }
 0xa04   :  { %v6325_v30 = vsel %vm472_vm8, %v2629_v28, %v2631_v3 }
 0xa05   :  { %7741 = vst [vmem:[#allocation59_spill] sm:$0xff] %v6325_v30  ;;  %v2640_v10 = vmax.f32 %v2624_v48, %v6325_v30  ;;  %v4117_v48 = vld [vmem:[%s7384_s4 + $0x40] ss:$16 sps:$4 sm:$0xff]  }
 0xa06   :  { %v2601_v61 = vpop.permute.xlu1 %2600 }
 0xa07   :  { %v2603_v18 = vpop.permute.xlu0 %2602  ;;  %v6307_v19 = vsel %vm361_vm5, %v2599_v36, %v2601_v61 }
 0xa08   :  { %v6317_v13 = vsel %vm361_vm5, %v2601_v61, %v2603_v18  ;;  %v2609_v24 = vmax.f32 %v6271_v4, %v6307_v19  ;;  %v6331_v0 = vsel %vm361_vm5, %v2603_v18, %v2597_v47 }
 0xa09   :  { %7739 = vst [vmem:[#allocation50_spill] sm:$0xff] %v6317_v13  ;;  %7742 = vst [vmem:[#allocation10_spill] sm:$0xff] %v6331_v0  ;;  %v2610_v41 = vmax.f32 %v6285_v50, %v6317_v13  ;;  %v2611_v53 = vmax.f32 %v6287_v14, %v6331_v0 }
 0xa0a   :  { %v2617_v56 = vpop.permute.xlu1 %2616 }
 0xa0b   :  { %v6321_v12 = vsel %vm435_vm6, %v2615_v27, %v2617_v56  ;;  %v2619_v51 = vpop.permute.xlu0 %2618 }
 0xa0c   :  { %7740 = vst [vmem:[#allocation54_spill] sm:$0xff] %v6321_v12  ;;  %v6336_v54 = vsel %vm435_vm6, %v2617_v56, %v2619_v51  ;;  %v2625_v63 = vmax.f32 %v2609_v24, %v6321_v12  ;;  %v6343_v38 = vsel %vm435_vm6, %v2619_v51, %v2613_v34  ;;  %v4115_v51 = vld [vmem:[%s7384_s4 + $0x20] ss:$16 sps:$4 sm:$0xff]   ;;  %v4116_v24 = vld [vmem:[%s7384_s4 + $0x44] ss:$16 sps:$4 sm:$0xff]  }
 0xa0d   :  { %7743 = vst [vmem:[#allocation56_spill] sm:$0xff] %v6336_v54  ;;  %7744 = vst [vmem:[#allocation61_spill] sm:$0xff] %v6343_v38  ;;  %v2626_v45 = vmax.f32 %v2610_v41, %v6336_v54  ;;  %v2627_v25 = vmax.f32 %v2611_v53, %v6343_v38  ;;  %v4118_v41 = vld [vmem:[%s7384_s4 + $0x64] ss:$16 sps:$4 sm:$0xff]  }
 0xa0e   :  { %v2633_v37 = vpop.permute.xlu1 %2632  ;;  %v4122_v53 = vld [vmem:[%s7384_s4 + $0xa4] ss:$16 sps:$4 sm:$0xff]  }
 0xa0f   :  { %v6350_v40 = vsel %vm472_vm8, %v2631_v3, %v2633_v37  ;;  %v2635_v23 = vpop.permute.xlu0 %2634  ;;  %v2644_v3 = vpack.c.bf16 %v2640_v10, %v2640_v10  ;;  %v4121_v10 = vld [vmem:[%s7384_s4 + $0x80] ss:$16 sps:$4 sm:$0xff]  }
 0xa10   :  { %7745 = vst [vmem:[#allocation57_spill] sm:$0xff] %v6350_v40  ;;  %v2641_v46 = vmax.f32 %v2625_v63, %v6350_v40  ;;  %v6357_v47 = vsel %vm472_vm8, %v2633_v37, %v2635_v23  ;;  %v6361_v36 = vsel %vm472_vm8, %v2635_v23, %v2629_v28  ;;  %v4113_v28 = vld [vmem:[%s7384_s4] ss:$16 sps:$4 sm:$0xff]   ;;  %v4120_v37 = vld [vmem:[%s7384_s4 + $0x84] ss:$16 sps:$4 sm:$0xff]  }
 0xa11   :  { %7746 = vst [vmem:[#allocation9_spill] sm:$0xff] %v6357_v47  ;;  %7747 = vst [vmem:[#allocation27_spill] sm:$0xff] %v6361_v36  ;;  %v2642_v27 = vmax.f32 %v2626_v45, %v6357_v47  ;;  %v2643_v61 = vmax.f32 %v2627_v25, %v6361_v36  ;;  %v4119_v63 = vld [vmem:[%s7384_s4 + $0x60] ss:$16 sps:$4 sm:$0xff]   ;;  %v4124_v45 = vld [vmem:[%s7384_s4 + $0xc4] ss:$16 sps:$4 sm:$0xff]  }
 0xa12   :  { %v2645_v34 = vpack.c.bf16 %v2641_v46, %v2641_v46  ;;  %v4123_v23 = vld [vmem:[%s7384_s4 + $0xa0] ss:$16 sps:$4 sm:$0xff]   ;;  %v4126_v25 = vld [vmem:[%s7384_s4 + $0xe4] ss:$16 sps:$4 sm:$0xff]  }
 0xa13   :  { %v2646_v18 = vpack.c.bf16 %v2642_v27, %v2642_v27  ;;  %v2647_v56 = vpack.c.bf16 %v2643_v61, %v2643_v61  ;;  %v4125_v46 = vld [vmem:[%s7384_s4 + $0xc0] ss:$16 sps:$4 sm:$0xff]  }
 0xa14   :  { %2680 = vmatprep.mubr.bf16.mxu1 %v2645_v34  ;;  %v4127_v34 = vld [vmem:[%s7384_s4 + $0xe0] ss:$16 sps:$4 sm:$0xff]  }
 0xa15   :  { %2681 = vmatmul.mubr.bf16.vlgmr.msra.gmra.mrb[28].mxu1 %v2644_v3  ;;  %2720 = vmatprep.mubr.bf16.mxu0 %v2647_v56 }
 0xa16   :  { %3967 = vmatprep.mubr.msk.bf16.mxu1 %vm4163_vm10, %v7734_v39  ;;  %2721 = vmatmul.mubr.bf16.vlgmr.msra.gmra.mrb[24].mxu0 %v2646_v18 }
 0xa17   :  { %2851 = vmatpush1.bf16.msra.mxu0 %v4113_v28  ;;  %2882 = vmatprep.mubr.bf16.mxu0 %v7721_v7 }
 0xa18   :  { %2852 = vmatprep.subr.bf16.mxu0 %v4114_v2 }
 0xa1b   :  { %2853 = vmatpush1.bf16.msra.mxu0 %v4115_v51 }
 0xa1c   :  { %2854 = vmatprep.subr.bf16.mxu0 %v4116_v24 }
 0xa1f   :  { %2855 = vmatpush1.bf16.msra.mxu0 %v4117_v48 }
 0xa20   :  { %2856 = vmatprep.subr.bf16.mxu0 %v4118_v41 }
 0xa23   :  { %2857 = vmatpush1.bf16.msra.mxu0 %v4119_v63  ;;  %v190_v63 = vld [vmem:[%s7392_s16 + $0x8] sm:$0xff] }
 0xa24   :  { %2858 = vmatprep.subr.bf16.mxu0 %v4120_v37  ;;  %v189_v37 = vld [vmem:[%s7392_s16] sm:$0xff] }
 0xa27   :  { %2859 = vmatpush1.bf16.msra.mxu0 %v4121_v10 }
 0xa28   :  { %2860 = vmatprep.subr.bf16.mxu0 %v4122_v53 }
 0xa2b   :  { %2861 = vmatpush1.bf16.msra.mxu0 %v4123_v23  ;;  %v7754_v23 = vld [vmem:[#allocation34_spill] sm:$0xff] }
 0xa2c   :  { %2862 = vmatprep.subr.bf16.mxu0 %v4124_v45 }
 0xa2f   :  { %2863 = vmatpush1.bf16.msra.mxu0 %v4125_v46  ;;  %v7755_v46 = vld [vmem:[#allocation35_spill] sm:$0xff] }
 0xa30   :  { %2864 = vmatprep.subr.bf16.mxu0 %v4126_v25 }
 0xa33   :  { %2865 = vmatpush1.bf16.msra.mxu0 %v4127_v34 }
 0xae8   :  { %v3909_v27 = vpop.f32.mrb[28].mxu1 }
 0xae9   :  { %v3910_v3 = vpop.f32.mrb[29].mxu1  ;;  %v3931_v56 = vpop.f32.mrb[24].mxu0 }
 0xaea   :  { %v3911_v61 = vadd.f32 %v3910_v3, %v3909_v27  ;;  %v3912_v18 = vpop.f32.mrb[30].mxu1  ;;  %v3932_v2 = vpop.f32.mrb[25].mxu0 }
 0xaeb   :  { %v3913_v28 = vpop.f32.mrb[31].mxu1  ;;  %v3933_v51 = vadd.f32 %v3932_v2, %v3931_v56  ;;  %v3934_v24 = vpop.f32.mrb[26].mxu0  ;;  %v7756_v56 = vld [vmem:[#allocation36_spill] sm:$0xff]  ;;  %v7757_v2 = vld [vmem:[#allocation37_spill] sm:$0xff] }
 0xaec   :  { %v3935_v48 = vpop.f32.mrb[27].mxu0 }
 0xaed   :  { %v6413_v41 = vadd.f32 %v3933_v51, %v3911_v61 }
 0xaef   :  { %2728 = vrot.lane.b32.xlu0 %v6413_v41, %s7748_s22  ;;  %2732 = vrot.lane.b32.xlu1 %v6413_v41, %s7749_s30  ;;  %s7839_s22 = sld [smem:[#allocation74_spill]] }
 0xaf3   :  { %2736 = vrot.lane.b32.xlu0 %v6413_v41, %s7750_s9  ;;  %2740 = vrot.lane.b32.xlu1 %v6413_v41, %s7615_s1 }
 0xaf7   :  { %2753 = vrot.lane.b32.xlu0 %v6413_v41, %s7751_s27  ;;  %2745 = vrot.lane.b32.xlu1 %v6413_v41, %s7636_s25 }
 0xafb   :  { %2757 = vrot.lane.b32.xlu0 %v6413_v41, %s7752_s13  ;;  %2749 = vrot.lane.b32.xlu1 %v6413_v41, %s7753_s5 }
 0xaff   :  { %2792 = vperm.xlu0 %3988, %v190_v63   ;;  %2787 = vperm.xlu1 %3989, %v189_v37  }
 0xb03   :  { %2946 = vrot.lane.b32.xlu0 %v6271_v4, %s7617_s8  ;;  %2940 = vrot.lane.b32.xlu1 %v6269_v49, %s7617_s8 }
 0xb07   :  { %2996 = vrot.lane.b32.xlu0 %v6269_v49, %s7618_s29  ;;  %2958 = vrot.lane.b32.xlu1 %v6287_v14, %s7617_s8 }
 0xb0b   :  { %3014 = vrot.lane.b32.xlu0 %v6287_v14, %s7618_s29  ;;  %3002 = vrot.lane.b32.xlu1 %v6271_v4, %s7618_s29 }
 0xb0f   :  { %3008 = vrot.lane.b32.xlu0 %v6285_v50, %s7618_s29  ;;  %2952 = vrot.lane.b32.xlu1 %v6285_v50, %s7617_s8 }
 0xb13   :  { %3058 = vrot.lane.b32.xlu0 %v6271_v4, %s7619_s23  ;;  %3052 = vrot.lane.b32.xlu1 %v6269_v49, %s7619_s23 }
 0xb17   :  { %3108 = vrot.lane.b32.xlu0 %v6269_v49, %s7615_s1  ;;  %3070 = vrot.lane.b32.xlu1 %v6287_v14, %s7619_s23 }
 0xb1b   :  { %3126 = vrot.lane.b32.xlu0 %v6287_v14, %s7615_s1  ;;  %3114 = vrot.lane.b32.xlu1 %v6271_v4, %s7615_s1 }
 0xb1f   :  { %3120 = vrot.lane.b32.xlu0 %v6285_v50, %s7615_s1  ;;  %3064 = vrot.lane.b32.xlu1 %v6285_v50, %s7619_s23 }
 0xb61   :  { %v2729_v10 = vpop.permute.xlu0 %2728  ;;  %v2733_v53 = vpop.permute.xlu1 %2732 }
 0xb62   :  { %v2730_v45 = vmul.f32 %v2729_v10, %v7754_v23  ;;  %v2734_v25 = vmul.f32 %v2733_v53, %v7755_v46  ;;  %v7758_v10 = vld [vmem:[#allocation38_spill] sm:$0xff]  ;;  %v7759_v53 = vld [vmem:[#allocation39_spill] sm:$0xff] }
 0xb64   :  { %v2735_v34 = vpack.c.bf16 %v2734_v25, %v2734_v25  ;;  %v2731_v61 = vpack.c.bf16 %v2730_v45, %v2730_v45 }
 0xb65   :  { %v2737_v27 = vpop.permute.xlu0 %2736  ;;  %v2741_v3 = vpop.permute.xlu1 %2740 }
 0xb66   :  { %v2762_v18 = vrot.slane %v2735_v34, 4  ;;  %v2738_v28 = vmul.f32 %v2737_v27, %v7756_v56  ;;  %v2742_v51 = vmul.f32 %v2741_v3, %v7757_v2  ;;  %v4128_v2 = vld [vmem:[%s7385_s2 + $0x8] ss:$0 sm:$0xff] }
 0xb68   :  { %v2743_v24 = vpack.c.bf16 %v2742_v51, %v2742_v51  ;;  %v2771_v48 = vsel %vm533_vm2, %v2731_v61, %v2762_v18  ;;  %v2739_v36 = vpack.c.bf16 %v2738_v28, %v2738_v28  ;;  %v7760_v61 = vld [vmem:[#allocation40_spill] sm:$0xff]  ;;  %v2744_v28 = vpack.c.bf16 %v6413_v41, %v6413_v41 }
 0xb69   :  { %v2754_v63 = vpop.permute.xlu0 %2753  ;;  %3958 = vmatpush3.bf16.msra.mxu1 %v2771_v48  ;;  %v2746_v37 = vpop.permute.xlu1 %2745 }
 0xb6a   :  { %v2764_v47 = vrot.slane %v2743_v24, 4  ;;  %v2755_v23 = vmul.f32 %v2754_v63, %v7758_v10  ;;  %v2747_v46 = vmul.f32 %v2746_v37, %v7759_v53  ;;  %3959 = vmatprep.subr.bf16.mxu1 %v7734_v39  ;;  %v4073_v37 = vld [vmem:[%s7393_s15] sm:$0xff]   ;;  %v4129_v10 = vld [vmem:[%s7384_s4 + $0xc] ss:$16 sps:$4 sm:$0xff]  }
 0xb6c   :  { %v2748_v45 = vpack.c.bf16 %v2747_v46, %v2747_v46  ;;  %v2775_v25 = vsel %vm533_vm2, %v2739_v36, %v2764_v47  ;;  %v2756_v3 = vpack.c.bf16 %v2755_v23, %v2755_v23  ;;  %v4130_v23 = vld [vmem:[%s7384_s4 + $0x8] ss:$16 sps:$4 sm:$0xff]   ;;  %v4131_v46 = vld [vmem:[%s7384_s4 + $0x2c] ss:$16 sps:$4 sm:$0xff]  }
 0xb6d   :  { %v2758_v34 = vpop.permute.xlu0 %2757  ;;  %3960 = vmatpush3.bf16.msra.mxu1 %v2775_v25  ;;  %v2750_v27 = vpop.permute.xlu1 %2749 }
 0xb6e   :  { %v2766_v56 = vrot.slane %v2748_v45, 4  ;;  %v2751_v18 = vmul.f32 %v2750_v27, %v7760_v61  ;;  %3961 = vmatprep.subr.bf16.mxu1 %v7734_v39  ;;  %v2759_v51 = vmul.f32 %v4128_v2, %v2758_v34  ;;  %v2768_v36 = vrot.slane %v2756_v3, 4  ;;  %v4132_v45 = vld [vmem:[%s7384_s4 + $0x28] ss:$16 sps:$4 sm:$0xff]   ;;  %v4133_v27 = vld [vmem:[%s7384_s4 + $0x4c] ss:$16 sps:$4 sm:$0xff]  }
 0xb70   :  { %v2752_v24 = vpack.c.bf16 %v2751_v18, %v2751_v18  ;;  %v2779_v47 = vsel %vm533_vm2, %v2744_v28, %v2766_v56  ;;  %v2760_v48 = vpack.c.bf16 %v2759_v51, %v2759_v51  ;;  %v4134_v56 = vld [vmem:[%s7384_s4 + $0x48] ss:$16 sps:$4 sm:$0xff]   ;;  %v4135_v28 = vld [vmem:[%s7384_s4 + $0x6c] ss:$16 sps:$4 sm:$0xff]  }
 0xb71   :  { %3962 = vmatpush3.bf16.msra.mxu1 %v2779_v47  ;;  %v4136_v51 = vld [vmem:[%s7384_s4 + $0x68] ss:$16 sps:$4 sm:$0xff]  }
 0xb72   :  { %3963 = vmatprep.subr.bf16.mxu1 %v7734_v39  ;;  %v2783_v63 = vsel %vm533_vm2, %v2752_v24, %v2768_v36  ;;  %v2804_v41 = vsel %vm533_vm2, %v2760_v48, 0  ;;  %v4137_v36 = vld [vmem:[%s7384_s4 + $0x8c] ss:$16 sps:$4 sm:$0xff]  }
 0xb75   :  { %3964 = vmatpush3.bf16.msra.mxu1 %v2783_v63 }
 0xb76   :  { %3965 = vmatprep.subr.bf16.mxu1 %v7734_v39 }
 0xb79   :  { %3966 = vmatpush3.bf16.msra.mxu1 %v2804_v41  ;;  %v4138_v41 = vld [vmem:[%s7384_s4 + $0x88] ss:$16 sps:$4 sm:$0xff]  }
 0xb7a   :  { %2893 = vmatprep.subr.bf16.mxu1 %v4129_v10 }
 0xb7c   :  { %3968 = vmatmul.mubr.msk.bf16.vlgmr.msra.gmra.mrb[32].mxu1 %vm603_vm9, %v4073_v37 }
 0xb7d   :  { %2894 = vmatpush1.bf16.msra.mxu1 %v4130_v23  ;;  %2925 = vmatprep.mubr.bf16.mxu1 %v7721_v7  ;;  %v4139_v23 = vld [vmem:[%s7384_s4 + $0xac] ss:$16 sps:$4 sm:$0xff]  }
 0xb7e   :  { %v2793_v39 = vpop.permute.xlu0 %2792  ;;  %v2788_v53 = vpop.permute.xlu1 %2787  ;;  %2895 = vmatprep.subr.bf16.mxu1 %v4131_v46 }
 0xb81   :  { %2896 = vmatpush1.bf16.msra.mxu1 %v4132_v45 }
 0xb82   :  { %v2947_v25 = vpop.permute.xlu0 %2946  ;;  %v2941_v34 = vpop.permute.xlu1 %2940  ;;  %2897 = vmatprep.subr.bf16.mxu1 %v4133_v27 }
 0xb83   :  { %v6512_v3 = vsel %vm209_vm1, %v2941_v34, %v2947_v25 }
 0xb85   :  { %2898 = vmatpush1.bf16.msra.mxu1 %v4134_v56  ;;  %v4140_v56 = vld [vmem:[%s7384_s4 + $0xa8] ss:$16 sps:$4 sm:$0xff]  }
 0xb86   :  { %v2997_v61 = vpop.permute.xlu0 %2996  ;;  %v2959_v18 = vpop.permute.xlu1 %2958  ;;  %2899 = vmatprep.subr.bf16.mxu1 %v4135_v28 }
 0xb87   :  { %v6522_v2 = vsel %vm209_vm1, %v2959_v18, %v2941_v34 }
 0xb89   :  { %2900 = vmatpush1.bf16.msra.mxu1 %v4136_v51  ;;  %v4141_v51 = vld [vmem:[%s7384_s4 + $0xcc] ss:$16 sps:$4 sm:$0xff]  }
 0xb8a   :  { %v3015_v24 = vpop.permute.xlu0 %3014  ;;  %v3003_v47 = vpop.permute.xlu1 %3002  ;;  %2901 = vmatprep.subr.bf16.mxu1 %v4137_v36  ;;  %v4143_v36 = vld [vmem:[%s7384_s4 + $0xec] ss:$16 sps:$4 sm:$0xff]  }
 0xb8b   :  { %v6532_v48 = vsel %vm246_vm0, %v3015_v24, %v2997_v61  ;;  %v6536_v63 = vsel %vm246_vm0, %v2997_v61, %v3003_v47 }
 0xb8d   :  { %2902 = vmatpush1.bf16.msra.mxu1 %v4138_v41 }
 0xb8e   :  { %v3009_v37 = vpop.permute.xlu0 %3008  ;;  %v2953_v10 = vpop.permute.xlu1 %2952  ;;  %2903 = vmatprep.subr.bf16.mxu1 %v4139_v23 }
 0xb8f   :  { %v6546_v46 = vsel %vm246_vm0, %v3009_v37, %v3015_v24  ;;  %v6550_v45 = vsel %vm246_vm0, %v3003_v47, %v3009_v37  ;;  %v6554_v34 = vsel %vm209_vm1, %v2953_v10, %v2959_v18  ;;  %v6558_v27 = vsel %vm209_vm1, %v2947_v25, %v2953_v10  ;;  %v4142_v25 = vld [vmem:[%s7384_s4 + $0xc8] ss:$16 sps:$4 sm:$0xff]  }
 0xb90   :  { %v4144_v37 = vld [vmem:[%s7384_s4 + $0xe8] ss:$16 sps:$4 sm:$0xff]  }
 0xb91   :  { %2904 = vmatpush1.bf16.msra.mxu1 %v4140_v56 }
 0xb92   :  { %v6563_v61 = vpop.permute.xlu0 %3058  ;;  %v3053_v28 = vpop.permute.xlu1 %3052  ;;  %2905 = vmatprep.subr.bf16.mxu1 %v4141_v51 }
 0xb93   :  { %v6571_v18 = vsel %vm283_vm4, %v3053_v28, %v6563_v61 }
 0xb95   :  { %2906 = vmatpush1.bf16.msra.mxu1 %v4142_v25 }
 0xb96   :  { %v3109_v24 = vpop.permute.xlu0 %3108  ;;  %v6576_v47 = vpop.permute.xlu1 %3070  ;;  %2907 = vmatprep.subr.bf16.mxu1 %v4143_v36 }
 0xb97   :  { %v6584_v41 = vsel %vm283_vm4, %v6576_v47, %v3053_v28 }
 0xb99   :  { %2908 = vmatpush1.bf16.msra.mxu1 %v4144_v37 }
 0xb9a   :  { %v6589_v10 = vpop.permute.xlu0 %3126  ;;  %v6591_v23 = vpop.permute.xlu1 %3114 }
 0xb9b   :  { %v6596_v56 = vsel %vm320_vm3, %v6589_v10, %v3109_v24  ;;  %v6601_v51 = vsel %vm320_vm3, %v3109_v24, %v6591_v23 }
 0xc4f   :  { %v2840_v28 = vpop.f32.mrb[32].mxu1 }
 0xc50   :  { %v2841_v25 = vadd.f32 %v2840_v28, %v2788_v53  ;;  %v3969_v36 = vpop.f32.mrb[33].mxu1 }
 0xc51   :  { %v2843_v7 = vpop.f32.mrb[34].mxu1  ;;  %v6739_v36 = vpop.permute.xlu0 %3120 }
 0xc52   :  { %v2844_v40 = vadd.f32 %v2843_v7, %v2793_v39  ;;  %v3970_v37 = vpop.f32.mrb[35].mxu1  ;;  %v2847_v54 = vmax.f32 %v2841_v25, 0.0 }
 0xc53   :  { %v6741_v37 = vpop.permute.xlu1 %3064 }
 0xc54   :  { %v2848_v30 = vmax.f32 %v2844_v40, 0.0 }
 0xc56   :  { %v2849_v20 = vpack.c.bf16 %v2848_v30, %v2847_v54 }
 0xc58   :  { %2883 = vmatmul.mubr.bf16.vlgmr.msra.gmra.mrb[28].mxu0 %v2849_v20  ;;  %2926 = vmatmul.mubr.bf16.vlgmr.msra.gmra.mrb[36].mxu1 %v2849_v20 }
 0xd2b   :  { %v6603_v29 = vpop.f32.mrb[28].mxu0  ;;  %v6605_v6 = vpop.f32.mrb[36].mxu1 }
 0xd2c   :  { %7761 = vst [vmem:[#allocation26_spill] sm:$0xff] %v6603_v29  ;;  %7762 = vst [vmem:[#allocation29_spill] sm:$0xff] %v6605_v6  ;;  %3048 = vrot.lane.b32.xlu0 %v6603_v29, %s7619_s23  ;;  %2936 = vrot.lane.b32.xlu1 %v6603_v29, %s7617_s8  ;;  %v6611_v53 = vpop.f32.mrb[29].mxu0  ;;  %v6613_v24 = vpop.f32.mrb[37].mxu1 }
 0xd2d   :  { %7763 = vst [vmem:[#allocation60_spill] sm:$0xff] %v6611_v53  ;;  %7764 = vst [vmem:[#allocation58_spill] sm:$0xff] %v6613_v24  ;;  %v6615_v7 = vpop.f32.mrb[30].mxu0  ;;  %v6617_v40 = vpop.f32.mrb[38].mxu1 }
 0xd2e   :  { %7765 = vst [vmem:[#allocation28_spill] sm:$0xff] %v6615_v7  ;;  %7766 = vst [vmem:[#allocation63_spill] sm:$0xff] %v6617_v40  ;;  %v6619_v30 = vpop.f32.mrb[31].mxu0  ;;  %v6621_v20 = vpop.f32.mrb[39].mxu1 }
 0xd2f   :  { %7767 = vst [vmem:[#allocation65_spill] sm:$0xff] %v6619_v30  ;;  %7768 = vst [vmem:[#allocation64_spill] sm:$0xff] %v6621_v20 }
 0xd30   :  { %2992 = vrot.lane.b32.xlu1 %v6603_v29, %s7618_s29  ;;  %3054 = vrot.lane.b32.xlu0 %v6611_v53, %s7619_s23 }
 0xd34   :  { %2938 = vrot.lane.b32.xlu0 %v6615_v7, %s7617_s8  ;;  %2948 = vrot.lane.b32.xlu1 %v6605_v6, %s7617_s8 }
 0xd38   :  { %2994 = vrot.lane.b32.xlu0 %v6615_v7, %s7618_s29  ;;  %3004 = vrot.lane.b32.xlu1 %v6605_v6, %s7618_s29 }
 0xd3c   :  { %3104 = vrot.lane.b32.xlu1 %v6603_v29, %s7615_s1  ;;  %2950 = vrot.lane.b32.xlu0 %v6617_v40, %s7617_s8 }
 0xd40   :  { %3060 = vrot.lane.b32.xlu1 %v6605_v6, %s7619_s23  ;;  %3006 = vrot.lane.b32.xlu0 %v6617_v40, %s7618_s29 }
 0xd44   :  { %3116 = vrot.lane.b32.xlu1 %v6605_v6, %s7615_s1  ;;  %3106 = vrot.lane.b32.xlu0 %v6615_v7, %s7615_s1 }
 0xd48   :  { %3176 = vrot.lane.b32.xlu1 %v6605_v6, %s7636_s25  ;;  %3062 = vrot.lane.b32.xlu0 %v6617_v40, %s7619_s23 }
 0xd4c   :  { %3168 = vrot.lane.b32.xlu1 %v6603_v29, %s7636_s25  ;;  %3118 = vrot.lane.b32.xlu0 %v6617_v40, %s7615_s1 }
 0xd50   :  { %3224 = vrot.lane.b32.xlu1 %v6605_v6, %s7637_s7  ;;  %3178 = vrot.lane.b32.xlu0 %v6617_v40, %s7636_s25 }
 0xd54   :  { %3212 = vrot.lane.b32.xlu1 %v6603_v29, %s7637_s7  ;;  %3170 = vrot.lane.b32.xlu0 %v6615_v7, %s7636_s25 }
 0xd58   :  { %2942 = vrot.lane.b32.xlu1 %v6611_v53, %s7617_s8  ;;  %3226 = vrot.lane.b32.xlu0 %v6617_v40, %s7637_s7 }
 0xd5c   :  { %2954 = vrot.lane.b32.xlu1 %v6613_v24, %s7617_s8  ;;  %3214 = vrot.lane.b32.xlu0 %v6615_v7, %s7637_s7 }
 0xd60   :  { %2998 = vrot.lane.b32.xlu1 %v6611_v53, %s7618_s29  ;;  %2944 = vrot.lane.b32.xlu0 %v6619_v30, %s7617_s8 }
 0xd64   :  { %3010 = vrot.lane.b32.xlu1 %v6613_v24, %s7618_s29  ;;  %2956 = vrot.lane.b32.xlu0 %v6621_v20, %s7617_s8 }
 0xd68   :  { %3066 = vrot.lane.b32.xlu1 %v6613_v24, %s7619_s23  ;;  %3000 = vrot.lane.b32.xlu0 %v6619_v30, %s7618_s29 }
 0xd6c   :  { %3110 = vrot.lane.b32.xlu1 %v6611_v53, %s7615_s1  ;;  %3012 = vrot.lane.b32.xlu0 %v6621_v20, %s7618_s29 }
 0xd70   :  { %3122 = vrot.lane.b32.xlu1 %v6613_v24, %s7615_s1  ;;  %3278 = vrot.lane.b32.xlu0 %v6617_v40, %s7638_s21 }
 0xd74   :  { %3172 = vrot.lane.b32.xlu1 %v6611_v53, %s7636_s25  ;;  %3270 = vrot.lane.b32.xlu0 %v6615_v7, %s7638_s21 }
 0xd78   :  { %3180 = vrot.lane.b32.xlu1 %v6613_v24, %s7636_s25  ;;  %3228 = vrot.lane.b32.xlu0 %v6285_v50, %s7637_s7 }
 0xd7c   :  { %3218 = vrot.lane.b32.xlu1 %v6611_v53, %s7637_s7  ;;  %3230 = vrot.lane.b32.xlu0 %v6613_v24, %s7637_s7 }
 0xd80   :  { %3050 = vrot.lane.b32.xlu1 %v6615_v7, %s7619_s23  ;;  %3068 = vrot.lane.b32.xlu0 %v6621_v20, %s7619_s23 }
 0xd84   :  { %3056 = vrot.lane.b32.xlu1 %v6619_v30, %s7619_s23  ;;  %3112 = vrot.lane.b32.xlu0 %v6619_v30, %s7615_s1 }
 0xd88   :  { %3272 = vrot.lane.b32.xlu1 %v6611_v53, %s7638_s21  ;;  %3124 = vrot.lane.b32.xlu0 %v6621_v20, %s7615_s1 }
 0xd8c   :  { %3276 = vrot.lane.b32.xlu1 %v6605_v6, %s7638_s21  ;;  %3280 = vrot.lane.b32.xlu0 %v6613_v24, %s7638_s21 }
 0xd90   :  { %3268 = vrot.lane.b32.xlu1 %v6603_v29, %s7638_s21  ;;  %3234 = vrot.lane.b32.xlu0 %v6287_v14, %s7637_s7 }
 0xd94   :  { %3222 = vrot.lane.b32.xlu1 %v6271_v4, %s7637_s7  ;;  %3174 = vrot.lane.b32.xlu0 %v6619_v30, %s7636_s25 }
 0xd98   :  { %3216 = vrot.lane.b32.xlu1 %v6269_v49, %s7637_s7  ;;  %3182 = vrot.lane.b32.xlu0 %v6621_v20, %s7636_s25 }
 0xd9c   :  { %3316 = vrot.lane.b32.xlu1 %v6611_v53, %s7641_s6  ;;  %3220 = vrot.lane.b32.xlu0 %v6619_v30, %s7637_s7 }
 0xd9e   :  { %v6747_v39 = vpop.permute.xlu0 %3048  ;;  %v2937_v54 = vpop.permute.xlu1 %2936 }
 0xd9f   :  { %7769 = vst [vmem:[#allocation47_spill] sm:$0xff] %v6747_v39 }
 0xda0   :  { %3320 = vrot.lane.b32.xlu1 %v6605_v6, %s7641_s6  ;;  %3274 = vrot.lane.b32.xlu0 %v6619_v30, %s7638_s21 }
 0xda2   :  { %v6753_v25 = vpop.permute.xlu1 %2992  ;;  %v3055_v28 = vpop.permute.xlu0 %3054 }
 0xda3   :  { %v6758_v42 = vsel %vm283_vm4, %v6747_v39, %v3055_v28 }
 0xda4   :  { %7770 = vst [vmem:[#allocation43_spill] sm:$0xff] %v6758_v42  ;;  %3232 = vrot.lane.b32.xlu1 %v6621_v20, %s7637_s7  ;;  %3322 = vrot.lane.b32.xlu0 %v6617_v40, %s7641_s6  ;;  %v3834_v40 = vcombine.high %v6775_v59, %v6775_v59  ;;  %v192_v59 = vld [vmem:[%s7395_s18] sm:$0xff] }
 0xda6   :  { %v2939_v15 = vpop.permute.xlu0 %2938  ;;  %v2949_v53 = vpop.permute.xlu1 %2948  ;;  %3836 = vmatprep.mubr.msk.bf16.mxu0 %vm2021_vm11, %v3834_v40  ;;  %3838 = vmatprep.mubr.msk.bf16.mxu1 %vm2021_vm11, %v3834_v40 }
 0xda8   :  { %3282 = vrot.lane.b32.xlu1 %v6621_v20, %s7638_s21  ;;  %3318 = vrot.lane.b32.xlu0 %v6619_v30, %s7641_s6 }
 0xdaa   :  { %v6768_v6 = vpop.permute.xlu0 %2994  ;;  %v6770_v38 = vpop.permute.xlu1 %3004 }
 0xdac   :  { %3312 = vrot.lane.b32.xlu1 %v6603_v29, %s7641_s6  ;;  %3314 = vrot.lane.b32.xlu0 %v6615_v7, %s7641_s6  ;;  %v194_v29 = vld [vmem:[%s7396_s20] sm:$0xff] }
 0xdae   :  { %v6785_v30 = vpop.permute.xlu1 %3104  ;;  %v2951_v50 = vpop.permute.xlu0 %2950 }
 0xdb0   :  { %3324 = vrot.lane.b32.xlu1 %v6613_v24, %s7641_s6  ;;  %3326 = vrot.lane.b32.xlu0 %v6621_v20, %s7641_s6 }
 0xdb2   :  { %v6797_v7 = vpop.permute.xlu1 %3060  ;;  %v6799_v40 = vpop.permute.xlu0 %3006 }
 0xdb3   :  { %v6804_v14 = vsel %vm283_vm4, %v3055_v28, %v6797_v7 }
 0xdb4   :  { %7772 = vst [vmem:[#allocation48_spill] sm:$0xff] %v6804_v14  ;;  %3518 = vperm.xlu1 %3989, %v192_v59   ;;  %3634 = vperm.xlu0 %3988, %v194_v29  }
 0xdb6   :  { %v6806_v24 = vpop.permute.xlu1 %3116  ;;  %v6808_v20 = vpop.permute.xlu0 %3106 }
 0xdb7   :  { %7773 = vst [vmem:[#allocation44_spill] sm:$0xff] %v6808_v20 }
 0xdba   :  { %v6810_v4 = vpop.permute.xlu1 %3176  ;;  %v6812_v12 = vpop.permute.xlu0 %3062 }
 0xdbb   :  { %7774 = vst [vmem:[#allocation45_spill] sm:$0xff] %v6810_v4  ;;  %7775 = vst [vmem:[#allocation41_spill] sm:$0xff] %v6812_v12 }
 0xdbe   :  { %v6814_v17 = vpop.permute.xlu1 %3168  ;;  %v6816_v26 = vpop.permute.xlu0 %3118 }
 0xdbf   :  { %7776 = vst [vmem:[#allocation46_spill] sm:$0xff] %v6814_v17  ;;  %7777 = vst [vmem:[#allocation42_spill] sm:$0xff] %v6816_v26 }
 0xdc2   :  { %v6818_v58 = vpop.permute.xlu1 %3224  ;;  %v6820_v0 = vpop.permute.xlu0 %3178 }
 0xdc3   :  { %7778 = vst [vmem:[#allocation66_spill] sm:$0xff] %v6818_v58  ;;  %7779 = vst [vmem:[#allocation67_spill] sm:$0xff] %v6820_v0 }
 0xdc6   :  { %v6822_v28 = vpop.permute.xlu1 %3212  ;;  %v6824_v59 = vpop.permute.xlu0 %3170 }
 0xdc7   :  { %7780 = vst [vmem:[#allocation31_spill] sm:$0xff] %v6822_v28  ;;  %7781 = vst [vmem:[#allocation30_spill] sm:$0xff] %v6824_v59 }
 0xdca   :  { %v2943_v29 = vpop.permute.xlu1 %2942  ;;  %v6826_v33 = vpop.permute.xlu0 %3226 }
 0xdcb   :  { %7782 = vst [vmem:[#allocation32_spill] sm:$0xff] %v6826_v33  ;;  %v2966_v4 = vsel %vm209_vm1, %v2937_v54, %v2943_v29  ;;  %v2963_v42 = vsel %vm209_vm1, %v2943_v29, %v2949_v53 }
 0xdcc   :  { %v2973_v0 = vmul.f32 %v2966_v4, %v7722_v9 }
 0xdce   :  { %v2955_v13 = vpop.permute.xlu1 %2954  ;;  %v6828_v35 = vpop.permute.xlu0 %3214 }
 0xdcf   :  { %7783 = vst [vmem:[#allocation33_spill] sm:$0xff] %v6828_v35  ;;  %v2969_v28 = vsel %vm209_vm1, %v2955_v13, %v2937_v54  ;;  %v2960_v33 = vsel %vm209_vm1, %v2949_v53, %v2955_v13 }
 0xdd0   :  { %v2972_v31 = vmul.f32 %v2969_v28, %v7727_v1  ;;  %v2975_v54 = vmul.f32 %v2960_v33, %v7728_v62 }
 0xdd2   :  { %v2999_v17 = vpop.permute.xlu1 %2998  ;;  %v2945_v20 = vpop.permute.xlu0 %2944 }
 0xdd3   :  { %v2967_v58 = vsel %vm209_vm1, %v2939_v15, %v2945_v20  ;;  %v2964_v35 = vsel %vm209_vm1, %v2945_v20, %v2951_v50  ;;  %v3022_v53 = vsel %vm246_vm0, %v6753_v25, %v2999_v17 }
 0xdd4   :  { %v2977_v59 = vmul.f32 %v2967_v58, %v7722_v9  ;;  %v2978_v13 = vmul.f32 %v2964_v35, %v7726_v5  ;;  %v3019_v35 = vsel %vm246_vm0, %v2999_v17, %v6770_v38  ;;  %v3037_v17 = vmul.f32 %v6536_v63, %v4397_v16 }
 0xdd5   :  { %v3030_v29 = vmul.f32 %v3019_v35, %v4412_v21 }
 0xdd6   :  { %v3011_v26 = vpop.permute.xlu1 %3010  ;;  %v2957_v39 = vpop.permute.xlu0 %2956  ;;  %v2985_v14 = vpack.c.bf16 %v2977_v59, %v2973_v0  ;;  %v2981_v0 = vmul.f32 %v6512_v3, %v7722_v9  ;;  %v3029_v3 = vmul.f32 %v3022_v53, %v4397_v16  ;;  %v2983_v53 = vmul.f32 %v6554_v34, %v7728_v62 }
 0xdd7   :  { %v2961_v4 = vsel %vm209_vm1, %v2951_v50, %v2957_v39  ;;  %v2970_v58 = vsel %vm209_vm1, %v2957_v39, %v2939_v15  ;;  %v2974_v50 = vmul.f32 %v2963_v42, %v7726_v5 }
 0xdd8   :  { %v2976_v20 = vmul.f32 %v2970_v58, %v7727_v1  ;;  %v2979_v12 = vmul.f32 %v2961_v4, %v7728_v62  ;;  %3542 = vmatprep.subr.bf16.mxu0 %v2985_v14  ;;  %v3016_v4 = vsel %vm246_vm0, %v6770_v38, %v3011_v26  ;;  %v3025_v58 = vsel %vm246_vm0, %v3011_v26, %v6753_v25  ;;  %v7784_v26 = vld [vmem:[#allocation2_spill] sm:$0xff] }
 0xdd9   :  { %v2986_v42 = vpack.c.bf16 %v2978_v13, %v2974_v50  ;;  %v3036_v25 = vmul.f32 %v6532_v48, %v7784_v26  ;;  %v2982_v48 = vmul.f32 %v6558_v27, %v7726_v5 }
 0xdda   :  { %v2984_v28 = vpack.c.bf16 %v2976_v20, %v2972_v31  ;;  %v6859_v15 = vpop.permute.xlu1 %3066  ;;  %v3001_v33 = vpop.permute.xlu0 %3000  ;;  %v2987_v39 = vpack.c.bf16 %v2979_v12, %v2975_v54  ;;  %v2989_v12 = vpack.c.bf16 %v2981_v0, %v2981_v0  ;;  %v2980_v0 = vmul.f32 %v6522_v2, %v7727_v1 }
 0xddb   :  { %v3020_v14 = vsel %vm246_vm0, %v3001_v33, %v6799_v40  ;;  %v3023_v9 = vsel %vm246_vm0, %v6768_v6, %v3001_v33  ;;  %v3028_v1 = vmul.f32 %v3025_v58, %v7784_v26  ;;  %v3031_v2 = vmul.f32 %v3016_v4, %v7724_v57 }
 0xddc   :  { %v3033_v31 = vmul.f32 %v3023_v9, %v4397_v16  ;;  %v3034_v59 = vmul.f32 %v3020_v14, %v4412_v21  ;;  %3543 = vmatpush1.bf16.msra.mxu0 %v2984_v28  ;;  %3583 = vmatprep.subr.bf16.mxu1 %v2987_v39  ;;  %v3039_v16 = vmul.f32 %v6546_v46, %v7724_v57 }
 0xddd   :  { %3584 = vmatpush1.bf16.msra.mxu1 %v2986_v42  ;;  %v3045_v33 = vpack.c.bf16 %v3037_v17, %v3037_v17 }
 0xdde   :  { %v3041_v54 = vpack.c.bf16 %v3033_v31, %v3029_v3  ;;  %v6882_v13 = vpop.permute.xlu1 %3110  ;;  %v3013_v20 = vpop.permute.xlu0 %3012  ;;  %v3042_v50 = vpack.c.bf16 %v3034_v59, %v3030_v29  ;;  %v3047_v35 = vpack.c.bf16 %v3039_v16, %v3039_v16  ;;  %v2988_v3 = vpack.c.bf16 %v2980_v0, %v2980_v0 }
 0xddf   :  { %v3017_v63 = vsel %vm246_vm0, %v6799_v40, %v3013_v20  ;;  %v3026_v38 = vsel %vm246_vm0, %v3013_v20, %v6768_v6  ;;  %v3038_v6 = vmul.f32 %v6550_v45, %v4412_v21  ;;  %v2991_v31 = vpack.c.bf16 %v2983_v53, %v2983_v53 }
 0xde0   :  { %v3365_v28 = vrot.slane %v3041_v54, 4  ;;  %v3032_v46 = vmul.f32 %v3026_v38, %v7784_v26  ;;  %v3035_v40 = vmul.f32 %v3017_v63, %v7724_v57  ;;  %v3366_v42 = vrot.slane %v3042_v50, 4  ;;  %v7785_v38 = vld [vmem:[#allocation8_spill] sm:$0xff] }
 0xde1   :  { %v3044_v57 = vpack.c.bf16 %v3036_v25, %v3036_v25  ;;  %v3370_v21 = vrot.slane %v3045_v33, 4  ;;  %v3046_v45 = vpack.c.bf16 %v3038_v6, %v3038_v6  ;;  %v2990_v29 = vpack.c.bf16 %v2982_v48, %v2982_v48 }
 0xde2   :  { %v6906_v39 = vpop.permute.xlu1 %3122  ;;  %v6908_v62 = vpop.permute.xlu0 %3278  ;;  %v3458_v34 = vsel %vm533_vm2, %v2989_v12, %v3365_v28  ;;  %v3040_v14 = vpack.c.bf16 %v3032_v46, %v3028_v1  ;;  %v3043_v9 = vpack.c.bf16 %v3035_v40, %v3031_v2  ;;  %v3374_v4 = vrot.slane %v3047_v35, 4  ;;  %v7786_v1 = vld [vmem:[#allocation11_spill] sm:$0xff] }
 0xde3   :  { %3544 = vmatprep.subr.bf16.mxu0 %v3458_v34  ;;  %v3371_v54 = vsel %vm533_vm2, %v3365_v28, %v3370_v21  ;;  %v3462_v20 = vsel %vm533_vm2, %v2990_v29, %v3366_v42  ;;  %v3368_v0 = vrot.slane %v3044_v57, 4  ;;  %v3372_v63 = vrot.slane %v3046_v45, 4  ;;  %v7787_v57 = vld [vmem:[#allocation41_spill] sm:$0xff]  ;;  %v7789_v45 = vld [vmem:[#allocation43_spill] sm:$0xff] }
 0xde4   :  { %v3364_v59 = vrot.slane %v3040_v14, 4  ;;  %v3367_v17 = vrot.slane %v3043_v9, 4  ;;  %v3149_v26 = vmul.f32 %v6601_v51, %v7785_v38  ;;  %v6928_v50 = vmul.f32 %v6303_v11, %v4526_v60 }
 0xde5   :  { %v6933_v2 = vmul.f32 %v6571_v18, %v7786_v1  ;;  %v3373_v46 = vsel %vm533_vm2, %v3366_v42, %v3372_v63  ;;  %v6938_v51 = vmul.f32 %v6596_v56, %v4474_v22  ;;  %v3133_v18 = vsel %vm320_vm3, %v6591_v23, %v6739_v36 }
 0xde6   :  { %v6911_v5 = vpop.permute.xlu1 %3172  ;;  %v6913_v27 = vpop.permute.xlu0 %3270  ;;  %v3454_v12 = vsel %vm533_vm2, %v2988_v3, %v3364_v59  ;;  %v3466_v58 = vsel %vm533_vm2, %v2991_v31, %v3367_v17  ;;  %v3375_v16 = vsel %vm533_vm2, %v3367_v17, %v3374_v4  ;;  %v3369_v28 = vsel %vm533_vm2, %v3364_v59, %v3368_v0  ;;  %v7788_v17 = vld [vmem:[#allocation14_spill] sm:$0xff] }
 0xde7   :  { %3545 = vmatpush1.bf16.msra.mxu0 %v3454_v12  ;;  %3585 = vmatprep.subr.bf16.mxu1 %v3466_v58  ;;  %v3157_v40 = vpack.c.bf16 %v3149_v26, %v3149_v26  ;;  %v3208_v11 = vpack.c.bf16 %v6928_v50, %v6928_v50  ;;  %v3164_v48 = vpack.c.bf16 %v6269_v49, %v6269_v49  ;;  %v7790_v12 = vld [vmem:[#allocation48_spill] sm:$0xff] }
 0xde8   :  { %3546 = vmatprep.subr.bf16.mxu0 %v3371_v54  ;;  %3586 = vmatpush1.bf16.msra.mxu1 %v3462_v20  ;;  %v6954_v56 = vmul.f32 %v6307_v19, %v7732_v55  ;;  %v3101_v34 = vpack.c.bf16 %v6933_v2, %v6933_v2  ;;  %v3130_v35 = vsel %vm320_vm3, %v6739_v36, %v6589_v10  ;;  %v7791_v54 = vld [vmem:[#allocation47_spill] sm:$0xff] }
 0xde9   :  { %3587 = vmatprep.subr.bf16.mxu1 %v3375_v16  ;;  %v3077_v23 = vsel %vm283_vm4, %v6563_v61, %v6741_v37  ;;  %v6968_v14 = vmul.f32 %v6584_v41, %v7730_v32  ;;  %v3156_v19 = vpack.c.bf16 %v6938_v51, %v6938_v51  ;;  %v3074_v9 = vsel %vm283_vm4, %v6741_v37, %v6576_v47 }
 0xdea   :  { %v6922_v25 = vpop.permute.xlu1 %3180  ;;  %v6924_v53 = vpop.permute.xlu0 %3228  ;;  %v3072_v10 = vsel %vm283_vm4, %v6797_v7, %v6859_v15  ;;  %v6980_v36 = vrot.slane %v3157_v40, 4  ;;  %v3150_v61 = vmul.f32 %v3133_v18, %v7673_v43  ;;  %v3131_v41 = vsel %vm320_vm3, %v6882_v13, %v6806_v24 }
 0xdeb   :  { %3547 = vmatpush1.bf16.msra.mxu0 %v3369_v28  ;;  %v3134_v3 = vsel %vm320_vm3, %v6785_v30, %v6882_v13  ;;  %v6992_v42 = vmul.f32 %v3130_v35, %v7667_v52  ;;  %v3094_v7 = vmul.f32 %v3077_v23, %v7729_v44  ;;  %v7001_v21 = vmul.f32 %v3074_v9, %v7788_v17  ;;  %v7792_v23 = vld [vmem:[#allocation42_spill] sm:$0xff]  ;;  %v7793_v9 = vld [vmem:[#allocation44_spill] sm:$0xff] }
 0xdec   :  { %3588 = vmatpush1.bf16.msra.mxu1 %v3373_v46  ;;  %v3085_v13 = vmul.f32 %v7789_v45, %v7786_v1  ;;  %v3087_v29 = vmul.f32 %v3072_v10, %v7788_v17  ;;  %v3086_v58 = vmul.f32 %v7790_v12, %v7729_v44  ;;  %v3081_v20 = vsel %vm283_vm4, %v6859_v15, %v7791_v54  ;;  %v7795_v54 = vld [vmem:[#allocation50_spill] sm:$0xff] }
 0xded   :  { %v3141_v0 = vmul.f32 %v3134_v3, %v7785_v38  ;;  %v3142_v16 = vmul.f32 %v3131_v41, %v7673_v43  ;;  %v3128_v63 = vsel %vm320_vm3, %v6806_v24, %v6906_v39  ;;  %v3137_v26 = vsel %vm320_vm3, %v6906_v39, %v6785_v30 }
 0xdee   :  { %v6940_v33 = vpop.permute.xlu1 %3218  ;;  %v6942_v6 = vpop.permute.xlu0 %3230  ;;  %v3103_v2 = vpack.c.bf16 %v7001_v21, %v7001_v21 }
 0xdf2   :  { %v3051_v47 = vpop.permute.xlu1 %3050  ;;  %v3069_v37 = vpop.permute.xlu0 %3068 }
 0xdf3   :  { %v3073_v31 = vsel %vm283_vm4, %v7787_v57, %v3069_v37  ;;  %v3082_v59 = vsel %vm283_vm4, %v3069_v37, %v3051_v47  ;;  %v3158_v37 = vpack.c.bf16 %v3150_v61, %v3150_v61 }
 0xdf4   :  { %v3091_v4 = vmul.f32 %v3073_v31, %v7788_v17  ;;  %v3088_v28 = vmul.f32 %v3082_v59, %v7730_v32  ;;  %v3140_v31 = vmul.f32 %v3137_v26, %v4474_v22 }
 0xdf5   :  { %v3396_v26 = vrot.slane %v3158_v37, 4 }
 0xdf6   :  { %v3057_v46 = vpop.permute.xlu1 %3056  ;;  %v3113_v40 = vpop.permute.xlu0 %3112  ;;  %v3099_v18 = vpack.c.bf16 %v3091_v4, %v3087_v29 }
 0xdf7   :  { %v3076_v15 = vsel %vm283_vm4, %v3057_v46, %v7787_v57  ;;  %v3079_v35 = vsel %vm283_vm4, %v3051_v47, %v3057_v46  ;;  %v3132_v24 = vsel %vm320_vm3, %v3113_v40, %v7792_v23  ;;  %v3135_v30 = vsel %vm320_vm3, %v7793_v9, %v3113_v40 }
 0xdf8   :  { %v3089_v39 = vmul.f32 %v3079_v35, %v7786_v1  ;;  %v3090_v10 = vmul.f32 %v3076_v15, %v7729_v44  ;;  %v3145_v41 = vmul.f32 %v3135_v30, %v7785_v38  ;;  %v3146_v3 = vmul.f32 %v3132_v24, %v7673_v43  ;;  %3589 = vmatprep.subr.bf16.mxu1 %v3099_v18 }
 0xdf9   :  { %v3159_v47 = vpack.c.bf16 %v6992_v42, %v6992_v42  ;;  %v3084_v57 = vmul.f32 %v3081_v20, %v7730_v32  ;;  %v3143_v38 = vmul.f32 %v3128_v63, %v7667_v52  ;;  %v3100_v35 = vpack.c.bf16 %v6968_v14, %v6968_v14 }
 0xdfa   :  { %v3098_v59 = vpack.c.bf16 %v3090_v10, %v3086_v58  ;;  %v3153_v17 = vpack.c.bf16 %v3145_v41, %v3141_v0  ;;  %v3154_v45 = vpack.c.bf16 %v3146_v3, %v3142_v16  ;;  %v7043_v29 = vpop.permute.xlu1 %3272  ;;  %v3125_v1 = vpop.permute.xlu0 %3124  ;;  %v3097_v44 = vpack.c.bf16 %v3089_v39, %v3085_v13  ;;  %v7794_v13 = vld [vmem:[#allocation17_spill] sm:$0xff]  ;;  %v7796_v0 = vld [vmem:[#allocation15_spill] sm:$0xff]  ;;  %v7797_v16 = vld [vmem:[#allocation10_spill] sm:$0xff] }
 0xdfb   :  { %v3096_v4 = vpack.c.bf16 %v3088_v28, %v3084_v57  ;;  %v3129_v43 = vsel %vm320_vm3, %v7792_v23, %v3125_v1  ;;  %v3138_v32 = vsel %vm320_vm3, %v3125_v1, %v7793_v9  ;;  %v3202_v20 = vmul.f32 %v7795_v54, %v7794_v13  ;;  %v7798_v39 = vld [vmem:[#allocation18_spill] sm:$0xff] }
 0xdfc   :  { %v3389_v61 = vrot.slane %v3153_v17, 4  ;;  %v3390_v42 = vrot.slane %v3154_v45, 4  ;;  %v3144_v12 = vmul.f32 %v3138_v32, %v4474_v22  ;;  %v3147_v58 = vmul.f32 %v3129_v43, %v7667_v52  ;;  %3548 = vmatprep.subr.bf16.mxu0 %v3097_v44  ;;  %3590 = vmatpush1.bf16.msra.mxu1 %v3098_v59  ;;  %v7801_v41 = vld [vmem:[#allocation54_spill] sm:$0xff]  ;;  %v7803_v45 = vld [vmem:[#allocation52_spill] sm:$0xff]  ;;  %v7804_v44 = vld [vmem:[#allocation55_spill] sm:$0xff] }
 0xdfd   :  { %v3203_v63 = vmul.f32 %v7797_v16, %v7796_v0  ;;  %v3102_v28 = vpack.c.bf16 %v3094_v7, %v3094_v7  ;;  %3549 = vmatpush1.bf16.msra.mxu0 %v3096_v4  ;;  %v3392_v7 = vrot.slane %v3156_v19, 4  ;;  %v3398_v9 = vrot.slane %v3159_v47, 4  ;;  %v7800_v19 = vld [vmem:[#allocation20_spill] sm:$0xff]  ;;  %v7805_v43 = vld [vmem:[#allocation45_spill] sm:$0xff] }
 0xdfe   :  { %v3152_v46 = vpack.c.bf16 %v3144_v12, %v3140_v31  ;;  %v3155_v40 = vpack.c.bf16 %v3147_v58, %v3143_v38  ;;  %v7058_v18 = vpop.permute.xlu1 %3276  ;;  %v7060_v15 = vpop.permute.xlu0 %3280  ;;  %v3474_v22 = vsel %vm533_vm2, %v3101_v34, %v3389_v61  ;;  %v3395_v52 = vsel %vm533_vm2, %v3389_v61, %v6980_v36  ;;  %v7799_v36 = vld [vmem:[#allocation51_spill] sm:$0xff]  ;;  %v7806_v61 = vld [vmem:[#allocation46_spill] sm:$0xff] }
 0xdff   :  { %3550 = vmatprep.subr.bf16.mxu0 %v3474_v22  ;;  %v3478_v23 = vsel %vm533_vm2, %v3102_v28, %v3390_v42  ;;  %v3397_v24 = vsel %vm533_vm2, %v3390_v42, %v3396_v26  ;;  %v7079_v10 = vmul.f32 %v7799_v36, %v7798_v39  ;;  %v3209_v14 = vpack.c.bf16 %v6954_v56, %v6954_v56  ;;  %v7802_v56 = vld [vmem:[#allocation49_spill] sm:$0xff] }
 0xe00   :  { %v3388_v34 = vrot.slane %v3152_v46, 4  ;;  %v3391_v30 = vrot.slane %v3155_v40, 4  ;;  %v3210_v51 = vpack.c.bf16 %v3202_v20, %v3202_v20  ;;  %v7085_v3 = vmul.f32 %v7801_v41, %v7800_v19  ;;  %v7808_v26 = vld [vmem:[#allocation61_spill] sm:$0xff] }
 0xe01   :  { %v3165_v17 = vpack.c.bf16 %v7802_v56, %v7802_v56  ;;  %v3167_v1 = vpack.c.bf16 %v7803_v45, %v7803_v45  ;;  %v3166_v38 = vpack.c.bf16 %v7804_v44, %v7804_v44  ;;  %v3211_v4 = vpack.c.bf16 %v3203_v63, %v3203_v63  ;;  %v7807_v63 = vld [vmem:[#allocation19_spill] sm:$0xff]  ;;  %v7812_v36 = vld [vmem:[#allocation65_spill] sm:$0xff] }
 0xe02   :  { %v7087_v37 = vpop.permute.xlu1 %3268  ;;  %v7089_v47 = vpop.permute.xlu0 %3234  ;;  %v3470_v21 = vsel %vm533_vm2, %v3100_v35, %v3388_v34  ;;  %v3482_v57 = vsel %vm533_vm2, %v3103_v2, %v3391_v30  ;;  %v3399_v31 = vsel %vm533_vm2, %v3391_v30, %v3398_v9  ;;  %v3393_v59 = vsel %vm533_vm2, %v3388_v34, %v3392_v7  ;;  %v7810_v7 = vld [vmem:[#allocation30_spill] sm:$0xff]  ;;  %v7811_v2 = vld [vmem:[#allocation31_spill] sm:$0xff] }
 0xe03   :  { %3551 = vmatpush1.bf16.msra.mxu0 %v3470_v21  ;;  %3591 = vmatprep.subr.bf16.mxu1 %v3482_v57  ;;  %v3186_v32 = vsel %vm361_vm5, %v6911_v5, %v7805_v43  ;;  %v3188_v42 = vsel %vm361_vm5, %v7806_v61, %v6911_v5  ;;  %v7112_v12 = vrot.slane %v3208_v11, 4  ;;  %v3308_v58 = vpack.c.bf16 %v7079_v10, %v7079_v10  ;;  %v7815_v57 = vld [vmem:[#allocation66_spill] sm:$0xff] }
 0xe04   :  { %3552 = vmatprep.subr.bf16.mxu0 %v3395_v52  ;;  %3592 = vmatpush1.bf16.msra.mxu1 %v3478_v23  ;;  %v3418_v54 = vrot.slane %v3209_v14, 4  ;;  %v7116_v20 = vrot.slane %v3210_v51, 4  ;;  %v3309_v16 = vpack.c.bf16 %v7085_v3, %v7085_v3  ;;  %v7122_v5 = vmul.f32 %v7808_v26, %v7807_v63  ;;  %v7809_v52 = vld [vmem:[#allocation67_spill] sm:$0xff]  ;;  %v7813_v14 = vld [vmem:[#allocation60_spill] sm:$0xff] }
 0xe05   :  { %3593 = vmatprep.subr.bf16.mxu1 %v3399_v31  ;;  %v3184_v50 = vsel %vm361_vm5, %v7805_v43, %v6922_v25  ;;  %v3190_v11 = vsel %vm361_vm5, %v6922_v25, %v7806_v61  ;;  %v3192_v40 = vmul.f32 %v3188_v42, %v4526_v60  ;;  %v3193_v22 = vmul.f32 %v3186_v32, %v7732_v55  ;;  %v7819_v42 = vld [vmem:[#allocation22_spill] sm:$0xff] }
 0xe06   :  { %v3223_v28 = vpop.permute.xlu1 %3222  ;;  %v3175_v46 = vpop.permute.xlu0 %3174  ;;  %v7140_v9 = vrot.slane %v3211_v4, 4  ;;  %v3242_v25 = vsel %vm398_vm7, %v7811_v2, %v6940_v33  ;;  %v7814_v51 = vpack.c.bf16 %v7812_v36, %v7813_v14  ;;  %v3194_v41 = vmul.f32 %v3184_v50, %v7794_v13  ;;  %v7826_v36 = vld [vmem:[#allocation29_spill] sm:$0xff] }
 0xe07   :  { %v3187_v35 = vsel %vm361_vm5, %v3175_v46, %v7809_v52  ;;  %v3189_v23 = vsel %vm361_vm5, %v7810_v7, %v3175_v46  ;;  %3553 = vmatpush1.bf16.msra.mxu0 %v3393_v59  ;;  %v3195_v21 = vmul.f32 %v3190_v11, %v7796_v0  ;;  %v3239_v31 = vsel %vm398_vm7, %v6940_v33, %v7815_v57  ;;  %v7817_v59 = vld [vmem:[#allocation58_spill] sm:$0xff]  ;;  %v7820_v46 = vld [vmem:[#allocation28_spill] sm:$0xff] }
 0xe08   :  { %v3196_v34 = vmul.f32 %v3189_v23, %v4526_v60  ;;  %v3197_v30 = vmul.f32 %v3187_v35, %v7732_v55  ;;  %3554 = vmatprep.subr.bf16.mxu0 %v7814_v51  ;;  %3594 = vmatpush1.bf16.msra.mxu1 %v3397_v24  ;;  %v3236_v60 = vsel %vm398_vm7, %v7815_v57, %v6942_v6  ;;  %v7816_v55 = vld [vmem:[#allocation64_spill] sm:$0xff] }
 0xe09   :  { %v7818_v56 = vpack.c.bf16 %v7816_v55, %v7817_v59  ;;  %v3245_v24 = vsel %vm398_vm7, %v6942_v6, %v7811_v2  ;;  %v3286_v4 = vsel %vm435_vm6, %v7043_v29, %v7058_v18  ;;  %v7173_v26 = vmul.f32 %v3242_v25, %v7819_v42  ;;  %v7823_v35 = vld [vmem:[#allocation24_spill] sm:$0xff]  ;;  %v7824_v2 = vld [vmem:[#allocation25_spill] sm:$0xff] }
 0xe0a   :  { %v3204_v33 = vpack.c.bf16 %v3196_v34, %v3192_v40  ;;  %v3205_v43 = vpack.c.bf16 %v3197_v30, %v3193_v22  ;;  %v3217_v32 = vpop.permute.xlu1 %3216  ;;  %v3183_v61 = vpop.permute.xlu0 %3182  ;;  %v3284_v50 = vsel %vm435_vm6, %v7058_v18, %v7060_v15  ;;  %v7821_v40 = vld [vmem:[#allocation26_spill] sm:$0xff]  ;;  %v3249_v23 = vmul.f32 %v3239_v31, %v7823_v35  ;;  %v7825_v18 = vld [vmem:[#allocation63_spill] sm:$0xff]  ;;  %v7829_v59 = vld [vmem:[#allocation21_spill] sm:$0xff] }
 0xe0b   :  { %3595 = vmatprep.subr.bf16.mxu1 %v7818_v56  ;;  %v3185_v6 = vsel %vm361_vm5, %v7809_v52, %v3183_v61  ;;  %v3191_v11 = vsel %vm361_vm5, %v3183_v61, %v7810_v7  ;;  %v7822_v22 = vpack.c.bf16 %v7820_v46, %v7821_v40  ;;  %v7190_v25 = vmul.f32 %v3236_v60, %v7824_v2  ;;  %v7828_v52 = vld [vmem:[#allocation23_spill] sm:$0xff] }
 0xe0c   :  { %v3412_v34 = vrot.slane %v3204_v33, 4  ;;  %v3413_v30 = vrot.slane %v3205_v43, 4  ;;  %v7827_v14 = vpack.c.bf16 %v7825_v18, %v7826_v36  ;;  %v7196_v51 = vmul.f32 %v3245_v24, %v7828_v52 }
 0xe0d   :  { %3555 = vmatpush1.bf16.msra.mxu0 %v7822_v22  ;;  %v3293_v7 = vmul.f32 %v3286_v4, %v7800_v19  ;;  %v3198_v57 = vmul.f32 %v3185_v6, %v7794_v13  ;;  %v3199_v55 = vmul.f32 %v3191_v11, %v7796_v0  ;;  %v7202_v31 = vmul.f32 %v3284_v50, %v7829_v59  ;;  %v7830_v0 = vld [vmem:[#allocation32_spill] sm:$0xff]  ;;  %v7831_v50 = vld [vmem:[#allocation33_spill] sm:$0xff] }
 0xe0e   :  { %3596 = vmatpush1.bf16.msra.mxu1 %v7827_v14  ;;  %v3241_v60 = vsel %vm398_vm7, %v3223_v28, %v6924_v53  ;;  %v7207_v56 = vpop.permute.xlu1 %3316  ;;  %v3221_v33 = vpop.permute.xlu0 %3220  ;;  %v3490_v43 = vsel %vm533_vm2, %v3165_v17, %v3413_v30  ;;  %v3486_v24 = vsel %vm533_vm2, %v3164_v48, %v3412_v34  ;;  %v3244_v11 = vsel %vm398_vm7, %v3217_v32, %v3223_v28 }
 0xe0f   :  { %v3206_v13 = vpack.c.bf16 %v3198_v57, %v3194_v41  ;;  %v3207_v4 = vpack.c.bf16 %v3199_v55, %v3195_v21  ;;  %v3240_v61 = vsel %vm398_vm7, %v3221_v33, %v7830_v0  ;;  %v3243_v6 = vsel %vm398_vm7, %v7831_v50, %v3221_v33  ;;  %3556 = vmatprep.subr.bf16.mxu0 %v3490_v43 }
 0xe10   :  { %v3253_v17 = vmul.f32 %v3240_v61, %v7823_v35  ;;  %v3419_v49 = vsel %vm533_vm2, %v3413_v30, %v3418_v54  ;;  %v3417_v48 = vsel %vm533_vm2, %v3412_v34, %v7112_v12  ;;  %v3288_v41 = vsel %vm435_vm6, %v7087_v37, %v7043_v29 }
 0xe11   :  { %3557 = vmatpush1.bf16.msra.mxu0 %v3486_v24  ;;  %v3290_v21 = vsel %vm435_vm6, %v7060_v15, %v7087_v37  ;;  %v3414_v46 = vrot.slane %v3206_v13, 4  ;;  %v3415_v28 = vrot.slane %v3207_v4, 4  ;;  %v3238_v54 = vsel %vm398_vm7, %v6924_v53, %v7089_v47  ;;  %v4145_v24 = vld [vmem:[%s7579_s3 + $0x28] ss:$0 sm:$0xff] }
 0xe12   :  { %3558 = vmatprep.subr.bf16.mxu0 %v3419_v49  ;;  %v3257_v12 = vmul.f32 %v3241_v60, %v7823_v35  ;;  %v3252_v40 = vmul.f32 %v3243_v6, %v7819_v42  ;;  %v7240_v22 = vpop.permute.xlu1 %3320  ;;  %v3275_v29 = vpop.permute.xlu0 %3274  ;;  %v3261_v34 = vpack.c.bf16 %v3253_v17, %v3249_v23  ;;  %v3256_v30 = vmul.f32 %v3244_v11, %v7819_v42 }
 0xe13   :  { %v3287_v15 = vsel %vm435_vm6, %v3275_v29, %v6908_v62  ;;  %v3289_v37 = vsel %vm435_vm6, %v6913_v27, %v3275_v29  ;;  %v3498_v53 = vsel %vm533_vm2, %v3167_v1, %v3415_v28  ;;  %v3442_v35 = vrot.slane %v3309_v16, 4 }
 0xe14   :  { %v3292_v23 = vmul.f32 %v3288_v41, %v7798_v39  ;;  %v3296_v42 = vmul.f32 %v3289_v37, %v7798_v39  ;;  %v3297_v18 = vmul.f32 %v3287_v15, %v7800_v19  ;;  %3597 = vmatprep.subr.bf16.mxu1 %v3498_v53  ;;  %v3247_v36 = vsel %vm398_vm7, %v7089_v47, %v3217_v32  ;;  %v7832_v41 = vld [vmem:[#allocation59_spill] sm:$0xff] }
 0xe15   :  { %3559 = vmatpush1.bf16.msra.mxu0 %v3417_v48  ;;  %v3494_v45 = vsel %vm533_vm2, %v3166_v38, %v3414_v46  ;;  %v3423_v3 = vsel %vm533_vm2, %v3415_v28, %v7140_v9  ;;  %v3421_v39 = vsel %vm533_vm2, %v3414_v46, %v7116_v20  ;;  %v3260_v19 = vpack.c.bf16 %v3252_v40, %v7173_v26  ;;  %v7833_v46 = vld [vmem:[#allocation56_spill] sm:$0xff] }
 0xe16   :  { %3560 = vmatprep.subr.bf16.mxu0 %v3261_v34  ;;  %v3330_v1 = vsel %vm472_vm8, %v7207_v56, %v7240_v22  ;;  %v3304_v47 = vpack.c.bf16 %v3296_v42, %v3292_v23  ;;  %v3305_v16 = vpack.c.bf16 %v3297_v18, %v3293_v7  ;;  %3598 = vmatpush1.bf16.msra.mxu1 %v3494_v45  ;;  %v3233_v44 = vpop.permute.xlu1 %3232  ;;  %v7275_v32 = vpop.permute.xlu0 %3322  ;;  %v3440_v49 = vrot.slane %v3308_v58, 4  ;;  %v7834_v58 = vld [vmem:[#allocation57_spill] sm:$0xff] }
 0xe17   :  { %v3265_v38 = vpack.c.bf16 %v3257_v12, %v3257_v12  ;;  %v3264_v14 = vpack.c.bf16 %v3256_v30, %v3256_v30  ;;  %3599 = vmatprep.subr.bf16.mxu1 %v3423_v3  ;;  %v3237_v20 = vsel %vm398_vm7, %v7830_v0, %v3233_v44  ;;  %v3246_v9 = vsel %vm398_vm7, %v3233_v44, %v7831_v50 }
 0xe18   :  { %v3436_v26 = vrot.slane %v3304_v47, 4  ;;  %v3437_v57 = vrot.slane %v3305_v16, 4  ;;  %v3254_v55 = vmul.f32 %v3237_v20, %v7824_v2  ;;  %v3255_v7 = vmul.f32 %v3246_v9, %v7828_v52 }
 0xe19   :  { %3561 = vmatpush1.bf16.msra.mxu0 %v3260_v19  ;;  %v3295_v60 = vmul.f32 %v3290_v21, %v7807_v63  ;;  %v3258_v33 = vmul.f32 %v3238_v54, %v7824_v2  ;;  %v3259_v43 = vmul.f32 %v3247_v36, %v7828_v52  ;;  %v3337_v13 = vmul.f32 %v4145_v24, %v3330_v1 }
 0xe1a   :  { %v3262_v4 = vpack.c.bf16 %v3254_v55, %v7190_v25  ;;  %3600 = vmatpush1.bf16.msra.mxu1 %v3421_v39  ;;  %v3283_v0 = vpop.permute.xlu1 %3282  ;;  %v3319_v61 = vpop.permute.xlu0 %3318  ;;  %v3506_v50 = vsel %vm533_vm2, %v3265_v38, %v3437_v57  ;;  %v3502_v6 = vsel %vm533_vm2, %v3264_v14, %v3436_v26  ;;  %v3263_v11 = vpack.c.bf16 %v3255_v7, %v7196_v51  ;;  %v4147_v38 = vld [vmem:[%s7579_s3 + $0x38] ss:$0 sm:$0xff] }
 0xe1b   :  { %v3285_v2 = vsel %vm435_vm6, %v6908_v62, %v3283_v0  ;;  %v3291_v52 = vsel %vm435_vm6, %v3283_v0, %v6913_v27  ;;  %v3331_v25 = vsel %vm472_vm8, %v3319_v61, %v7275_v32  ;;  %3562 = vmatprep.subr.bf16.mxu0 %v3506_v50  ;;  %v3443_v17 = vsel %vm533_vm2, %v3437_v57, %v3442_v35  ;;  %v4146_v27 = vld [vmem:[%s7579_s3 + $0x20] ss:$0 sm:$0xff] }
 0xe1c   :  { %v3298_v51 = vmul.f32 %v3285_v2, %v7829_v59  ;;  %v3299_v48 = vmul.f32 %v3291_v52, %v7807_v63  ;;  %v3341_v62 = vmul.f32 %v4145_v24, %v3331_v25  ;;  %3601 = vmatprep.subr.bf16.mxu1 %v3263_v11  ;;  %v3344_v21 = vmul.f32 %v4146_v27, %v7832_v41 }
 0xe1d   :  { %3563 = vmatpush1.bf16.msra.mxu0 %v3502_v6  ;;  %v3302_v28 = vmul.f32 %v7833_v46, %v7829_v59  ;;  %v3311_v10 = vpack.c.bf16 %v7122_v5, %v7122_v5  ;;  %v3345_v54 = vmul.f32 %v4145_v24, %v7834_v58  ;;  %v3266_v12 = vpack.c.bf16 %v3258_v33, %v3258_v33  ;;  %v193_v58 = vld [vmem:[%s7397_s19] sm:$0xf] }
 0xe1e   :  { %3564 = vmatprep.subr.bf16.mxu0 %v3443_v17  ;;  %v3306_v63 = vpack.c.bf16 %v3298_v51, %v7202_v31  ;;  %v3307_v40 = vpack.c.bf16 %v3299_v48, %v3295_v60  ;;  %3602 = vmatpush1.bf16.msra.mxu1 %v3262_v4  ;;  %v3313_v29 = vpop.permute.xlu1 %3312  ;;  %v3315_v34 = vpop.permute.xlu0 %3314  ;;  %v3349_v30 = vpack.c.bf16 %v3341_v62, %v3337_v13  ;;  %v7837_v13 = vld [vmem:[#allocation27_spill] sm:$0xff]  ;;  %v7838_v11 = vmov 0  }
 0xe1f   :  { %v3267_v15 = vpack.c.bf16 %v3259_v43, %v3259_v43  ;;  %v3332_v37 = vsel %vm472_vm8, %v3313_v29, %v7207_v56  ;;  %v3333_v59 = vsel %vm472_vm8, %v3315_v34, %v3319_v61  ;;  %v3441_v5 = vsel %vm533_vm2, %v3436_v26, %v3440_v49  ;;  %v7836_v43 = vld [vmem:[#allocation9_spill] sm:$0xff] }
 0xe20   :  { %v3438_v53 = vrot.slane %v3306_v63, 4  ;;  %v3439_v35 = vrot.slane %v3307_v40, 4  ;;  %v3336_v23 = vmul.f32 %v4146_v27, %v3332_v37  ;;  %v3340_v42 = vmul.f32 %v4146_v27, %v3333_v59 }
 0xe21   :  { %3565 = vmatpush1.bf16.msra.mxu0 %v3441_v5  ;;  %v3352_v31 = vpack.c.bf16 %v3344_v21, %v3344_v21  ;;  %v3310_v18 = vpack.c.bf16 %v3302_v28, %v3302_v28  ;;  %v3446_v19 = vrot.slane %v3311_v10, 4  ;;  %v3353_v1 = vpack.c.bf16 %v3345_v54, %v3345_v54 }
 0xe22   :  { %3566 = vmatprep.subr.bf16.mxu0 %v3349_v30  ;;  %v3348_v36 = vpack.c.bf16 %v3340_v42, %v3336_v23  ;;  %v3325_v45 = vpop.permute.xlu1 %3324  ;;  %v3327_v3 = vpop.permute.xlu0 %3326  ;;  %v3514_v39 = vsel %vm533_vm2, %v3267_v15, %v3439_v35  ;;  %v3510_v56 = vsel %vm533_vm2, %v3266_v12, %v3438_v53  ;;  %v3347_v4 = vmul.f32 %v4147_v38, %v7837_v13 }
 0xe23   :  { %v3334_v47 = vsel %vm472_vm8, %v3325_v45, %v3313_v29  ;;  %v3335_v16 = vsel %vm472_vm8, %v3327_v3, %v3315_v34  ;;  %3603 = vmatprep.subr.bf16.mxu1 %v3514_v39  ;;  %v3328_v44 = vsel %vm472_vm8, %v7240_v22, %v3325_v45  ;;  %v3329_v20 = vsel %vm472_vm8, %v7275_v32, %v3327_v3  ;;  %v4148_v22 = vld [vmem:[%s7579_s3 + $0x30] ss:$0 sm:$0xff] }
 0xe24   :  { %v3339_v14 = vmul.f32 %v4147_v38, %v3334_v47  ;;  %v3343_v9 = vmul.f32 %v4147_v38, %v3335_v16  ;;  %3604 = vmatpush1.bf16.msra.mxu1 %v3510_v56  ;;  %v3447_v26 = vsel %vm533_vm2, %v3439_v35, %v3446_v19  ;;  %v3444_v57 = vrot.slane %v3310_v18, 4 }
 0xe25   :  { %3567 = vmatpush1.bf16.msra.mxu0 %v3348_v36  ;;  %3605 = vmatprep.subr.bf16.mxu1 %v3447_v26  ;;  %v3338_v7 = vmul.f32 %v4148_v22, %v3328_v44  ;;  %v3342_v60 = vmul.f32 %v4148_v22, %v3329_v20  ;;  %v3531_v33 = vsel %vm533_vm2, %v3352_v31, 0  ;;  %v3833_v32 = vcombine.low %v7835_v8, %v7835_v8 }
 0xe26   :  { %3835 = vmatprep.subr.msk.bf16.mxu0 %vm533_vm2, %v3353_v1  ;;  %v3351_v55 = vpack.c.bf16 %v3343_v9, %v3339_v14  ;;  %v3346_v24 = vmul.f32 %v4148_v22, %v7836_v43  ;;  %v3445_v0 = vsel %vm533_vm2, %v3438_v53, %v3444_v57  ;;  %v3355_v6 = vpack.c.bf16 %v3347_v4, %v3347_v4 }
 0xe27   :  { %v3350_v61 = vpack.c.bf16 %v3342_v60, %v3338_v7 }
 0xe28   :  { %3606 = vmatpush1.bf16.msra.mxu1 %v3445_v0  ;;  %v3354_v50 = vpack.c.bf16 %v3346_v24, %v3346_v24 }
 0xe29   :  { %3569 = vmatpush1.bf16.msra.mxu0 %v3531_v33  ;;  %3607 = vmatprep.subr.bf16.mxu1 %v3351_v55 }
 0xe2a   :  { %v3537_v2 = vsel %vm533_vm2, %v3354_v50, 0 }
 0xe2c   :  { %3575 = vmatmul.mubr.bf16.vlgmr.msra.gmra.mrb[32].mxu0 %v3833_v32  ;;  %3608 = vmatpush1.bf16.msra.mxu1 %v3350_v61 }
 0xe2d   :  { %3684 = vmatprep.mubr.bf16.mxu0 %v7838_v11  ;;  %3837 = vmatprep.subr.msk.bf16.mxu1 %vm533_vm2, %v3355_v6 }
 0xe30   :  { %3610 = vmatpush1.bf16.msra.mxu1 %v3537_v2 }
 0xe33   :  { %3616 = vmatmul.mubr.bf16.vlgmr.msra.gmra.mrb[40].mxu1 %v3833_v32  ;;  %v3519_v52 = vpop.permute.xlu1 %3518  ;;  %v3635_v5 = vpop.permute.xlu0 %3634 }
 0xeff   :  { %v3576_v25 = vpop.f32.mrb[32].mxu0 }
 0xf00   :  { %v3577_v17 = vadd.f32 %v3576_v25, %v3519_v52  ;;  %v3578_v49 = vpop.f32.mrb[33].mxu0 }
 0xf01   :  { %v3579_v51 = vadd.f32 %v3578_v49, %v3519_v52  ;;  %v3580_v48 = vpop.f32.mrb[34].mxu0 }
 0xf02   :  { %v3624_v62 = vmax.f32 %v3577_v17, 0.0  ;;  %v3581_v27 = vpop.f32.mrb[35].mxu0 }
 0xf03   :  { %v3625_v41 = vmax.f32 %v3579_v51, 0.0 }
 0xf04   :  { %v3628_v21 = vpack.c.bf16 %v3624_v62, %v3624_v62 }
 0xf05   :  { %v3629_v46 = vpack.c.bf16 %v3625_v41, %v3625_v41 }
 0xf06   :  { %v3641_v28 = vsel %vm533_vm2, %v3628_v21, 0  ;;  %v3617_v10 = vpop.f32.mrb[40].mxu1 }
 0xf07   :  { %3839 = vmatprep.subr.msk.bf16.mxu0 %vm533_vm2, %v3629_v46  ;;  %v3618_v54 = vadd.f32 %v3617_v10, %v3519_v52  ;;  %v3619_v12 = vpop.f32.mrb[41].mxu1 }
 0xf08   :  { %3653 = vmatpush1.bf16.msra.mxu0 %v3641_v28  ;;  %v3620_v63 = vadd.f32 %v3619_v12, %v3519_v52  ;;  %v3621_v40 = vpop.f32.mrb[42].mxu1 }
 0xf09   :  { %v3626_v29 = vmax.f32 %v3618_v54, 0.0  ;;  %v3622_v34 = vpop.f32.mrb[43].mxu1 }
 0xf0a   :  { %v3627_v30 = vmax.f32 %v3620_v63, 0.0 }
 0xf0b   :  { %3840 = vmatmul.mubr.msk.bf16.vlgmr.msra.gmra.mrb[36].mxu0 %vm2132_vm12, %v193_v58  ;;  %v3630_v15 = vpack.c.bf16 %v3626_v29, %v3626_v29 }
 0xf0c   :  { %3725 = vmatprep.mubr.bf16.mxu0 %v7838_v11  ;;  %v3631_v37 = vpack.c.bf16 %v3627_v30, %v3627_v30 }
 0xf0d   :  { %v3647_v59 = vsel %vm533_vm2, %v3630_v15, 0 }
 0xf0e   :  { %3841 = vmatprep.subr.msk.bf16.mxu0 %vm533_vm2, %v3631_v37 }
 0xf0f   :  { %3694 = vmatpush1.bf16.msra.mxu0 %v3647_v59 }
 0xf13   :  { %3842 = vmatmul.mubr.msk.bf16.vlgmr.msra.gmra.mrb[40].mxu0 %vm2132_vm12, %v193_v58 }
 0xfde   :  { %v3686_v53 = vpop.f32.mrb[36].mxu0 }
 0xfdf   :  { %v3687_v35 = vadd.f32 %v3686_v53, %v3635_v5  ;;  %v3688_v23 = vpop.f32.mrb[37].mxu0 }
 0xfe0   :  { %v3689_v42 = vadd.f32 %v3688_v23, %v3635_v5  ;;  %v3690_v31 = vpop.f32.mrb[38].mxu0 }
 0xfe1   :  { %3734 = vst [vmem:[%s7839_s22] sm:$0xff] %v3687_v35  ;;  %v3691_v18 = vpop.f32.mrb[39].mxu0 }
 0xfe2   :  { %3735 = vst [vmem:[%s7839_s22 + $0x8] sm:$0xff] %v3689_v42 }
 0xfe6   :  { %v3727_v36 = vpop.f32.mrb[40].mxu0 }
 0xfe7   :  { %v3728_v45 = vadd.f32 %v3727_v36, %v3635_v5  ;;  %v3729_v3 = vpop.f32.mrb[41].mxu0 }
 0xfe8   :  { %v3730_v39 = vadd.f32 %v3729_v3, %v3635_v5  ;;  %v3731_v56 = vpop.f32.mrb[42].mxu0 }
 0xfe9   :  { %3736 = vst [vmem:[%s7839_s22 + $0x10] sm:$0xff] %v3728_v45  ;;  %v3732_v19 = vpop.f32.mrb[43].mxu0 }
 0xfea   :  { %3737 = vst [vmem:[%s7839_s22 + $0x18] sm:$0xff] %v3730_v39 }

</bundles_post_ra>
